<compile_context>
chip_gen: v7x
topology: tpu7x:2x2x1
jax: 0.10.0
libtpu: 0.0.40
codegen_flags: <defaults>
</compile_context>

<pallas_src>
import numpy as np
import jax
import jax.numpy as jnp
from jax.experimental import pallas as pl
from jax.experimental.pallas import tpu as pltpu

NEG_SLOPE = 0.01  # PyTorch F.leaky_relu default


def _leaky(v):
    return jnp.where(v > 0, v, NEG_SLOPE * v)


def _sigmoid(v):
    return 1.0 / (1.0 + jnp.exp(-v))


def make_actor_kernel(T, Bt, Din, H, A, eps, test_mode):
    if not test_mode:
        log1meps = float(np.log(1.0 - eps))
        logeps_minus_logA = float(np.log(eps) - np.log(A))
    else:
        log1meps = 0.0
        logeps_minus_logA = 0.0

    def kernel(x_ref, h0_ref,
               w1_ref, b1_ref, w2_ref, b2_ref,
               wihr_ref, wihz_ref, wihn_ref,
               whhr_ref, whhz_ref, whhn_ref,
               br_ref, bz_ref, bni_ref, bnh_ref,
               w3_ref, b3_ref, w4_ref, b4_ref,
               out_ref, hout_ref,
               gr_scr, gz_scr, gn_scr, gout_scr):
        # x block is (T, Bt, Din), time-major: flat row index = t*Bt + b.
        x = x_ref[...].reshape(T * Bt, Din)

        # fc1 / fc2 (+ leaky relu) on the whole (Bt*T) slab.
        y = _leaky(jnp.dot(x, w1_ref[...],
                           preferred_element_type=jnp.float32) + b1_ref[...])
        y = _leaky(jnp.dot(y, w2_ref[...],
                           preferred_element_type=jnp.float32) + b2_ref[...])

        # Per-gate input projections for ALL timesteps (r/z hidden biases
        # already folded into br/bz; bni is the input-side n bias).
        gr_scr[...] = jnp.dot(y, wihr_ref[...],
                              preferred_element_type=jnp.float32) + br_ref[...]
        gz_scr[...] = jnp.dot(y, wihz_ref[...],
                              preferred_element_type=jnp.float32) + bz_ref[...]
        gn_scr[...] = jnp.dot(y, wihn_ref[...],
                              preferred_element_type=jnp.float32) + bni_ref[...]

        whr = whhr_ref[...]                                   # (H, H)
        whz = whhz_ref[...]
        whn = whhn_ref[...]
        bnh = bnh_ref[...]                                    # (1, H)

        h = h0_ref[...]                                       # (Bt, H)
        # Static T -> fully unrolled recurrence; all scratch slices are
        # static, sublane-aligned (Bt multiple of 8 or full extent).
        for t in range(T):
            row = t * Bt
            r = _sigmoid(gr_scr[pl.ds(row, Bt), :]
                         + jnp.dot(h, whr, preferred_element_type=jnp.float32))
            z = _sigmoid(gz_scr[pl.ds(row, Bt), :]
                         + jnp.dot(h, whz, preferred_element_type=jnp.float32))
            n = jnp.tanh(gn_scr[pl.ds(row, Bt), :]
                         + r * (jnp.dot(h, whn,
                                        preferred_element_type=jnp.float32)
                                + bnh))
            h = (1.0 - z) * n + z * h
            gout_scr[pl.ds(row, Bt), :] = h                   # full-slab store
        hout_ref[...] = h

        # fc3 / fc4 on the whole (Bt*T) slab.
        g = gout_scr[...]                                     # (T*Bt, H)
        z3 = _leaky(jnp.dot(g, w3_ref[...],
                            preferred_element_type=jnp.float32) + b3_ref[...])
        z4 = jnp.dot(z3, w4_ref[...],
                     preferred_element_type=jnp.float32) + b4_ref[...]  # (T*Bt, A)

        # log_softmax over last dim
        m = jnp.max(z4, axis=-1, keepdims=True)
        lse = jnp.log(jnp.sum(jnp.exp(z4 - m), axis=-1, keepdims=True)) + m
        logp = z4 - lse

        if not test_mode:
            a = logp + log1meps
            b = jnp.full_like(logp, logeps_minus_logA)
            mm = jnp.maximum(a, b)
            logp = mm + jnp.log(jnp.exp(a - mm) + jnp.exp(b - mm))

        out_ref[...] = logp.reshape(T, Bt, A)

    return kernel


def _pick_block_b(B):
    # Prefer sublane-aligned tiles (multiple of 8) while keeping >= 2 grid
    # steps so both v7x TensorCores get work; fall back to the full batch.
    for d in (128, 64, 32, 16, 8):
        if B % d == 0 and B // d >= 2:
            return d
    return B


def actor_forward(x, h0, params, eps=0.0, test_mode=False, block_b=None):
    B, T, Din = x.shape
    H = params["whh"].shape[0]
    A = params["w4"].shape[1]

    if block_b is None:
        block_b = _pick_block_b(B)
    assert B % block_b == 0, "batch must be divisible by the batch tile"
    n_tiles = B // block_b

    # Time-major input so each timestep is a contiguous (Bt, ...) slab.
    x_tm = jnp.transpose(x, (1, 0, 2))                # (T, B, Din)
    h0_2d = jnp.reshape(h0, (B, H))                   # (B, H)

    # Split GRU weights per gate (r, z, n) and fold the r/z hidden biases
    # into the input-side biases (they enter the sigmoids additively).
    wih, whh = params["wih"], params["whh"]
    bih, bhh = params["bih"], params["bhh"]
    wih_r, wih_z, wih_n = wih[:, 0:H], wih[:, H:2 * H], wih[:, 2 * H:3 * H]
    whh_r, whh_z, whh_n = whh[:, 0:H], whh[:, H:2 * H], whh[:, 2 * H:3 * H]
    br = bih[:, 0:H] + bhh[:, 0:H]
    bz = bih[:, H:2 * H] + bhh[:, H:2 * H]
    bni = bih[:, 2 * H:3 * H]
    bnh = bhh[:, 2 * H:3 * H]

    weights = [params["w1"], params["b1"], params["w2"], params["b2"],
               wih_r, wih_z, wih_n, whh_r, whh_z, whh_n,
               br, bz, bni, bnh,
               params["w3"], params["b3"], params["w4"], params["b4"]]
    weight_specs = [pl.BlockSpec(w.shape, lambda b: (0, 0)) for w in weights]

    grid_spec = pltpu.PrefetchScalarGridSpec(
        num_scalar_prefetch=0,
        grid=(n_tiles,),
        in_specs=[
            pl.BlockSpec((T, block_b, Din), lambda b: (0, b, 0)),  # x (time-major)
            pl.BlockSpec((block_b, H), lambda b: (b, 0)),          # h0
        ] + weight_specs,
        out_specs=[
            pl.BlockSpec((T, block_b, A), lambda b: (0, b, 0)),    # log-probs
            pl.BlockSpec((block_b, H), lambda b: (b, 0)),          # final hidden
        ],
        scratch_shapes=[
            pltpu.VMEM((T * block_b, H), jnp.float32),  # r-gate input proj
            pltpu.VMEM((T * block_b, H), jnp.float32),  # z-gate input proj
            pltpu.VMEM((T * block_b, H), jnp.float32),  # n-gate input proj
            pltpu.VMEM((T * block_b, H), jnp.float32),  # GRU outputs
        ],
    )

    kernel = make_actor_kernel(T, block_b, Din, H, A, eps, test_mode)

    out_tm, h_out = pl.pallas_call(
        kernel,
        out_shape=(jax.ShapeDtypeStruct((T, B, A), jnp.float32),
                   jax.ShapeDtypeStruct((B, H), jnp.float32)),
        grid_spec=grid_spec,
        compiler_params=pltpu.CompilerParams(
            dimension_semantics=("parallel",)),
    )(x_tm, h0_2d, *weights)

    # Back to batch-first (B, T, A); hidden as (B, 1, H) like the reference.
    return jnp.transpose(out_tm, (1, 0, 2)), h_out[:, None, :]


# ----------------------------------------------------------------------------
# Deterministic parameter initialization (same scheme as the PyTorch module:
# xavier_uniform with leaky_relu / linear gain for the Linear layers, zero
# bias; uniform(-1/sqrt(H), 1/sqrt(H)) for the GRU).
# ----------------------------------------------------------------------------
def init_params(key, input_dim, output_dim, mlp=(32, 32), rnn=32):
    ks = jax.random.split(key, 8)

    def xavier_uniform(k, fan_in, fan_out, gain):
        bound = gain * np.sqrt(6.0 / (fan_in + fan_out))
        return jax.random.uniform(k, (fan_in, fan_out), jnp.float32,
                                  -bound, bound)

    g_lrelu = float(np.sqrt(2.0 / (1.0 + NEG_SLOPE ** 2)))
    g_lin = 1.0
    H = rnn
    bnd = 1.0 / np.sqrt(H)

    params = {
        "w1": xavier_uniform(ks[0], input_dim, mlp[0], g_lrelu),
        "b1": jnp.zeros((1, mlp[0]), jnp.float32),
        "w2": xavier_uniform(ks[1], mlp[0], mlp[0], g_lrelu),
        "b2": jnp.zeros((1, mlp[0]), jnp.float32),
        # GRU weights stored transposed: (in, 3H) / (H, 3H), gate order r,z,n
        "wih": jax.random.uniform(ks[2], (mlp[0], 3 * H), jnp.float32, -bnd, bnd),
        "whh": jax.random.uniform(ks[3], (H, 3 * H), jnp.float32, -bnd, bnd),
        "bih": jax.random.uniform(ks[4], (1, 3 * H), jnp.float32, -bnd, bnd),
        "bhh": jax.random.uniform(ks[5], (1, 3 * H), jnp.float32, -bnd, bnd),
        "w3": xavier_uniform(ks[6], H, mlp[1], g_lrelu),
        "b3": jnp.zeros((1, mlp[1]), jnp.float32),
        "w4": xavier_uniform(ks[7], mlp[1], output_dim, g_lin),
        "b4": jnp.zeros((1, output_dim), jnp.float32),
    }
    return params


# Pure-JAX reference for correctness checking.
def actor_ref(x, h0, p, eps, test_mode):
    def leaky(v):
        return jnp.where(v > 0, v, NEG_SLOPE * v)

    y = leaky(x @ p["w1"] + p["b1"][0])
    y = leaky(y @ p["w2"] + p["b2"][0])
    B, T, _ = x.shape
    h = h0[:, 0, :]
    outs = []
    for t in range(T):
        gi = y[:, t, :] @ p["wih"] + p["bih"][0]
        gh = h @ p["whh"] + p["bhh"][0]
        i_r, i_z, i_n = jnp.split(gi, 3, axis=-1)
        h_r, h_z, h_n = jnp.split(gh, 3, axis=-1)
        r = jax.nn.sigmoid(i_r + h_r)
        z = jax.nn.sigmoid(i_z + h_z)
        n = jnp.tanh(i_n + r * h_n)
        h = (1.0 - z) * n + z * h
        outs.append(h)
    g = jnp.stack(outs, axis=1)
    z3 = leaky(g @ p["w3"] + p["b3"][0])
    z4 = z3 @ p["w4"] + p["b4"][0]
    logp = jax.nn.log_softmax(z4, axis=-1)
    if not test_mode:
        A = z4.shape[-1]
        l1 = logp + np.log(1.0 - eps)
        l2 = jnp.full_like(logp, np.log(eps) - np.log(A))
        logp = jnp.logaddexp(l1, l2)
    return logp, h[:, None, :]


if __name__ == "__main__":
    B, T = 16, 8
    input_dim, output_dim = 16, 6
    mlp = (32, 32)
    rnn = 32
    eps = 0.1

    key = jax.random.PRNGKey(0)
    k_par, k_x, k_h = jax.random.split(key, 3)

    params = init_params(k_par, input_dim, output_dim, mlp, rnn)
    x = jax.random.normal(k_x, (B, T, input_dim), jnp.float32)
    h0 = 0.1 * jax.random.normal(k_h, (B, 1, rnn), jnp.float32)

    # train mode (epsilon-greedy log-space mixing)
    logits, h_out = actor_forward(x, h0, params, eps=eps, test_mode=False)
    logits = jax.block_until_ready(logits)
    h_out = jax.block_until_ready(h_out)
    ref_logits, ref_h = actor_ref(x, h0, params, eps, False)
    np.testing.assert_allclose(np.asarray(logits), np.asarray(ref_logits),
                               atol=1e-5, rtol=1e-5)
    np.testing.assert_allclose(np.asarray(h_out), np.asarray(ref_h),
                               atol=1e-5, rtol=1e-5)

    # test mode (plain log-softmax)
    logits_t, h_out_t = actor_forward(x, h0, params, eps=eps, test_mode=True)
    logits_t = jax.block_until_ready(logits_t)
    ref_logits_t, ref_h_t = actor_ref(x, h0, params, eps, True)
    np.testing.assert_allclose(np.asarray(logits_t), np.asarray(ref_logits_t),
                               atol=1e-5, rtol=1e-5)
    np.testing.assert_allclose(np.asarray(h_out_t), np.asarray(ref_h_t),
                               atol=1e-5, rtol=1e-5)

    print("KERNEL_OK")
</pallas_src>

<mosaic_0001>
module attributes {stable_mosaic.version = 11 : i64} {
  func.func @kernel(%arg0: i32, %arg1: memref<8x8x16xf32, #tpu.memory_space<vmem>>, %arg2: memref<8x32xf32, #tpu.memory_space<vmem>>, %arg3: memref<16x32xf32, #tpu.memory_space<vmem>>, %arg4: memref<1x32xf32, #tpu.memory_space<vmem>>, %arg5: memref<32x32xf32, #tpu.memory_space<vmem>>, %arg6: memref<1x32xf32, #tpu.memory_space<vmem>>, %arg7: memref<32x32xf32, #tpu.memory_space<vmem>>, %arg8: memref<32x32xf32, #tpu.memory_space<vmem>>, %arg9: memref<32x32xf32, #tpu.memory_space<vmem>>, %arg10: memref<32x32xf32, #tpu.memory_space<vmem>>, %arg11: memref<32x32xf32, #tpu.memory_space<vmem>>, %arg12: memref<32x32xf32, #tpu.memory_space<vmem>>, %arg13: memref<1x32xf32, #tpu.memory_space<vmem>>, %arg14: memref<1x32xf32, #tpu.memory_space<vmem>>, %arg15: memref<1x32xf32, #tpu.memory_space<vmem>>, %arg16: memref<1x32xf32, #tpu.memory_space<vmem>>, %arg17: memref<32x32xf32, #tpu.memory_space<vmem>>, %arg18: memref<1x32xf32, #tpu.memory_space<vmem>>, %arg19: memref<32x6xf32, #tpu.memory_space<vmem>>, %arg20: memref<1x6xf32, #tpu.memory_space<vmem>>, %arg21: memref<8x8x6xf32, #tpu.memory_space<vmem>>, %arg22: memref<8x32xf32, #tpu.memory_space<vmem>>, %arg23: memref<64x32xf32, #tpu.memory_space<vmem>>, %arg24: memref<64x32xf32, #tpu.memory_space<vmem>>, %arg25: memref<64x32xf32, #tpu.memory_space<vmem>>, %arg26: memref<64x32xf32, #tpu.memory_space<vmem>>) attributes {dimension_semantics = [#tpu.dimension_semantics<parallel>], iteration_bounds = array<i64: 2>, scalar_prefetch = 0 : i64, scratch_operands = 4 : i64, tpu.core_type = #tpu.core_type<tc>, window_params = [{transform_indices = @transform_0, window_bounds = array<i64: 8, 8, 16>}, {transform_indices = @transform_1, window_bounds = array<i64: 8, 32>}, {pipeline_mode = #tpu.pipeline_mode<synchronous>, transform_indices = @transform_2, window_bounds = array<i64: 16, 32>}, {pipeline_mode = #tpu.pipeline_mode<synchronous>, transform_indices = @transform_3, window_bounds = array<i64: 1, 32>}, {pipeline_mode = #tpu.pipeline_mode<synchronous>, transform_indices = @transform_4, window_bounds = array<i64: 32, 32>}, {pipeline_mode = #tpu.pipeline_mode<synchronous>, transform_indices = @transform_5, window_bounds = array<i64: 1, 32>}, {pipeline_mode = #tpu.pipeline_mode<synchronous>, transform_indices = @transform_6, window_bounds = array<i64: 32, 32>}, {pipeline_mode = #tpu.pipeline_mode<synchronous>, transform_indices = @transform_7, window_bounds = array<i64: 32, 32>}, {pipeline_mode = #tpu.pipeline_mode<synchronous>, transform_indices = @transform_8, window_bounds = array<i64: 32, 32>}, {pipeline_mode = #tpu.pipeline_mode<synchronous>, transform_indices = @transform_9, window_bounds = array<i64: 32, 32>}, {pipeline_mode = #tpu.pipeline_mode<synchronous>, transform_indices = @transform_10, window_bounds = array<i64: 32, 32>}, {pipeline_mode = #tpu.pipeline_mode<synchronous>, transform_indices = @transform_11, window_bounds = array<i64: 32, 32>}, {pipeline_mode = #tpu.pipeline_mode<synchronous>, transform_indices = @transform_12, window_bounds = array<i64: 1, 32>}, {pipeline_mode = #tpu.pipeline_mode<synchronous>, transform_indices = @transform_13, window_bounds = array<i64: 1, 32>}, {pipeline_mode = #tpu.pipeline_mode<synchronous>, transform_indices = @transform_14, window_bounds = array<i64: 1, 32>}, {pipeline_mode = #tpu.pipeline_mode<synchronous>, transform_indices = @transform_15, window_bounds = array<i64: 1, 32>}, {pipeline_mode = #tpu.pipeline_mode<synchronous>, transform_indices = @transform_16, window_bounds = array<i64: 32, 32>}, {pipeline_mode = #tpu.pipeline_mode<synchronous>, transform_indices = @transform_17, window_bounds = array<i64: 1, 32>}, {pipeline_mode = #tpu.pipeline_mode<synchronous>, transform_indices = @transform_18, window_bounds = array<i64: 32, 6>}, {pipeline_mode = #tpu.pipeline_mode<synchronous>, transform_indices = @transform_19, window_bounds = array<i64: 1, 6>}, {transform_indices = @transform_20, window_bounds = array<i64: 8, 8, 6>}, {transform_indices = @transform_21, window_bounds = array<i64: 8, 32>}]} {
    %c0 = arith.constant 0 : index
    %c0_0 = arith.constant 0 : index
    %c0_1 = arith.constant 0 : index
    %0 = vector.load %arg1[%c0, %c0_0, %c0_1] : memref<8x8x16xf32, #tpu.memory_space<vmem>>, vector<8x8x16xf32>
    %1 = vector.shape_cast %0 : vector<8x8x16xf32> to vector<64x16xf32>
    %c0_2 = arith.constant 0 : index
    %c0_3 = arith.constant 0 : index
    %2 = vector.load %arg3[%c0_2, %c0_3] : memref<16x32xf32, #tpu.memory_space<vmem>>, vector<16x32xf32>
    %cst = arith.constant dense<0.000000e+00> : vector<64x32xf32>
    %3 = tpu.matmul %1, %2, %cst {dimension_numbers = #tpu.dot_dimension_numbers<[1], [0], [0], [1], [0, 0, 1, 1], [], []>} : vector<64x16xf32>, vector<16x32xf32>, vector<64x32xf32> -> vector<64x32xf32>
    %c0_4 = arith.constant 0 : index
    %c0_5 = arith.constant 0 : index
    %4 = vector.load %arg4[%c0_4, %c0_5] : memref<1x32xf32, #tpu.memory_space<vmem>>, vector<1x32xf32>
    %5 = vector.broadcast %4 : vector<1x32xf32> to vector<64x32xf32>
    %6 = arith.addf %3, %5 : vector<64x32xf32>
    %cst_6 = arith.constant 0.000000e+00 : f32
    %7 = vector.broadcast %cst_6 : f32 to vector<64x32xf32>
    %8 = arith.cmpf ogt, %6, %7 : vector<64x32xf32>
    %cst_7 = arith.constant 0.00999999977 : f32
    %9 = vector.broadcast %cst_7 : f32 to vector<64x32xf32>
    %10 = arith.mulf %9, %6 : vector<64x32xf32>
    %11 = arith.select %8, %6, %10 : vector<64x32xi1>, vector<64x32xf32>
    %c0_8 = arith.constant 0 : index
    %c0_9 = arith.constant 0 : index
    %12 = vector.load %arg5[%c0_8, %c0_9] : memref<32x32xf32, #tpu.memory_space<vmem>>, vector<32x32xf32>
    %cst_10 = arith.constant dense<0.000000e+00> : vector<64x32xf32>
    %13 = tpu.matmul %11, %12, %cst_10 {dimension_numbers = #tpu.dot_dimension_numbers<[1], [0], [0], [1], [0, 0, 1, 1], [], []>} : vector<64x32xf32>, vector<32x32xf32>, vector<64x32xf32> -> vector<64x32xf32>
    %c0_11 = arith.constant 0 : index
    %c0_12 = arith.constant 0 : index
    %14 = vector.load %arg6[%c0_11, %c0_12] : memref<1x32xf32, #tpu.memory_space<vmem>>, vector<1x32xf32>
    %15 = vector.broadcast %14 : vector<1x32xf32> to vector<64x32xf32>
    %16 = arith.addf %13, %15 : vector<64x32xf32>
    %cst_13 = arith.constant 0.000000e+00 : f32
    %17 = vector.broadcast %cst_13 : f32 to vector<64x32xf32>
    %18 = arith.cmpf ogt, %16, %17 : vector<64x32xf32>
    %cst_14 = arith.constant 0.00999999977 : f32
    %19 = vector.broadcast %cst_14 : f32 to vector<64x32xf32>
    %20 = arith.mulf %19, %16 : vector<64x32xf32>
    %21 = arith.select %18, %16, %20 : vector<64x32xi1>, vector<64x32xf32>
    %c0_15 = arith.constant 0 : index
    %c0_16 = arith.constant 0 : index
    %22 = vector.load %arg7[%c0_15, %c0_16] : memref<32x32xf32, #tpu.memory_space<vmem>>, vector<32x32xf32>
    %cst_17 = arith.constant dense<0.000000e+00> : vector<64x32xf32>
    %23 = tpu.matmul %21, %22, %cst_17 {dimension_numbers = #tpu.dot_dimension_numbers<[1], [0], [0], [1], [0, 0, 1, 1], [], []>} : vector<64x32xf32>, vector<32x32xf32>, vector<64x32xf32> -> vector<64x32xf32>
    %c0_18 = arith.constant 0 : index
    %c0_19 = arith.constant 0 : index
    %24 = vector.load %arg13[%c0_18, %c0_19] : memref<1x32xf32, #tpu.memory_space<vmem>>, vector<1x32xf32>
    %25 = vector.broadcast %24 : vector<1x32xf32> to vector<64x32xf32>
    %26 = arith.addf %23, %25 : vector<64x32xf32>
    %c0_20 = arith.constant 0 : index
    %c0_21 = arith.constant 0 : index
    %27 = vector.load %arg23[%c0_20, %c0_21] : memref<64x32xf32, #tpu.memory_space<vmem>>, vector<64x32xf32>
    tpu.vector_store %arg23[%c0_20, %c0_21], %26 {strides = array<i32>} : memref<64x32xf32, #tpu.memory_space<vmem>>, vector<64x32xf32>,
    %c0_22 = arith.constant 0 : index
    %c0_23 = arith.constant 0 : index
    %28 = vector.load %arg8[%c0_22, %c0_23] : memref<32x32xf32, #tpu.memory_space<vmem>>, vector<32x32xf32>
    %cst_24 = arith.constant dense<0.000000e+00> : vector<64x32xf32>
    %29 = tpu.matmul %21, %28, %cst_24 {dimension_numbers = #tpu.dot_dimension_numbers<[1], [0], [0], [1], [0, 0, 1, 1], [], []>} : vector<64x32xf32>, vector<32x32xf32>, vector<64x32xf32> -> vector<64x32xf32>
    %c0_25 = arith.constant 0 : index
    %c0_26 = arith.constant 0 : index
    %30 = vector.load %arg14[%c0_25, %c0_26] : memref<1x32xf32, #tpu.memory_space<vmem>>, vector<1x32xf32>
    %31 = vector.broadcast %30 : vector<1x32xf32> to vector<64x32xf32>
    %32 = arith.addf %29, %31 : vector<64x32xf32>
    %c0_27 = arith.constant 0 : index
    %c0_28 = arith.constant 0 : index
    %33 = vector.load %arg24[%c0_27, %c0_28] : memref<64x32xf32, #tpu.memory_space<vmem>>, vector<64x32xf32>
    tpu.vector_store %arg24[%c0_27, %c0_28], %32 {strides = array<i32>} : memref<64x32xf32, #tpu.memory_space<vmem>>, vector<64x32xf32>,
    %c0_29 = arith.constant 0 : index
    %c0_30 = arith.constant 0 : index
    %34 = vector.load %arg9[%c0_29, %c0_30] : memref<32x32xf32, #tpu.memory_space<vmem>>, vector<32x32xf32>
    %cst_31 = arith.constant dense<0.000000e+00> : vector<64x32xf32>
    %35 = tpu.matmul %21, %34, %cst_31 {dimension_numbers = #tpu.dot_dimension_numbers<[1], [0], [0], [1], [0, 0, 1, 1], [], []>} : vector<64x32xf32>, vector<32x32xf32>, vector<64x32xf32> -> vector<64x32xf32>
    %c0_32 = arith.constant 0 : index
    %c0_33 = arith.constant 0 : index
    %36 = vector.load %arg15[%c0_32, %c0_33] : memref<1x32xf32, #tpu.memory_space<vmem>>, vector<1x32xf32>
    %37 = vector.broadcast %36 : vector<1x32xf32> to vector<64x32xf32>
    %38 = arith.addf %35, %37 : vector<64x32xf32>
    %c0_34 = arith.constant 0 : index
    %c0_35 = arith.constant 0 : index
    %39 = vector.load %arg25[%c0_34, %c0_35] : memref<64x32xf32, #tpu.memory_space<vmem>>, vector<64x32xf32>
    tpu.vector_store %arg25[%c0_34, %c0_35], %38 {strides = array<i32>} : memref<64x32xf32, #tpu.memory_space<vmem>>, vector<64x32xf32>,
    %c0_36 = arith.constant 0 : index
    %c0_37 = arith.constant 0 : index
    %40 = vector.load %arg10[%c0_36, %c0_37] : memref<32x32xf32, #tpu.memory_space<vmem>>, vector<32x32xf32>
    %c0_38 = arith.constant 0 : index
    %c0_39 = arith.constant 0 : index
    %41 = vector.load %arg11[%c0_38, %c0_39] : memref<32x32xf32, #tpu.memory_space<vmem>>, vector<32x32xf32>
    %c0_40 = arith.constant 0 : index
    %c0_41 = arith.constant 0 : index
    %42 = vector.load %arg12[%c0_40, %c0_41] : memref<32x32xf32, #tpu.memory_space<vmem>>, vector<32x32xf32>
    %c0_42 = arith.constant 0 : index
    %c0_43 = arith.constant 0 : index
    %43 = vector.load %arg16[%c0_42, %c0_43] : memref<1x32xf32, #tpu.memory_space<vmem>>, vector<1x32xf32>
    %c0_44 = arith.constant 0 : index
    %c0_45 = arith.constant 0 : index
    %44 = vector.load %arg2[%c0_44, %c0_45] : memref<8x32xf32, #tpu.memory_space<vmem>>, vector<8x32xf32>
    %c0_46 = arith.constant 0 : index
    %c0_47 = arith.constant 0 : index
    %45 = vector.load %arg23[%c0_46, %c0_47] : memref<64x32xf32, #tpu.memory_space<vmem>>, vector<8x32xf32>
    %cst_48 = arith.constant dense<0.000000e+00> : vector<8x32xf32>
    %46 = tpu.matmul %44, %40, %cst_48 {dimension_numbers = #tpu.dot_dimension_numbers<[1], [0], [0], [1], [0, 0, 1, 1], [], []>} : vector<8x32xf32>, vector<32x32xf32>, vector<8x32xf32> -> vector<8x32xf32>
    %47 = arith.addf %45, %46 : vector<8x32xf32>
    %cst_49 = arith.constant 0.000000e+00 : f32
    %48 = vector.broadcast %cst_49 : f32 to vector<8x32xf32>
    %49 = arith.subf %48, %47 : vector<8x32xf32>
    %50 = math.exp %49 : vector<8x32xf32>
    %cst_50 = arith.constant 1.000000e+00 : f32
    %51 = vector.broadcast %cst_50 : f32 to vector<8x32xf32>
    %52 = arith.addf %51, %50 : vector<8x32xf32>
    %cst_51 = arith.constant 1.000000e+00 : f32
    %53 = vector.broadcast %cst_51 : f32 to vector<8x32xf32>
    %54 = arith.divf %53, %52 : vector<8x32xf32>
    %c0_52 = arith.constant 0 : index
    %c0_53 = arith.constant 0 : index
    %55 = vector.load %arg24[%c0_52, %c0_53] : memref<64x32xf32, #tpu.memory_space<vmem>>, vector<8x32xf32>
    %cst_54 = arith.constant dense<0.000000e+00> : vector<8x32xf32>
    %56 = tpu.matmul %44, %41, %cst_54 {dimension_numbers = #tpu.dot_dimension_numbers<[1], [0], [0], [1], [0, 0, 1, 1], [], []>} : vector<8x32xf32>, vector<32x32xf32>, vector<8x32xf32> -> vector<8x32xf32>
    %57 = arith.addf %55, %56 : vector<8x32xf32>
    %cst_55 = arith.constant 0.000000e+00 : f32
    %58 = vector.broadcast %cst_55 : f32 to vector<8x32xf32>
    %59 = arith.subf %58, %57 : vector<8x32xf32>
    %60 = math.exp %59 : vector<8x32xf32>
    %cst_56 = arith.constant 1.000000e+00 : f32
    %61 = vector.broadcast %cst_56 : f32 to vector<8x32xf32>
    %62 = arith.addf %61, %60 : vector<8x32xf32>
    %cst_57 = arith.constant 1.000000e+00 : f32
    %63 = vector.broadcast %cst_57 : f32 to vector<8x32xf32>
    %64 = arith.divf %63, %62 : vector<8x32xf32>
    %c0_58 = arith.constant 0 : index
    %c0_59 = arith.constant 0 : index
    %65 = vector.load %arg25[%c0_58, %c0_59] : memref<64x32xf32, #tpu.memory_space<vmem>>, vector<8x32xf32>
    %cst_60 = arith.constant dense<0.000000e+00> : vector<8x32xf32>
    %66 = tpu.matmul %44, %42, %cst_60 {dimension_numbers = #tpu.dot_dimension_numbers<[1], [0], [0], [1], [0, 0, 1, 1], [], []>} : vector<8x32xf32>, vector<32x32xf32>, vector<8x32xf32> -> vector<8x32xf32>
    %67 = vector.broadcast %43 : vector<1x32xf32> to vector<8x32xf32>
    %68 = arith.addf %66, %67 : vector<8x32xf32>
    %69 = arith.mulf %54, %68 : vector<8x32xf32>
    %70 = arith.addf %65, %69 : vector<8x32xf32>
    %71 = math.tanh %70 : vector<8x32xf32>
    %cst_61 = arith.constant 1.000000e+00 : f32
    %72 = vector.broadcast %cst_61 : f32 to vector<8x32xf32>
    %73 = arith.subf %72, %64 : vector<8x32xf32>
    %74 = arith.mulf %73, %71 : vector<8x32xf32>
    %75 = arith.mulf %64, %44 : vector<8x32xf32>
    %76 = arith.addf %74, %75 : vector<8x32xf32>
    %c0_62 = arith.constant 0 : index
    %c0_63 = arith.constant 0 : index
    %77 = vector.load %arg26[%c0_62, %c0_63] : memref<64x32xf32, #tpu.memory_space<vmem>>, vector<8x32xf32>
    tpu.vector_store %arg26[%c0_62, %c0_63], %76 {strides = array<i32>} : memref<64x32xf32, #tpu.memory_space<vmem>>, vector<8x32xf32>,
    %c8 = arith.constant 8 : index
    %c0_64 = arith.constant 0 : index
    %78 = vector.load %arg23[%c8, %c0_64] : memref<64x32xf32, #tpu.memory_space<vmem>>, vector<8x32xf32>
    %cst_65 = arith.constant dense<0.000000e+00> : vector<8x32xf32>
    %79 = tpu.matmul %76, %40, %cst_65 {dimension_numbers = #tpu.dot_dimension_numbers<[1], [0], [0], [1], [0, 0, 1, 1], [], []>} : vector<8x32xf32>, vector<32x32xf32>, vector<8x32xf32> -> vector<8x32xf32>
    %80 = arith.addf %78, %79 : vector<8x32xf32>
    %cst_66 = arith.constant 0.000000e+00 : f32
    %81 = vector.broadcast %cst_66 : f32 to vector<8x32xf32>
    %82 = arith.subf %81, %80 : vector<8x32xf32>
    %83 = math.exp %82 : vector<8x32xf32>
    %cst_67 = arith.constant 1.000000e+00 : f32
    %84 = vector.broadcast %cst_67 : f32 to vector<8x32xf32>
    %85 = arith.addf %84, %83 : vector<8x32xf32>
    %cst_68 = arith.constant 1.000000e+00 : f32
    %86 = vector.broadcast %cst_68 : f32 to vector<8x32xf32>
    %87 = arith.divf %86, %85 : vector<8x32xf32>
    %c8_69 = arith.constant 8 : index
    %c0_70 = arith.constant 0 : index
    %88 = vector.load %arg24[%c8_69, %c0_70] : memref<64x32xf32, #tpu.memory_space<vmem>>, vector<8x32xf32>
    %cst_71 = arith.constant dense<0.000000e+00> : vector<8x32xf32>
    %89 = tpu.matmul %76, %41, %cst_71 {dimension_numbers = #tpu.dot_dimension_numbers<[1], [0], [0], [1], [0, 0, 1, 1], [], []>} : vector<8x32xf32>, vector<32x32xf32>, vector<8x32xf32> -> vector<8x32xf32>
    %90 = arith.addf %88, %89 : vector<8x32xf32>
    %cst_72 = arith.constant 0.000000e+00 : f32
    %91 = vector.broadcast %cst_72 : f32 to vector<8x32xf32>
    %92 = arith.subf %91, %90 : vector<8x32xf32>
    %93 = math.exp %92 : vector<8x32xf32>
    %cst_73 = arith.constant 1.000000e+00 : f32
    %94 = vector.broadcast %cst_73 : f32 to vector<8x32xf32>
    %95 = arith.addf %94, %93 : vector<8x32xf32>
    %cst_74 = arith.constant 1.000000e+00 : f32
    %96 = vector.broadcast %cst_74 : f32 to vector<8x32xf32>
    %97 = arith.divf %96, %95 : vector<8x32xf32>
    %c8_75 = arith.constant 8 : index
    %c0_76 = arith.constant 0 : index
    %98 = vector.load %arg25[%c8_75, %c0_76] : memref<64x32xf32, #tpu.memory_space<vmem>>, vector<8x32xf32>
    %cst_77 = arith.constant dense<0.000000e+00> : vector<8x32xf32>
    %99 = tpu.matmul %76, %42, %cst_77 {dimension_numbers = #tpu.dot_dimension_numbers<[1], [0], [0], [1], [0, 0, 1, 1], [], []>} : vector<8x32xf32>, vector<32x32xf32>, vector<8x32xf32> -> vector<8x32xf32>
    %100 = vector.broadcast %43 : vector<1x32xf32> to vector<8x32xf32>
    %101 = arith.addf %99, %100 : vector<8x32xf32>
    %102 = arith.mulf %87, %101 : vector<8x32xf32>
    %103 = arith.addf %98, %102 : vector<8x32xf32>
    %104 = math.tanh %103 : vector<8x32xf32>
    %cst_78 = arith.constant 1.000000e+00 : f32
    %105 = vector.broadcast %cst_78 : f32 to vector<8x32xf32>
    %106 = arith.subf %105, %97 : vector<8x32xf32>
    %107 = arith.mulf %106, %104 : vector<8x32xf32>
    %108 = arith.mulf %97, %76 : vector<8x32xf32>
    %109 = arith.addf %107, %108 : vector<8x32xf32>
    %c8_79 = arith.constant 8 : index
    %c0_80 = arith.constant 0 : index
    %110 = vector.load %arg26[%c8_79, %c0_80] : memref<64x32xf32, #tpu.memory_space<vmem>>, vector<8x32xf32>
    tpu.vector_store %arg26[%c8_79, %c0_80], %109 {strides = array<i32>} : memref<64x32xf32, #tpu.memory_space<vmem>>, vector<8x32xf32>,
    %c16 = arith.constant 16 : index
    %c0_81 = arith.constant 0 : index
    %111 = vector.load %arg23[%c16, %c0_81] : memref<64x32xf32, #tpu.memory_space<vmem>>, vector<8x32xf32>
    %cst_82 = arith.constant dense<0.000000e+00> : vector<8x32xf32>
    %112 = tpu.matmul %109, %40, %cst_82 {dimension_numbers = #tpu.dot_dimension_numbers<[1], [0], [0], [1], [0, 0, 1, 1], [], []>} : vector<8x32xf32>, vector<32x32xf32>, vector<8x32xf32> -> vector<8x32xf32>
    %113 = arith.addf %111, %112 : vector<8x32xf32>
    %cst_83 = arith.constant 0.000000e+00 : f32
    %114 = vector.broadcast %cst_83 : f32 to vector<8x32xf32>
    %115 = arith.subf %114, %113 : vector<8x32xf32>
    %116 = math.exp %115 : vector<8x32xf32>
    %cst_84 = arith.constant 1.000000e+00 : f32
    %117 = vector.broadcast %cst_84 : f32 to vector<8x32xf32>
    %118 = arith.addf %117, %116 : vector<8x32xf32>
    %cst_85 = arith.constant 1.000000e+00 : f32
    %119 = vector.broadcast %cst_85 : f32 to vector<8x32xf32>
    %120 = arith.divf %119, %118 : vector<8x32xf32>
    %c16_86 = arith.constant 16 : index
    %c0_87 = arith.constant 0 : index
    %121 = vector.load %arg24[%c16_86, %c0_87] : memref<64x32xf32, #tpu.memory_space<vmem>>, vector<8x32xf32>
    %cst_88 = arith.constant dense<0.000000e+00> : vector<8x32xf32>
    %122 = tpu.matmul %109, %41, %cst_88 {dimension_numbers = #tpu.dot_dimension_numbers<[1], [0], [0], [1], [0, 0, 1, 1], [], []>} : vector<8x32xf32>, vector<32x32xf32>, vector<8x32xf32> -> vector<8x32xf32>
    %123 = arith.addf %121, %122 : vector<8x32xf32>
    %cst_89 = arith.constant 0.000000e+00 : f32
    %124 = vector.broadcast %cst_89 : f32 to vector<8x32xf32>
    %125 = arith.subf %124, %123 : vector<8x32xf32>
    %126 = math.exp %125 : vector<8x32xf32>
    %cst_90 = arith.constant 1.000000e+00 : f32
    %127 = vector.broadcast %cst_90 : f32 to vector<8x32xf32>
    %128 = arith.addf %127, %126 : vector<8x32xf32>
    %cst_91 = arith.constant 1.000000e+00 : f32
    %129 = vector.broadcast %cst_91 : f32 to vector<8x32xf32>
    %130 = arith.divf %129, %128 : vector<8x32xf32>
    %c16_92 = arith.constant 16 : index
    %c0_93 = arith.constant 0 : index
    %131 = vector.load %arg25[%c16_92, %c0_93] : memref<64x32xf32, #tpu.memory_space<vmem>>, vector<8x32xf32>
    %cst_94 = arith.constant dense<0.000000e+00> : vector<8x32xf32>
    %132 = tpu.matmul %109, %42, %cst_94 {dimension_numbers = #tpu.dot_dimension_numbers<[1], [0], [0], [1], [0, 0, 1, 1], [], []>} : vector<8x32xf32>, vector<32x32xf32>, vector<8x32xf32> -> vector<8x32xf32>
    %133 = vector.broadcast %43 : vector<1x32xf32> to vector<8x32xf32>
    %134 = arith.addf %132, %133 : vector<8x32xf32>
    %135 = arith.mulf %120, %134 : vector<8x32xf32>
    %136 = arith.addf %131, %135 : vector<8x32xf32>
    %137 = math.tanh %136 : vector<8x32xf32>
    %cst_95 = arith.constant 1.000000e+00 : f32
    %138 = vector.broadcast %cst_95 : f32 to vector<8x32xf32>
    %139 = arith.subf %138, %130 : vector<8x32xf32>
    %140 = arith.mulf %139, %137 : vector<8x32xf32>
    %141 = arith.mulf %130, %109 : vector<8x32xf32>
    %142 = arith.addf %140, %141 : vector<8x32xf32>
    %c16_96 = arith.constant 16 : index
    %c0_97 = arith.constant 0 : index
    %143 = vector.load %arg26[%c16_96, %c0_97] : memref<64x32xf32, #tpu.memory_space<vmem>>, vector<8x32xf32>
    tpu.vector_store %arg26[%c16_96, %c0_97], %142 {strides = array<i32>} : memref<64x32xf32, #tpu.memory_space<vmem>>, vector<8x32xf32>,
    %c24 = arith.constant 24 : index
    %c0_98 = arith.constant 0 : index
    %144 = vector.load %arg23[%c24, %c0_98] : memref<64x32xf32, #tpu.memory_space<vmem>>, vector<8x32xf32>
    %cst_99 = arith.constant dense<0.000000e+00> : vector<8x32xf32>
    %145 = tpu.matmul %142, %40, %cst_99 {dimension_numbers = #tpu.dot_dimension_numbers<[1], [0], [0], [1], [0, 0, 1, 1], [], []>} : vector<8x32xf32>, vector<32x32xf32>, vector<8x32xf32> -> vector<8x32xf32>
    %146 = arith.addf %144, %145 : vector<8x32xf32>
    %cst_100 = arith.constant 0.000000e+00 : f32
    %147 = vector.broadcast %cst_100 : f32 to vector<8x32xf32>
    %148 = arith.subf %147, %146 : vector<8x32xf32>
    %149 = math.exp %148 : vector<8x32xf32>
    %cst_101 = arith.constant 1.000000e+00 : f32
    %150 = vector.broadcast %cst_101 : f32 to vector<8x32xf32>
    %151 = arith.addf %150, %149 : vector<8x32xf32>
    %cst_102 = arith.constant 1.000000e+00 : f32
    %152 = vector.broadcast %cst_102 : f32 to vector<8x32xf32>
    %153 = arith.divf %152, %151 : vector<8x32xf32>
    %c24_103 = arith.constant 24 : index
    %c0_104 = arith.constant 0 : index
    %154 = vector.load %arg24[%c24_103, %c0_104] : memref<64x32xf32, #tpu.memory_space<vmem>>, vector<8x32xf32>
    %cst_105 = arith.constant dense<0.000000e+00> : vector<8x32xf32>
    %155 = tpu.matmul %142, %41, %cst_105 {dimension_numbers = #tpu.dot_dimension_numbers<[1], [0], [0], [1], [0, 0, 1, 1], [], []>} : vector<8x32xf32>, vector<32x32xf32>, vector<8x32xf32> -> vector<8x32xf32>
    %156 = arith.addf %154, %155 : vector<8x32xf32>
    %cst_106 = arith.constant 0.000000e+00 : f32
    %157 = vector.broadcast %cst_106 : f32 to vector<8x32xf32>
    %158 = arith.subf %157, %156 : vector<8x32xf32>
    %159 = math.exp %158 : vector<8x32xf32>
    %cst_107 = arith.constant 1.000000e+00 : f32
    %160 = vector.broadcast %cst_107 : f32 to vector<8x32xf32>
    %161 = arith.addf %160, %159 : vector<8x32xf32>
    %cst_108 = arith.constant 1.000000e+00 : f32
    %162 = vector.broadcast %cst_108 : f32 to vector<8x32xf32>
    %163 = arith.divf %162, %161 : vector<8x32xf32>
    %c24_109 = arith.constant 24 : index
    %c0_110 = arith.constant 0 : index
    %164 = vector.load %arg25[%c24_109, %c0_110] : memref<64x32xf32, #tpu.memory_space<vmem>>, vector<8x32xf32>
    %cst_111 = arith.constant dense<0.000000e+00> : vector<8x32xf32>
    %165 = tpu.matmul %142, %42, %cst_111 {dimension_numbers = #tpu.dot_dimension_numbers<[1], [0], [0], [1], [0, 0, 1, 1], [], []>} : vector<8x32xf32>, vector<32x32xf32>, vector<8x32xf32> -> vector<8x32xf32>
    %166 = vector.broadcast %43 : vector<1x32xf32> to vector<8x32xf32>
    %167 = arith.addf %165, %166 : vector<8x32xf32>
    %168 = arith.mulf %153, %167 : vector<8x32xf32>
    %169 = arith.addf %164, %168 : vector<8x32xf32>
    %170 = math.tanh %169 : vector<8x32xf32>
    %cst_112 = arith.constant 1.000000e+00 : f32
    %171 = vector.broadcast %cst_112 : f32 to vector<8x32xf32>
    %172 = arith.subf %171, %163 : vector<8x32xf32>
    %173 = arith.mulf %172, %170 : vector<8x32xf32>
    %174 = arith.mulf %163, %142 : vector<8x32xf32>
    %175 = arith.addf %173, %174 : vector<8x32xf32>
    %c24_113 = arith.constant 24 : index
    %c0_114 = arith.constant 0 : index
    %176 = vector.load %arg26[%c24_113, %c0_114] : memref<64x32xf32, #tpu.memory_space<vmem>>, vector<8x32xf32>
    tpu.vector_store %arg26[%c24_113, %c0_114], %175 {strides = array<i32>} : memref<64x32xf32, #tpu.memory_space<vmem>>, vector<8x32xf32>,
    %c32 = arith.constant 32 : index
    %c0_115 = arith.constant 0 : index
    %177 = vector.load %arg23[%c32, %c0_115] : memref<64x32xf32, #tpu.memory_space<vmem>>, vector<8x32xf32>
    %cst_116 = arith.constant dense<0.000000e+00> : vector<8x32xf32>
    %178 = tpu.matmul %175, %40, %cst_116 {dimension_numbers = #tpu.dot_dimension_numbers<[1], [0], [0], [1], [0, 0, 1, 1], [], []>} : vector<8x32xf32>, vector<32x32xf32>, vector<8x32xf32> -> vector<8x32xf32>
    %179 = arith.addf %177, %178 : vector<8x32xf32>
    %cst_117 = arith.constant 0.000000e+00 : f32
    %180 = vector.broadcast %cst_117 : f32 to vector<8x32xf32>
    %181 = arith.subf %180, %179 : vector<8x32xf32>
    %182 = math.exp %181 : vector<8x32xf32>
    %cst_118 = arith.constant 1.000000e+00 : f32
    %183 = vector.broadcast %cst_118 : f32 to vector<8x32xf32>
    %184 = arith.addf %183, %182 : vector<8x32xf32>
    %cst_119 = arith.constant 1.000000e+00 : f32
    %185 = vector.broadcast %cst_119 : f32 to vector<8x32xf32>
    %186 = arith.divf %185, %184 : vector<8x32xf32>
    %c32_120 = arith.constant 32 : index
    %c0_121 = arith.constant 0 : index
    %187 = vector.load %arg24[%c32_120, %c0_121] : memref<64x32xf32, #tpu.memory_space<vmem>>, vector<8x32xf32>
    %cst_122 = arith.constant dense<0.000000e+00> : vector<8x32xf32>
    %188 = tpu.matmul %175, %41, %cst_122 {dimension_numbers = #tpu.dot_dimension_numbers<[1], [0], [0], [1], [0, 0, 1, 1], [], []>} : vector<8x32xf32>, vector<32x32xf32>, vector<8x32xf32> -> vector<8x32xf32>
    %189 = arith.addf %187, %188 : vector<8x32xf32>
    %cst_123 = arith.constant 0.000000e+00 : f32
    %190 = vector.broadcast %cst_123 : f32 to vector<8x32xf32>
    %191 = arith.subf %190, %189 : vector<8x32xf32>
    %192 = math.exp %191 : vector<8x32xf32>
    %cst_124 = arith.constant 1.000000e+00 : f32
    %193 = vector.broadcast %cst_124 : f32 to vector<8x32xf32>
    %194 = arith.addf %193, %192 : vector<8x32xf32>
    %cst_125 = arith.constant 1.000000e+00 : f32
    %195 = vector.broadcast %cst_125 : f32 to vector<8x32xf32>
    %196 = arith.divf %195, %194 : vector<8x32xf32>
    %c32_126 = arith.constant 32 : index
    %c0_127 = arith.constant 0 : index
    %197 = vector.load %arg25[%c32_126, %c0_127] : memref<64x32xf32, #tpu.memory_space<vmem>>, vector<8x32xf32>
    %cst_128 = arith.constant dense<0.000000e+00> : vector<8x32xf32>
    %198 = tpu.matmul %175, %42, %cst_128 {dimension_numbers = #tpu.dot_dimension_numbers<[1], [0], [0], [1], [0, 0, 1, 1], [], []>} : vector<8x32xf32>, vector<32x32xf32>, vector<8x32xf32> -> vector<8x32xf32>
    %199 = vector.broadcast %43 : vector<1x32xf32> to vector<8x32xf32>
    %200 = arith.addf %198, %199 : vector<8x32xf32>
    %201 = arith.mulf %186, %200 : vector<8x32xf32>
    %202 = arith.addf %197, %201 : vector<8x32xf32>
    %203 = math.tanh %202 : vector<8x32xf32>
    %cst_129 = arith.constant 1.000000e+00 : f32
    %204 = vector.broadcast %cst_129 : f32 to vector<8x32xf32>
    %205 = arith.subf %204, %196 : vector<8x32xf32>
    %206 = arith.mulf %205, %203 : vector<8x32xf32>
    %207 = arith.mulf %196, %175 : vector<8x32xf32>
    %208 = arith.addf %206, %207 : vector<8x32xf32>
    %c32_130 = arith.constant 32 : index
    %c0_131 = arith.constant 0 : index
    %209 = vector.load %arg26[%c32_130, %c0_131] : memref<64x32xf32, #tpu.memory_space<vmem>>, vector<8x32xf32>
    tpu.vector_store %arg26[%c32_130, %c0_131], %208 {strides = array<i32>} : memref<64x32xf32, #tpu.memory_space<vmem>>, vector<8x32xf32>,
    %c40 = arith.constant 40 : index
    %c0_132 = arith.constant 0 : index
    %210 = vector.load %arg23[%c40, %c0_132] : memref<64x32xf32, #tpu.memory_space<vmem>>, vector<8x32xf32>
    %cst_133 = arith.constant dense<0.000000e+00> : vector<8x32xf32>
    %211 = tpu.matmul %208, %40, %cst_133 {dimension_numbers = #tpu.dot_dimension_numbers<[1], [0], [0], [1], [0, 0, 1, 1], [], []>} : vector<8x32xf32>, vector<32x32xf32>, vector<8x32xf32> -> vector<8x32xf32>
    %212 = arith.addf %210, %211 : vector<8x32xf32>
    %cst_134 = arith.constant 0.000000e+00 : f32
    %213 = vector.broadcast %cst_134 : f32 to vector<8x32xf32>
    %214 = arith.subf %213, %212 : vector<8x32xf32>
    %215 = math.exp %214 : vector<8x32xf32>
    %cst_135 = arith.constant 1.000000e+00 : f32
    %216 = vector.broadcast %cst_135 : f32 to vector<8x32xf32>
    %217 = arith.addf %216, %215 : vector<8x32xf32>
    %cst_136 = arith.constant 1.000000e+00 : f32
    %218 = vector.broadcast %cst_136 : f32 to vector<8x32xf32>
    %219 = arith.divf %218, %217 : vector<8x32xf32>
    %c40_137 = arith.constant 40 : index
    %c0_138 = arith.constant 0 : index
    %220 = vector.load %arg24[%c40_137, %c0_138] : memref<64x32xf32, #tpu.memory_space<vmem>>, vector<8x32xf32>
    %cst_139 = arith.constant dense<0.000000e+00> : vector<8x32xf32>
    %221 = tpu.matmul %208, %41, %cst_139 {dimension_numbers = #tpu.dot_dimension_numbers<[1], [0], [0], [1], [0, 0, 1, 1], [], []>} : vector<8x32xf32>, vector<32x32xf32>, vector<8x32xf32> -> vector<8x32xf32>
    %222 = arith.addf %220, %221 : vector<8x32xf32>
    %cst_140 = arith.constant 0.000000e+00 : f32
    %223 = vector.broadcast %cst_140 : f32 to vector<8x32xf32>
    %224 = arith.subf %223, %222 : vector<8x32xf32>
    %225 = math.exp %224 : vector<8x32xf32>
    %cst_141 = arith.constant 1.000000e+00 : f32
    %226 = vector.broadcast %cst_141 : f32 to vector<8x32xf32>
    %227 = arith.addf %226, %225 : vector<8x32xf32>
    %cst_142 = arith.constant 1.000000e+00 : f32
    %228 = vector.broadcast %cst_142 : f32 to vector<8x32xf32>
    %229 = arith.divf %228, %227 : vector<8x32xf32>
    %c40_143 = arith.constant 40 : index
    %c0_144 = arith.constant 0 : index
    %230 = vector.load %arg25[%c40_143, %c0_144] : memref<64x32xf32, #tpu.memory_space<vmem>>, vector<8x32xf32>
    %cst_145 = arith.constant dense<0.000000e+00> : vector<8x32xf32>
    %231 = tpu.matmul %208, %42, %cst_145 {dimension_numbers = #tpu.dot_dimension_numbers<[1], [0], [0], [1], [0, 0, 1, 1], [], []>} : vector<8x32xf32>, vector<32x32xf32>, vector<8x32xf32> -> vector<8x32xf32>
    %232 = vector.broadcast %43 : vector<1x32xf32> to vector<8x32xf32>
    %233 = arith.addf %231, %232 : vector<8x32xf32>
    %234 = arith.mulf %219, %233 : vector<8x32xf32>
    %235 = arith.addf %230, %234 : vector<8x32xf32>
    %236 = math.tanh %235 : vector<8x32xf32>
    %cst_146 = arith.constant 1.000000e+00 : f32
    %237 = vector.broadcast %cst_146 : f32 to vector<8x32xf32>
    %238 = arith.subf %237, %229 : vector<8x32xf32>
    %239 = arith.mulf %238, %236 : vector<8x32xf32>
    %240 = arith.mulf %229, %208 : vector<8x32xf32>
    %241 = arith.addf %239, %240 : vector<8x32xf32>
    %c40_147 = arith.constant 40 : index
    %c0_148 = arith.constant 0 : index
    %242 = vector.load %arg26[%c40_147, %c0_148] : memref<64x32xf32, #tpu.memory_space<vmem>>, vector<8x32xf32>
    tpu.vector_store %arg26[%c40_147, %c0_148], %241 {strides = array<i32>} : memref<64x32xf32, #tpu.memory_space<vmem>>, vector<8x32xf32>,
    %c48 = arith.constant 48 : index
    %c0_149 = arith.constant 0 : index
    %243 = vector.load %arg23[%c48, %c0_149] : memref<64x32xf32, #tpu.memory_space<vmem>>, vector<8x32xf32>
    %cst_150 = arith.constant dense<0.000000e+00> : vector<8x32xf32>
    %244 = tpu.matmul %241, %40, %cst_150 {dimension_numbers = #tpu.dot_dimension_numbers<[1], [0], [0], [1], [0, 0, 1, 1], [], []>} : vector<8x32xf32>, vector<32x32xf32>, vector<8x32xf32> -> vector<8x32xf32>
    %245 = arith.addf %243, %244 : vector<8x32xf32>
    %cst_151 = arith.constant 0.000000e+00 : f32
    %246 = vector.broadcast %cst_151 : f32 to vector<8x32xf32>
    %247 = arith.subf %246, %245 : vector<8x32xf32>
    %248 = math.exp %247 : vector<8x32xf32>
    %cst_152 = arith.constant 1.000000e+00 : f32
    %249 = vector.broadcast %cst_152 : f32 to vector<8x32xf32>
    %250 = arith.addf %249, %248 : vector<8x32xf32>
    %cst_153 = arith.constant 1.000000e+00 : f32
    %251 = vector.broadcast %cst_153 : f32 to vector<8x32xf32>
    %252 = arith.divf %251, %250 : vector<8x32xf32>
    %c48_154 = arith.constant 48 : index
    %c0_155 = arith.constant 0 : index
    %253 = vector.load %arg24[%c48_154, %c0_155] : memref<64x32xf32, #tpu.memory_space<vmem>>, vector<8x32xf32>
    %cst_156 = arith.constant dense<0.000000e+00> : vector<8x32xf32>
    %254 = tpu.matmul %241, %41, %cst_156 {dimension_numbers = #tpu.dot_dimension_numbers<[1], [0], [0], [1], [0, 0, 1, 1], [], []>} : vector<8x32xf32>, vector<32x32xf32>, vector<8x32xf32> -> vector<8x32xf32>
    %255 = arith.addf %253, %254 : vector<8x32xf32>
    %cst_157 = arith.constant 0.000000e+00 : f32
    %256 = vector.broadcast %cst_157 : f32 to vector<8x32xf32>
    %257 = arith.subf %256, %255 : vector<8x32xf32>
    %258 = math.exp %257 : vector<8x32xf32>
    %cst_158 = arith.constant 1.000000e+00 : f32
    %259 = vector.broadcast %cst_158 : f32 to vector<8x32xf32>
    %260 = arith.addf %259, %258 : vector<8x32xf32>
    %cst_159 = arith.constant 1.000000e+00 : f32
    %261 = vector.broadcast %cst_159 : f32 to vector<8x32xf32>
    %262 = arith.divf %261, %260 : vector<8x32xf32>
    %c48_160 = arith.constant 48 : index
    %c0_161 = arith.constant 0 : index
    %263 = vector.load %arg25[%c48_160, %c0_161] : memref<64x32xf32, #tpu.memory_space<vmem>>, vector<8x32xf32>
    %cst_162 = arith.constant dense<0.000000e+00> : vector<8x32xf32>
    %264 = tpu.matmul %241, %42, %cst_162 {dimension_numbers = #tpu.dot_dimension_numbers<[1], [0], [0], [1], [0, 0, 1, 1], [], []>} : vector<8x32xf32>, vector<32x32xf32>, vector<8x32xf32> -> vector<8x32xf32>
    %265 = vector.broadcast %43 : vector<1x32xf32> to vector<8x32xf32>
    %266 = arith.addf %264, %265 : vector<8x32xf32>
    %267 = arith.mulf %252, %266 : vector<8x32xf32>
    %268 = arith.addf %263, %267 : vector<8x32xf32>
    %269 = math.tanh %268 : vector<8x32xf32>
    %cst_163 = arith.constant 1.000000e+00 : f32
    %270 = vector.broadcast %cst_163 : f32 to vector<8x32xf32>
    %271 = arith.subf %270, %262 : vector<8x32xf32>
    %272 = arith.mulf %271, %269 : vector<8x32xf32>
    %273 = arith.mulf %262, %241 : vector<8x32xf32>
    %274 = arith.addf %272, %273 : vector<8x32xf32>
    %c48_164 = arith.constant 48 : index
    %c0_165 = arith.constant 0 : index
    %275 = vector.load %arg26[%c48_164, %c0_165] : memref<64x32xf32, #tpu.memory_space<vmem>>, vector<8x32xf32>
    tpu.vector_store %arg26[%c48_164, %c0_165], %274 {strides = array<i32>} : memref<64x32xf32, #tpu.memory_space<vmem>>, vector<8x32xf32>,
    %c56 = arith.constant 56 : index
    %c0_166 = arith.constant 0 : index
    %276 = vector.load %arg23[%c56, %c0_166] : memref<64x32xf32, #tpu.memory_space<vmem>>, vector<8x32xf32>
    %cst_167 = arith.constant dense<0.000000e+00> : vector<8x32xf32>
    %277 = tpu.matmul %274, %40, %cst_167 {dimension_numbers = #tpu.dot_dimension_numbers<[1], [0], [0], [1], [0, 0, 1, 1], [], []>} : vector<8x32xf32>, vector<32x32xf32>, vector<8x32xf32> -> vector<8x32xf32>
    %278 = arith.addf %276, %277 : vector<8x32xf32>
    %cst_168 = arith.constant 0.000000e+00 : f32
    %279 = vector.broadcast %cst_168 : f32 to vector<8x32xf32>
    %280 = arith.subf %279, %278 : vector<8x32xf32>
    %281 = math.exp %280 : vector<8x32xf32>
    %cst_169 = arith.constant 1.000000e+00 : f32
    %282 = vector.broadcast %cst_169 : f32 to vector<8x32xf32>
    %283 = arith.addf %282, %281 : vector<8x32xf32>
    %cst_170 = arith.constant 1.000000e+00 : f32
    %284 = vector.broadcast %cst_170 : f32 to vector<8x32xf32>
    %285 = arith.divf %284, %283 : vector<8x32xf32>
    %c56_171 = arith.constant 56 : index
    %c0_172 = arith.constant 0 : index
    %286 = vector.load %arg24[%c56_171, %c0_172] : memref<64x32xf32, #tpu.memory_space<vmem>>, vector<8x32xf32>
    %cst_173 = arith.constant dense<0.000000e+00> : vector<8x32xf32>
    %287 = tpu.matmul %274, %41, %cst_173 {dimension_numbers = #tpu.dot_dimension_numbers<[1], [0], [0], [1], [0, 0, 1, 1], [], []>} : vector<8x32xf32>, vector<32x32xf32>, vector<8x32xf32> -> vector<8x32xf32>
    %288 = arith.addf %286, %287 : vector<8x32xf32>
    %cst_174 = arith.constant 0.000000e+00 : f32
    %289 = vector.broadcast %cst_174 : f32 to vector<8x32xf32>
    %290 = arith.subf %289, %288 : vector<8x32xf32>
    %291 = math.exp %290 : vector<8x32xf32>
    %cst_175 = arith.constant 1.000000e+00 : f32
    %292 = vector.broadcast %cst_175 : f32 to vector<8x32xf32>
    %293 = arith.addf %292, %291 : vector<8x32xf32>
    %cst_176 = arith.constant 1.000000e+00 : f32
    %294 = vector.broadcast %cst_176 : f32 to vector<8x32xf32>
    %295 = arith.divf %294, %293 : vector<8x32xf32>
    %c56_177 = arith.constant 56 : index
    %c0_178 = arith.constant 0 : index
    %296 = vector.load %arg25[%c56_177, %c0_178] : memref<64x32xf32, #tpu.memory_space<vmem>>, vector<8x32xf32>
    %cst_179 = arith.constant dense<0.000000e+00> : vector<8x32xf32>
    %297 = tpu.matmul %274, %42, %cst_179 {dimension_numbers = #tpu.dot_dimension_numbers<[1], [0], [0], [1], [0, 0, 1, 1], [], []>} : vector<8x32xf32>, vector<32x32xf32>, vector<8x32xf32> -> vector<8x32xf32>
    %298 = vector.broadcast %43 : vector<1x32xf32> to vector<8x32xf32>
    %299 = arith.addf %297, %298 : vector<8x32xf32>
    %300 = arith.mulf %285, %299 : vector<8x32xf32>
    %301 = arith.addf %296, %300 : vector<8x32xf32>
    %302 = math.tanh %301 : vector<8x32xf32>
    %cst_180 = arith.constant 1.000000e+00 : f32
    %303 = vector.broadcast %cst_180 : f32 to vector<8x32xf32>
    %304 = arith.subf %303, %295 : vector<8x32xf32>
    %305 = arith.mulf %304, %302 : vector<8x32xf32>
    %306 = arith.mulf %295, %274 : vector<8x32xf32>
    %307 = arith.addf %305, %306 : vector<8x32xf32>
    %c56_181 = arith.constant 56 : index
    %c0_182 = arith.constant 0 : index
    %308 = vector.load %arg26[%c56_181, %c0_182] : memref<64x32xf32, #tpu.memory_space<vmem>>, vector<8x32xf32>
    tpu.vector_store %arg26[%c56_181, %c0_182], %307 {strides = array<i32>} : memref<64x32xf32, #tpu.memory_space<vmem>>, vector<8x32xf32>,
    %c0_183 = arith.constant 0 : index
    %c0_184 = arith.constant 0 : index
    %309 = vector.load %arg22[%c0_183, %c0_184] : memref<8x32xf32, #tpu.memory_space<vmem>>, vector<8x32xf32>
    tpu.vector_store %arg22[%c0_183, %c0_184], %307 {strides = array<i32>} : memref<8x32xf32, #tpu.memory_space<vmem>>, vector<8x32xf32>,
    %c0_185 = arith.constant 0 : index
    %c0_186 = arith.constant 0 : index
    %310 = vector.load %arg26[%c0_185, %c0_186] : memref<64x32xf32, #tpu.memory_space<vmem>>, vector<64x32xf32>
    %c0_187 = arith.constant 0 : index
    %c0_188 = arith.constant 0 : index
    %311 = vector.load %arg17[%c0_187, %c0_188] : memref<32x32xf32, #tpu.memory_space<vmem>>, vector<32x32xf32>
    %cst_189 = arith.constant dense<0.000000e+00> : vector<64x32xf32>
    %312 = tpu.matmul %310, %311, %cst_189 {dimension_numbers = #tpu.dot_dimension_numbers<[1], [0], [0], [1], [0, 0, 1, 1], [], []>} : vector<64x32xf32>, vector<32x32xf32>, vector<64x32xf32> -> vector<64x32xf32>
    %c0_190 = arith.constant 0 : index
    %c0_191 = arith.constant 0 : index
    %313 = vector.load %arg18[%c0_190, %c0_191] : memref<1x32xf32, #tpu.memory_space<vmem>>, vector<1x32xf32>
    %314 = vector.broadcast %313 : vector<1x32xf32> to vector<64x32xf32>
    %315 = arith.addf %312, %314 : vector<64x32xf32>
    %cst_192 = arith.constant 0.000000e+00 : f32
    %316 = vector.broadcast %cst_192 : f32 to vector<64x32xf32>
    %317 = arith.cmpf ogt, %315, %316 : vector<64x32xf32>
    %cst_193 = arith.constant 0.00999999977 : f32
    %318 = vector.broadcast %cst_193 : f32 to vector<64x32xf32>
    %319 = arith.mulf %318, %315 : vector<64x32xf32>
    %320 = arith.select %317, %315, %319 : vector<64x32xi1>, vector<64x32xf32>
    %c0_194 = arith.constant 0 : index
    %c0_195 = arith.constant 0 : index
    %321 = vector.load %arg19[%c0_194, %c0_195] : memref<32x6xf32, #tpu.memory_space<vmem>>, vector<32x6xf32>
    %cst_196 = arith.constant dense<0.000000e+00> : vector<64x6xf32>
    %322 = tpu.matmul %320, %321, %cst_196 {dimension_numbers = #tpu.dot_dimension_numbers<[1], [0], [0], [1], [0, 0, 1, 1], [], []>} : vector<64x32xf32>, vector<32x6xf32>, vector<64x6xf32> -> vector<64x6xf32>
    %c0_197 = arith.constant 0 : index
    %c0_198 = arith.constant 0 : index
    %323 = vector.load %arg20[%c0_197, %c0_198] : memref<1x6xf32, #tpu.memory_space<vmem>>, vector<1x6xf32>
    %324 = vector.broadcast %323 : vector<1x6xf32> to vector<64x6xf32>
    %325 = arith.addf %322, %324 : vector<64x6xf32>
    %cst_199 = arith.constant dense<0xFF800000> : vector<64xf32>
    %326 = vector.multi_reduction <maximumf>, %325, %cst_199 [1] : vector<64x6xf32> to vector<64xf32>
    %327 = vector.shape_cast %326 : vector<64xf32> to vector<64x1xf32>
    %328 = vector.broadcast %327 : vector<64x1xf32> to vector<64x6xf32>
    %329 = arith.subf %325, %328 : vector<64x6xf32>
    %330 = math.exp %329 : vector<64x6xf32>
    %cst_200 = arith.constant dense<0.000000e+00> : vector<64xf32>
    %331 = vector.multi_reduction <add>, %330, %cst_200 [1] : vector<64x6xf32> to vector<64xf32>
    %332 = vector.shape_cast %331 : vector<64xf32> to vector<64x1xf32>
    %333 = math.log %332 : vector<64x1xf32>
    %334 = arith.addf %333, %327 : vector<64x1xf32>
    %335 = vector.broadcast %334 : vector<64x1xf32> to vector<64x6xf32>
    %336 = arith.subf %325, %335 : vector<64x6xf32>
    %cst_201 = arith.constant -0.105360515 : f32
    %337 = vector.broadcast %cst_201 : f32 to vector<64x6xf32>
    %338 = arith.addf %336, %337 : vector<64x6xf32>
    %cst_202 = arith.constant -4.09434462 : f32
    %339 = vector.broadcast %cst_202 : f32 to vector<64x6xf32>
    %340 = arith.maximumf %338, %339 : vector<64x6xf32>
    %341 = arith.subf %338, %340 : vector<64x6xf32>
    %342 = math.exp %341 : vector<64x6xf32>
    %343 = arith.subf %339, %340 : vector<64x6xf32>
    %344 = math.exp %343 : vector<64x6xf32>
    %345 = arith.addf %342, %344 : vector<64x6xf32>
    %346 = math.log %345 : vector<64x6xf32>
    %347 = arith.addf %340, %346 : vector<64x6xf32>
    %348 = vector.shape_cast %347 : vector<64x6xf32> to vector<8x8x6xf32>
    %c0_203 = arith.constant 0 : index
    %c0_204 = arith.constant 0 : index
    %c0_205 = arith.constant 0 : index
    %349 = vector.load %arg21[%c0_203, %c0_204, %c0_205] : memref<8x8x6xf32, #tpu.memory_space<vmem>>, vector<8x8x6xf32>
    tpu.vector_store %arg21[%c0_203, %c0_204, %c0_205], %348 {strides = array<i32>} : memref<8x8x6xf32, #tpu.memory_space<vmem>>, vector<8x8x6xf32>,
    return
  }
  func.func @transform_0(%arg0: i32) -> (i32, i32, i32) {
    %c0_i32 = arith.constant 0 : i32
    %c0_i32_0 = arith.constant 0 : i32
    %c0_i32_1 = arith.constant 0 : i32
    return %c0_i32, %arg0, %c0_i32_0 : i32, i32, i32
  }
  func.func @transform_1(%arg0: i32) -> (i32, i32) {
    %c0_i32 = arith.constant 0 : i32
    %c0_i32_0 = arith.constant 0 : i32
    return %arg0, %c0_i32 : i32, i32
  }
  func.func @transform_2(%arg0: i32) -> (i32, i32) {
    %c0_i32 = arith.constant 0 : i32
    %c0_i32_0 = arith.constant 0 : i32
    %c0_i32_1 = arith.constant 0 : i32
    return %c0_i32, %c0_i32_0 : i32, i32
  }
  func.func @transform_3(%arg0: i32) -> (i32, i32) {
    %c0_i32 = arith.constant 0 : i32
    %c0_i32_0 = arith.constant 0 : i32
    %c0_i32_1 = arith.constant 0 : i32
    return %c0_i32, %c0_i32_0 : i32, i32
  }
  func.func @transform_4(%arg0: i32) -> (i32, i32) {
    %c0_i32 = arith.constant 0 : i32
    %c0_i32_0 = arith.constant 0 : i32
    %c0_i32_1 = arith.constant 0 : i32
    return %c0_i32, %c0_i32_0 : i32, i32
  }
  func.func @transform_5(%arg0: i32) -> (i32, i32) {
    %c0_i32 = arith.constant 0 : i32
    %c0_i32_0 = arith.constant 0 : i32
    %c0_i32_1 = arith.constant 0 : i32
    return %c0_i32, %c0_i32_0 : i32, i32
  }
  func.func @transform_6(%arg0: i32) -> (i32, i32) {
    %c0_i32 = arith.constant 0 : i32
    %c0_i32_0 = arith.constant 0 : i32
    %c0_i32_1 = arith.constant 0 : i32
    return %c0_i32, %c0_i32_0 : i32, i32
  }
  func.func @transform_7(%arg0: i32) -> (i32, i32) {
    %c0_i32 = arith.constant 0 : i32
    %c0_i32_0 = arith.constant 0 : i32
    %c0_i32_1 = arith.constant 0 : i32
    return %c0_i32, %c0_i32_0 : i32, i32
  }
  func.func @transform_8(%arg0: i32) -> (i32, i32) {
    %c0_i32 = arith.constant 0 : i32
    %c0_i32_0 = arith.constant 0 : i32
    %c0_i32_1 = arith.constant 0 : i32
    return %c0_i32, %c0_i32_0 : i32, i32
  }
  func.func @transform_9(%arg0: i32) -> (i32, i32) {
    %c0_i32 = arith.constant 0 : i32
    %c0_i32_0 = arith.constant 0 : i32
    %c0_i32_1 = arith.constant 0 : i32
    return %c0_i32, %c0_i32_0 : i32, i32
  }
  func.func @transform_10(%arg0: i32) -> (i32, i32) {
    %c0_i32 = arith.constant 0 : i32
    %c0_i32_0 = arith.constant 0 : i32
    %c0_i32_1 = arith.constant 0 : i32
    return %c0_i32, %c0_i32_0 : i32, i32
  }
  func.func @transform_11(%arg0: i32) -> (i32, i32) {
    %c0_i32 = arith.constant 0 : i32
    %c0_i32_0 = arith.constant 0 : i32
    %c0_i32_1 = arith.constant 0 : i32
    return %c0_i32, %c0_i32_0 : i32, i32
  }
  func.func @transform_12(%arg0: i32) -> (i32, i32) {
    %c0_i32 = arith.constant 0 : i32
    %c0_i32_0 = arith.constant 0 : i32
    %c0_i32_1 = arith.constant 0 : i32
    return %c0_i32, %c0_i32_0 : i32, i32
  }
  func.func @transform_13(%arg0: i32) -> (i32, i32) {
    %c0_i32 = arith.constant 0 : i32
    %c0_i32_0 = arith.constant 0 : i32
    %c0_i32_1 = arith.constant 0 : i32
    return %c0_i32, %c0_i32_0 : i32, i32
  }
  func.func @transform_14(%arg0: i32) -> (i32, i32) {
    %c0_i32 = arith.constant 0 : i32
    %c0_i32_0 = arith.constant 0 : i32
    %c0_i32_1 = arith.constant 0 : i32
    return %c0_i32, %c0_i32_0 : i32, i32
  }
  func.func @transform_15(%arg0: i32) -> (i32, i32) {
    %c0_i32 = arith.constant 0 : i32
    %c0_i32_0 = arith.constant 0 : i32
    %c0_i32_1 = arith.constant 0 : i32
    return %c0_i32, %c0_i32_0 : i32, i32
  }
  func.func @transform_16(%arg0: i32) -> (i32, i32) {
    %c0_i32 = arith.constant 0 : i32
    %c0_i32_0 = arith.constant 0 : i32
    %c0_i32_1 = arith.constant 0 : i32
    return %c0_i32, %c0_i32_0 : i32, i32
  }
  func.func @transform_17(%arg0: i32) -> (i32, i32) {
    %c0_i32 = arith.constant 0 : i32
    %c0_i32_0 = arith.constant 0 : i32
    %c0_i32_1 = arith.constant 0 : i32
    return %c0_i32, %c0_i32_0 : i32, i32
  }
  func.func @transform_18(%arg0: i32) -> (i32, i32) {
    %c0_i32 = arith.constant 0 : i32
    %c0_i32_0 = arith.constant 0 : i32
    %c0_i32_1 = arith.constant 0 : i32
    return %c0_i32, %c0_i32_0 : i32, i32
  }
  func.func @transform_19(%arg0: i32) -> (i32, i32) {
    %c0_i32 = arith.constant 0 : i32
    %c0_i32_0 = arith.constant 0 : i32
    %c0_i32_1 = arith.constant 0 : i32
    return %c0_i32, %c0_i32_0 : i32, i32
  }
  func.func @transform_20(%arg0: i32) -> (i32, i32, i32) {
    %c0_i32 = arith.constant 0 : i32
    %c0_i32_0 = arith.constant 0 : i32
    %c0_i32_1 = arith.constant 0 : i32
    return %c0_i32, %arg0, %c0_i32_0 : i32, i32, i32
  }
  func.func @transform_21(%arg0: i32) -> (i32, i32) {
    %c0_i32 = arith.constant 0 : i32
    %c0_i32_0 = arith.constant 0 : i32
    return %arg0, %c0_i32 : i32, i32
  }
}

</mosaic_0001>

<bundles_post_ra>
// kernel: tpu_custom_call.1
= control target key start
LH: loop header
LB: loop body
LE: loop exit
PB: predicated region body
PF: predicated region fallthrough
CT: control target
= control target key end

     0   :  { %s7386_s0 = inlined_call_operand.hbm [shape: f32[8,16,16], index: 0, kind: input, shape index: {}]   ;;  %s7387_s1 = inlined_call_operand.hbm [shape: f32[16,32], index: 1, kind: input, shape index: {}]   ;;  %s7388_s2 = inlined_call_operand.hbm [shape: f32[16,32], index: 2, kind: input, shape index: {}]   ;;  %s7389_s3 = inlined_call_operand.hbm [shape: f32[1,32], index: 3, kind: input, shape index: {}]   ;;  %s7390_s4 = inlined_call_operand.vmem [shape: f32[32,32], index: 4, kind: input, shape index: {}]   ;;  %s7391_s5 = inlined_call_operand.hbm [shape: f32[1,32], index: 5, kind: input, shape index: {}]   ;;  %s7392_s6 = inlined_call_operand.hbm [shape: f32[32,32], index: 6, kind: input, shape index: {}]   ;;  %s7393_s7 = inlined_call_operand.vmem [shape: f32[32,32], index: 7, kind: input, shape index: {}]   ;;  %s7394_s8 = inlined_call_operand.hbm [shape: f32[32,32], index: 8, kind: input, shape index: {}]   ;;  %s7395_s9 = inlined_call_operand.hbm [shape: f32[32,32], index: 9, kind: input, shape index: {}]   ;;  %s7396_s10 = inlined_call_operand.hbm [shape: f32[32,32], index: 10, kind: input, shape index: {}]   ;;  %s7397_s11 = inlined_call_operand.hbm [shape: f32[32,32], index: 11, kind: input, shape index: {}]   ;;  %s7398_s12 = inlined_call_operand.hbm [shape: f32[1,32], index: 12, kind: input, shape index: {}]   ;;  %s7399_s13 = inlined_call_operand.hbm [shape: f32[1,32], index: 13, kind: input, shape index: {}]   ;;  %s7400_s14 = inlined_call_operand.hbm [shape: f32[1,32], index: 14, kind: input, shape index: {}]   ;;  %s7401_s15 = inlined_call_operand.hbm [shape: f32[1,32], index: 15, kind: input, shape index: {}]   ;;  %s7402_s16 = inlined_call_operand.vmem [shape: f32[32,32], index: 16, kind: input, shape index: {}]   ;;  %s7403_s17 = inlined_call_operand.hbm [shape: f32[1,32], index: 17, kind: input, shape index: {}]   ;;  %s7404_s18 = inlined_call_operand.vmem [shape: f32[32,6], index: 18, kind: input, shape index: {}]   ;;  %s7405_s19 = inlined_call_operand.vmem [shape: f32[1,6], index: 19, kind: input, shape index: {}]   ;;  %s7406_s20 = inlined_call_operand.vmem [shape: f32[8,16,6], index: 20, kind: output, shape index: {0}]   ;;  %s7407_s21 = inlined_call_operand.hbm [shape: f32[16,32], index: 21, kind: output, shape index: {1}]  }
   0x1   :  { %7433 = sst [smem:[#allocation45_spill]] %s7386_s0 }
   0x2   :  { %7434 = sst [smem:[#allocation46_spill]] %s7387_s1 }
   0x3   :  { %7435 = sst [smem:[#allocation47_spill]] %s7388_s2 }
   0x4   :  { %7436 = sst [smem:[#allocation48_spill]] %s7389_s3 }
   0x5   :  { %7437 = sst [smem:[#allocation49_spill]] %s7390_s4 }
   0x6   :  { %7438 = sst [smem:[#allocation50_spill]] %s7391_s5 }
   0x7   :  { %7439 = sst [smem:[#allocation51_spill]] %s7392_s6 }
   0x8   :  { %7440 = sst [smem:[#allocation52_spill]] %s7393_s7 }
   0x9   :  { %7441 = sst [smem:[#allocation53_spill]] %s7394_s8 }
   0xa   :  { %7442 = sst [smem:[#allocation54_spill]] %s7395_s9 }
   0xb   :  { %7443 = sst [smem:[#allocation55_spill]] %s7396_s10 }
   0xc   :  { %7444 = sst [smem:[#allocation56_spill]] %s7397_s11 }
   0xd   :  { %7445 = sst [smem:[#allocation57_spill]] %s7398_s12 }
   0xe   :  { %7446 = sst [smem:[#allocation58_spill]] %s7399_s13 }
   0xf   :  { %7447 = sst [smem:[#allocation59_spill]] %s7402_s16 }
  0x10   :  { %7448 = sst [smem:[#allocation60_spill]] %s7404_s18 }
  0x11   :  { %7449 = sst [smem:[#allocation61_spill]] %s7405_s19 }
  0x12   :  { %7450 = sst [smem:[#allocation62_spill]] %s7406_s20 }
  0x13   :  { %7451 = sst [smem:[#allocation63_spill]] %s7407_s21 }
  0x14   :  { %27 = vsyncpa [#allocation7], 0 }
  0x15   :  { %29 = vsyncpa [#allocation7 + $0x1], 0 }
  0x16   :  { %30 = vsyncpa [#allocation10], 0 }
  0x17   :  { %32 = vsyncpa [#allocation10 + $0x1], 0 }
  0x18   :  { %33 = vsyncpa [#allocation13], 0 }
  0x19   :  { %34 = vsyncpa [#allocation16], 0 }
  0x1a   :  { %35 = vsyncpa [#allocation19], 0 }
  0x1b   :  { %36 = vsyncpa [#allocation22], 0 }
  0x1c   :  { %37 = vsyncpa [#allocation25], 0 }
  0x1d   :  { %38 = vsyncpa [#allocation28], 0 }
  0x1e   :  { %39 = vsyncpa [#allocation8], 0 }
  0x1f   :  { %41 = vsyncpa [#allocation8 + $0x1], 0  ;;  %s6331_s2 = smov 0   ;;  %s6333_s25 = smov 0  }
  0x20   :  { %s6335_s26 = smov 0   ;;  %s6337_s27 = smov 0  }
  0x21 LB: > { %7452 = sst [smem:[#allocation42_spill]] %s6185_s2  ;;  %s6199_s3 = smov [#allocation11]   ;;  %s6197_s27 = sphi %s6337_s27, %s7516_s27   ;;  %s6193_s26 = sphi %s6335_s26, %s7515_s26   ;;  %s6189_s25 = sphi %s6333_s25, %s7514_s25   ;;  %s6185_s2 = sphi %s6331_s2, %s7513_s2  }
  0x22   : > { %s546_s28 = sshll.u32 %s6199_s3, 4  ;;  %s6352_s29 = sadd.s32 4294967295, %s6197_s27   ;;  %s6357_s28 = int_to_ptr.vmem [resolvable:$true] %s546_s28 }
  0x23   : > { %7453 = sst [smem:[#allocation43_spill]] %s6352_s29  ;;  %p4398_p0 = scmp.ge.s32.totalorder %s6197_s27, 1 }
  0x24   : > { %p7423_p1 = scmp.eq.s32.totalorder %s6352_s29, 0  ;;  %p534_p2 = scmp.lt.s32.totalorder %s6197_s27, 3 }
  0x25   : > { %s6200_s4 = smov [#allocation12]   ;;  %s6201_s22 = smov [#allocation15]  }
  0x26   : > { %p6359_p3 = pnand %p4398_p0, %p534_p2  ;;  %s560_s30 = sshll.u32 %s6200_s4, 4  ;;  %s6372_s30 = int_to_ptr.vmem [resolvable:$true] %s560_s30 }
  0x27   : > { %s584_s23 = sshll.u32 %s6201_s22, 4  ;;  %s7457_s3 = sld [smem:[#allocation47_spill]]  ;;  %s6374_s23 = int_to_ptr.vmem [resolvable:$true] %s584_s23 }
  0x28   : > { %s7454_s0 = scalar_select %p6359_p3, 1, 0 }
  0x29   : > { %p5385_p5 = pneg %p6359_p3 }
  0x2a   : > { %7455 = sst [smem:[#allocation44_spill]] %s7454_s0 }
  0x2b   : > { %p6368_p6 = pnand %p5385_p5, %p7423_p1 }
  0x2d   : > { %s5675_s21 = scalar_lea.hbm %s7457_s3, 256  ;;  %p6384_p8 = pneg %p6368_p6 }
  0x2e   : > { %p5676_p7 = scmp.ne.s32.totalorder %s7457_s3, %s5675_s21  ;;  %p5682_p11 = scmp.lt.u32.totalorder %s5675_s21, %s7457_s3 }
  0x30   : > { %p5678_p9 = pnand %p6384_p8, %p5676_p7 }
  0x32   : > { %p5679_p10 = pneg %p5678_p9 }
  0x34   : > { %p5684_p12 = pnand %p5682_p11, %p5679_p10 }
  0x36   : > { %5687 = shalt.err (!%p5684_p12)
}
  0x37   : > { %s5688_s19 = scalar_lea.vmem %s6357_s28, 256  ;;  %p5696_p5 = scmp.lt.s32.totalorder %s6357_s28, %s6357_s28 }
  0x38   : > { %p5689_p13 = scmp.ne.s32.totalorder %s6357_s28, %s5688_s19  ;;  %p5697_p4 = scmp.lt.s32.totalorder %s5688_s19, %s5688_s19 }
  0x3a   : > { %p5691_p0 = pnand %p5689_p13, %p6384_p8  ;;  %p5698_p7 = por %p5697_p4, %p5696_p5 }
  0x3c   : > { %p5692_p2 = pneg %p5691_p0 }
  0x3e   : > { %p5699_p9 = pnand %p5698_p7, %p5692_p2 }
  0x40   : > { %5702 = shalt.err (!%p5699_p9)
}
  0x41   : > { %s7425_s20 = smov 128   ;;  %s7427_s18 = smov 8  }
  0x42   : > { %5388 = dma.hbm_to_vmem [thread:$0]  (!%p6368_p6), %s7457_s3, 256, %s6357_s28, [#allocation10], %s7425_s20, %s7425_s20, %s7427_s18  }
  0x43   : > { %s7459_s16 = sld [smem:[#allocation48_spill]] }
  0x49   : > { %s5703_s19 = scalar_lea.hbm %s7459_s16, 16 }
  0x4a   : > { %p5704_p4 = scmp.ne.s32.totalorder %s7459_s16, %s5703_s19  ;;  %p5710_p12 = scmp.lt.u32.totalorder %s5703_s19, %s7459_s16 }
  0x4c   : > { %p5706_p10 = pnand %p5704_p4, %p6384_p8 }
  0x4e   : > { %p5707_p11 = pneg %p5706_p10 }
  0x50   : > { %p5712_p13 = pnand %p5710_p12, %p5707_p11 }
  0x52   : > { %5715 = shalt.err (!%p5712_p13)
}
  0x53   : > { %s5716_s28 = scalar_lea.vmem %s6372_s30, 16  ;;  %s5723_s7 = scalar_lea.vmem %s6372_s30, 32 }
  0x54   : > { %p5717_p0 = scmp.ne.s32.totalorder %s6372_s30, %s5716_s28  ;;  %p5724_p7 = scmp.lt.s32.totalorder %s6372_s30, %s6372_s30 }
  0x55   : > { %p5725_p9 = scmp.lt.s32.totalorder %s5723_s7, %s5716_s28 }
  0x56   : > { %p5719_p2 = pnand %p5717_p0, %p6384_p8 }
  0x57   : > { %p5726_p4 = por %p5725_p9, %p5724_p7 }
  0x58   : > { %p5720_p5 = pneg %p5719_p2 }
  0x5a   : > { %p5727_p10 = pnand %p5726_p4, %p5720_p5 }
  0x5c   : > { %5730 = shalt.err (!%p5727_p10)
}
  0x5d   : > { %5391 = dma.hbm_to_vmem [thread:$0]  (!%p6368_p6), %s7459_s16, 16, %s6372_s30, [#allocation13]  }
  0x5e   : > { %s7460_s6 = sld [smem:[#allocation51_spill]] }
  0x64   : > { %s5731_s1 = scalar_lea.hbm %s7460_s6, 512 }
  0x65   : > { %p5732_p11 = scmp.ne.s32.totalorder %s7460_s6, %s5731_s1  ;;  %p5738_p0 = scmp.lt.u32.totalorder %s5731_s1, %s7460_s6 }
  0x67   : > { %p5734_p12 = pnand %p5732_p11, %p6384_p8 }
  0x69   : > { %p5735_p13 = pneg %p5734_p12 }
  0x6b   : > { %p5740_p2 = pnand %p5738_p0, %p5735_p13 }
  0x6d   : > { %5743 = shalt.err (!%p5740_p2)
}
  0x6e   : > { %s5744_s30 = scalar_lea.vmem %s6374_s23, 512  ;;  %p5752_p4 = scmp.lt.s32.totalorder %s6374_s23, %s6374_s23 }
  0x6f   : > { %p5745_p5 = scmp.ne.s32.totalorder %s6374_s23, %s5744_s30  ;;  %p5753_p10 = scmp.lt.s32.totalorder %s5744_s30, %s5744_s30 }
  0x71   : > { %p5747_p7 = pnand %p5745_p5, %p6384_p8  ;;  %p5754_p11 = por %p5753_p10, %p5752_p4 }
  0x73   : > { %p5748_p9 = pneg %p5747_p7 }
  0x75   : > { %p5755_p12 = pnand %p5754_p11, %p5748_p9 }
  0x77   : > { %5758 = shalt.err (!%p5755_p12)
}
  0x78   : > { %5397 = dma.hbm_to_vmem [thread:$0]  (!%p6368_p6), %s7460_s6, 512, %s6374_s23, [#allocation16], %s7425_s20, %s7425_s20, %s7427_s18  }
  0x79   : > { %s6204_s29 = smov [#allocation18]   ;;  %s6205_s21 = smov [#allocation21]  }
  0x7a   : > { %s613_s0 = sshll.u32 %s6204_s29, 4  ;;  %s639_s1 = sshll.u32 %s6205_s21, 4  ;;  %s614_s0 = int_to_ptr.vmem [resolvable:$true] %s613_s0  ;;  %s640_s1 = int_to_ptr.vmem [resolvable:$true] %s639_s1 }
  0x7b   : > { %s7461_s9 = sld [smem:[#allocation54_spill]] }
  0x81   : > { %s5759_s19 = scalar_lea.hbm %s7461_s9, 512 }
  0x82   : > { %p5760_p13 = scmp.ne.s32.totalorder %s7461_s9, %s5759_s19  ;;  %p5766_p5 = scmp.lt.u32.totalorder %s5759_s19, %s7461_s9 }
  0x84   : > { %p5762_p0 = pnand %p5760_p13, %p6384_p8 }
  0x86   : > { %p5763_p2 = pneg %p5762_p0 }
  0x88   : > { %p5768_p7 = pnand %p5766_p5, %p5763_p2 }
  0x8a   : > { %5771 = shalt.err (!%p5768_p7)
}
  0x8b   : > { %s5772_s23 = scalar_lea.vmem %s614_s0, 512  ;;  %p5780_p11 = scmp.lt.s32.totalorder %s614_s0, %s614_s0 }
  0x8c   : > { %p5773_p9 = scmp.ne.s32.totalorder %s614_s0, %s5772_s23  ;;  %p5781_p12 = scmp.lt.s32.totalorder %s5772_s23, %s5772_s23 }
  0x8e   : > { %p5775_p4 = pnand %p5773_p9, %p6384_p8  ;;  %p5782_p1 = por %p5781_p12, %p5780_p11 }
  0x90   : > { %p5776_p10 = pneg %p5775_p4 }
  0x92   : > { %p5783_p3 = pnand %p5782_p1, %p5776_p10 }
  0x94   : > { %5786 = shalt.err (!%p5783_p3)
}
  0x95   : > { %5403 = dma.hbm_to_vmem [thread:$0]  (!%p6368_p6), %s7461_s9, 512, %s614_s0, [#allocation19], %s7425_s20, %s7425_s20, %s7427_s18  }
  0x96   : > { %s7462_s11 = sld [smem:[#allocation56_spill]] }
  0x9c   : > { %s5787_s24 = scalar_lea.hbm %s7462_s11, 512 }
  0x9d   : > { %p5788_p1 = scmp.ne.s32.totalorder %s7462_s11, %s5787_s24  ;;  %p5794_p0 = scmp.lt.u32.totalorder %s5787_s24, %s7462_s11 }
  0x9f   : > { %p5790_p3 = pnand %p5788_p1, %p6384_p8 }
  0xa1   : > { %p5791_p13 = pneg %p5790_p3 }
  0xa3   : > { %p5796_p2 = pnand %p5794_p0, %p5791_p13 }
  0xa5   : > { %5799 = shalt.err (!%p5796_p2)
}
  0xa6   : > { %s5800_s7 = scalar_lea.vmem %s640_s1, 512  ;;  %p5808_p4 = scmp.lt.s32.totalorder %s640_s1, %s640_s1 }
  0xa7   : > { %p5801_p5 = scmp.ne.s32.totalorder %s640_s1, %s5800_s7  ;;  %p5809_p10 = scmp.lt.s32.totalorder %s5800_s7, %s5800_s7 }
  0xa9   : > { %p5803_p7 = pnand %p5801_p5, %p6384_p8  ;;  %p5810_p11 = por %p5809_p10, %p5808_p4 }
  0xab   : > { %p5804_p9 = pneg %p5803_p7 }
  0xad   : > { %p5811_p12 = pnand %p5810_p11, %p5804_p9 }
  0xaf   : > { %5814 = shalt.err (!%p5811_p12)
}
  0xb0   : > { %5409 = dma.hbm_to_vmem [thread:$0]  (!%p6368_p6), %s7462_s11, 512, %s640_s1, [#allocation22], %s7425_s20, %s7425_s20, %s7427_s18  }
  0xb1   : > { %s6206_s3 = smov [#allocation24]   ;;  %s6207_s29 = smov [#allocation27]  }
  0xb2   : > { %s664_s2 = sshll.u32 %s6206_s3, 4  ;;  %s686_s21 = sshll.u32 %s6207_s29, 4  ;;  %s665_s2 = int_to_ptr.vmem [resolvable:$true] %s664_s2  ;;  %s687_s21 = int_to_ptr.vmem [resolvable:$true] %s686_s21 }
  0xb3   : > { %s7463_s13 = sld [smem:[#allocation58_spill]] }
  0xb9   : > { %s5815_s19 = scalar_lea.hbm %s7463_s13, 16 }
  0xba   : > { %p5816_p1 = scmp.ne.s32.totalorder %s7463_s13, %s5815_s19  ;;  %p5822_p0 = scmp.lt.u32.totalorder %s5815_s19, %s7463_s13 }
  0xbc   : > { %p5818_p3 = pnand %p5816_p1, %p6384_p8 }
  0xbe   : > { %p5819_p13 = pneg %p5818_p3 }
  0xc0   : > { %p5824_p2 = pnand %p5822_p0, %p5819_p13 }
  0xc2   : > { %5827 = shalt.err (!%p5824_p2)
}
  0xc3   : > { %s5828_s1 = scalar_lea.vmem %s665_s2, 16  ;;  %s5835_s23 = scalar_lea.vmem %s665_s2, 32 }
  0xc4   : > { %p5829_p5 = scmp.ne.s32.totalorder %s665_s2, %s5828_s1  ;;  %p5836_p4 = scmp.lt.s32.totalorder %s665_s2, %s665_s2 }
  0xc5   : > { %p5837_p10 = scmp.lt.s32.totalorder %s5835_s23, %s5828_s1 }
  0xc6   : > { %p5831_p7 = pnand %p5829_p5, %p6384_p8 }
  0xc7   : > { %p5838_p11 = por %p5837_p10, %p5836_p4 }
  0xc8   : > { %p5832_p9 = pneg %p5831_p7 }
  0xca   : > { %p5839_p12 = pnand %p5838_p11, %p5832_p9 }
  0xcc   : > { %5842 = shalt.err (!%p5839_p12)
}
  0xcd   : > { %5415 = dma.hbm_to_vmem [thread:$0]  (!%p6368_p6), %s7463_s13, 16, %s665_s2, [#allocation25]  }
  0xce   : > { %s5843_s19 = scalar_lea.hbm %s7401_s15, 16 }
  0xcf   : > { %p5844_p1 = scmp.ne.s32.totalorder %s7401_s15, %s5843_s19  ;;  %p5850_p0 = scmp.lt.u32.totalorder %s5843_s19, %s7401_s15 }
  0xd1   : > { %p5846_p3 = pnand %p5844_p1, %p6384_p8 }
  0xd3   : > { %p5847_p13 = pneg %p5846_p3 }
  0xd5   : > { %p5852_p2 = pnand %p5850_p0, %p5847_p13 }
  0xd7   : > { %5855 = shalt.err (!%p5852_p2)
}
  0xd8   : > { %s5856_s1 = scalar_lea.vmem %s687_s21, 16  ;;  %s5863_s2 = scalar_lea.vmem %s687_s21, 32 }
  0xd9   : > { %p5857_p5 = scmp.ne.s32.totalorder %s687_s21, %s5856_s1  ;;  %p5864_p4 = scmp.lt.s32.totalorder %s687_s21, %s687_s21 }
  0xda   : > { %p5865_p10 = scmp.lt.s32.totalorder %s5863_s2, %s5856_s1 }
  0xdb   : > { %p5859_p7 = pnand %p5857_p5, %p6384_p8 }
  0xdc   : > { %p5866_p11 = por %p5865_p10, %p5864_p4 }
  0xdd   : > { %p5860_p9 = pneg %p5859_p7 }
  0xdf   : > { %p5867_p12 = pnand %p5866_p11, %p5860_p9 }
  0xe1   : > { %5870 = shalt.err (!%p5867_p12)
}
  0xe2   : > { %5421 = dma.hbm_to_vmem [thread:$0]  (!%p6368_p6), %s7401_s15, 16, %s687_s21, [#allocation28]  }
  0xe3   : > { %s6208_s29 = smov [#allocation14]   ;;  %s6209_s22 = smov [#allocation17]  }
  0xe4   : > { %s574_s24 = sshll.u32 %s6208_s29, 4  ;;  %s600_s19 = sshll.u32 %s6209_s22, 4  ;;  %s575_s24 = int_to_ptr.vmem [resolvable:$true] %s574_s24  ;;  %s601_s19 = int_to_ptr.vmem [resolvable:$true] %s600_s19 }
  0xe5   : > { %s7464_s7 = sld [smem:[#allocation50_spill]] }
  0xeb   : > { %s5871_s0 = scalar_lea.hbm %s7464_s7, 16 }
  0xec   : > { %p5872_p1 = scmp.ne.s32.totalorder %s7464_s7, %s5871_s0  ;;  %p5878_p0 = scmp.lt.u32.totalorder %s5871_s0, %s7464_s7 }
  0xee   : > { %p5874_p3 = pnand %p5872_p1, %p6384_p8 }
  0xf0   : > { %p5875_p13 = pneg %p5874_p3 }
  0xf2   : > { %p5880_p2 = pnand %p5878_p0, %p5875_p13 }
  0xf4   : > { %5883 = shalt.err (!%p5880_p2)
}
  0xf5   : > { %s5884_s21 = scalar_lea.vmem %s575_s24, 16  ;;  %s5891_s3 = scalar_lea.vmem %s575_s24, 32 }
  0xf6   : > { %p5885_p5 = scmp.ne.s32.totalorder %s575_s24, %s5884_s21  ;;  %p5892_p4 = scmp.lt.s32.totalorder %s575_s24, %s575_s24 }
  0xf7   : > { %p5893_p10 = scmp.lt.s32.totalorder %s5891_s3, %s5884_s21 }
  0xf8   : > { %p5887_p7 = pnand %p5885_p5, %p6384_p8 }
  0xf9   : > { %p5894_p11 = por %p5893_p10, %p5892_p4 }
  0xfa   : > { %p5888_p9 = pneg %p5887_p7 }
  0xfc   : > { %p5895_p12 = pnand %p5894_p11, %p5888_p9 }
  0xfe   : > { %5898 = shalt.err (!%p5895_p12)
}
  0xff   : > { %5394 = dma.hbm_to_vmem [thread:$0]  (!%p6368_p6), %s7464_s7, 16, %s575_s24, [#allocation13]  }
 0x100   : > { %s7465_s8 = sld [smem:[#allocation53_spill]] }
 0x106   : > { %s5899_s30 = scalar_lea.hbm %s7465_s8, 512 }
 0x107   : > { %p5900_p1 = scmp.ne.s32.totalorder %s7465_s8, %s5899_s30  ;;  %p5906_p0 = scmp.lt.u32.totalorder %s5899_s30, %s7465_s8 }
 0x109   : > { %p5902_p3 = pnand %p5900_p1, %p6384_p8 }
 0x10b   : > { %p5903_p13 = pneg %p5902_p3 }
 0x10d   : > { %p5908_p2 = pnand %p5906_p0, %p5903_p13 }
 0x10f   : > { %5911 = shalt.err (!%p5908_p2)
}
 0x110   : > { %s5912_s21 = scalar_lea.vmem %s601_s19, 512  ;;  %p5920_p4 = scmp.lt.s32.totalorder %s601_s19, %s601_s19 }
 0x111   : > { %p5913_p5 = scmp.ne.s32.totalorder %s601_s19, %s5912_s21  ;;  %p5921_p10 = scmp.lt.s32.totalorder %s5912_s21, %s5912_s21 }
 0x113   : > { %p5915_p7 = pnand %p5913_p5, %p6384_p8  ;;  %p5922_p11 = por %p5921_p10, %p5920_p4 }
 0x115   : > { %p5916_p9 = pneg %p5915_p7 }
 0x117   : > { %p5923_p12 = pnand %p5922_p11, %p5916_p9 }
 0x119   : > { %5926 = shalt.err (!%p5923_p12)
}
 0x11a   : > { %s7466_s24 = smov 128   ;;  %s6210_s22 = smov [#allocation20]  }
 0x11b   : > { %5400 = dma.hbm_to_vmem [thread:$0]  (!%p6368_p6), %s7465_s8, 512, %s601_s19, [#allocation16], %s7466_s24, %s7466_s24, %s7427_s18  }
 0x11c   : > { %s626_s20 = sshll.u32 %s6210_s22, 4  ;;  %s6211_s28 = smov [#allocation23]   ;;  %s627_s20 = int_to_ptr.vmem [resolvable:$true] %s626_s20 }
 0x11d   : > { %s653_s30 = sshll.u32 %s6211_s28, 4  ;;  %s7467_s10 = sld [smem:[#allocation55_spill]]  ;;  %s654_s30 = int_to_ptr.vmem [resolvable:$true] %s653_s30 }
 0x123   : > { %s5927_s2 = scalar_lea.hbm %s7467_s10, 512 }
 0x124   : > { %p5928_p1 = scmp.ne.s32.totalorder %s7467_s10, %s5927_s2  ;;  %p5934_p0 = scmp.lt.u32.totalorder %s5927_s2, %s7467_s10 }
 0x126   : > { %p5930_p3 = pnand %p5928_p1, %p6384_p8 }
 0x128   : > { %p5931_p13 = pneg %p5930_p3 }
 0x12a   : > { %p5936_p2 = pnand %p5934_p0, %p5931_p13 }
 0x12c   : > { %5939 = shalt.err (!%p5936_p2)
}
 0x12d   : > { %s5940_s19 = scalar_lea.vmem %s627_s20, 512  ;;  %p5948_p4 = scmp.lt.s32.totalorder %s627_s20, %s627_s20 }
 0x12e   : > { %p5941_p5 = scmp.ne.s32.totalorder %s627_s20, %s5940_s19  ;;  %p5949_p10 = scmp.lt.s32.totalorder %s5940_s19, %s5940_s19 }
 0x130   : > { %p5943_p7 = pnand %p5941_p5, %p6384_p8  ;;  %p5950_p11 = por %p5949_p10, %p5948_p4 }
 0x132   : > { %p5944_p9 = pneg %p5943_p7 }
 0x134   : > { %p5951_p12 = pnand %p5950_p11, %p5944_p9 }
 0x136   : > { %5954 = shalt.err (!%p5951_p12)
}
 0x137   : > { %5406 = dma.hbm_to_vmem [thread:$0]  (!%p6368_p6), %s7467_s10, 512, %s627_s20, [#allocation19], %s7466_s24, %s7466_s24, %s7427_s18  }
 0x138   : > { %s7468_s12 = sld [smem:[#allocation57_spill]] }
 0x13e   : > { %s5955_s0 = scalar_lea.hbm %s7468_s12, 16 }
 0x13f   : > { %p5956_p1 = scmp.ne.s32.totalorder %s7468_s12, %s5955_s0  ;;  %p5962_p0 = scmp.lt.u32.totalorder %s5955_s0, %s7468_s12 }
 0x141   : > { %p5958_p3 = pnand %p5956_p1, %p6384_p8 }
 0x143   : > { %p5959_p13 = pneg %p5958_p3 }
 0x145   : > { %p5964_p2 = pnand %p5962_p0, %p5959_p13 }
 0x147   : > { %5967 = shalt.err (!%p5964_p2)
}
 0x148   : > { %s5968_s3 = scalar_lea.vmem %s654_s30, 16  ;;  %s5975_s20 = scalar_lea.vmem %s654_s30, 32 }
 0x149   : > { %p5969_p5 = scmp.ne.s32.totalorder %s654_s30, %s5968_s3  ;;  %p5976_p4 = scmp.lt.s32.totalorder %s654_s30, %s654_s30 }
 0x14a   : > { %p5977_p10 = scmp.lt.s32.totalorder %s5975_s20, %s5968_s3 }
 0x14b   : > { %p5971_p7 = pnand %p5969_p5, %p6384_p8 }
 0x14c   : > { %p5978_p11 = por %p5977_p10, %p5976_p4 }
 0x14d   : > { %p5972_p9 = pneg %p5971_p7 }
 0x14f   : > { %p5979_p12 = pnand %p5978_p11, %p5972_p9 }
 0x151   : > { %5982 = shalt.err (!%p5979_p12)
}
 0x152   : > { %5412 = dma.hbm_to_vmem [thread:$0]  (!%p6368_p6), %s7468_s12, 16, %s654_s30, [#allocation22]  }
 0x153   : > { %s6212_s29 = smov [#allocation26]   ;;  %s6213_s28 = smov [#allocation29]  }
 0x154   : > { %s675_s22 = sshll.u32 %s6212_s29, 4  ;;  %s700_s0 = sshll.u32 %s6213_s28, 4  ;;  %s676_s22 = int_to_ptr.vmem [resolvable:$true] %s675_s22  ;;  %s701_s0 = int_to_ptr.vmem [resolvable:$true] %s700_s0 }
 0x155   : > { %s5983_s23 = scalar_lea.hbm %s7400_s14, 16 }
 0x156   : > { %p5984_p1 = scmp.ne.s32.totalorder %s7400_s14, %s5983_s23  ;;  %p5990_p0 = scmp.lt.u32.totalorder %s5983_s23, %s7400_s14 }
 0x158   : > { %p5986_p3 = pnand %p5984_p1, %p6384_p8 }
 0x15a   : > { %p5987_p13 = pneg %p5986_p3 }
 0x15c   : > { %p5992_p2 = pnand %p5990_p0, %p5987_p13 }
 0x15e   : > { %5995 = shalt.err (!%p5992_p2)
}
 0x15f   : > { %s5996_s30 = scalar_lea.vmem %s676_s22, 16  ;;  %s6003_s6 = scalar_lea.vmem %s676_s22, 32 }
 0x160   : > { %p5997_p5 = scmp.ne.s32.totalorder %s676_s22, %s5996_s30  ;;  %p6004_p4 = scmp.lt.s32.totalorder %s676_s22, %s676_s22 }
 0x161   : > { %p6005_p10 = scmp.lt.s32.totalorder %s6003_s6, %s5996_s30 }
 0x162   : > { %p5999_p7 = pnand %p5997_p5, %p6384_p8 }
 0x163   : > { %p6006_p11 = por %p6005_p10, %p6004_p4 }
 0x164   : > { %p6000_p9 = pneg %p5999_p7 }
 0x166   : > { %p6007_p12 = pnand %p6006_p11, %p6000_p9 }
 0x168   : > { %6010 = shalt.err (!%p6007_p12)
}
 0x169   : > { %5418 = dma.hbm_to_vmem [thread:$0]  (!%p6368_p6), %s7400_s14, 16, %s676_s22, [#allocation25]  }
 0x16a   : > { %s6011_s23 = scalar_lea.hbm %s7403_s17, 16 }
 0x16b   : > { %p6012_p1 = scmp.ne.s32.totalorder %s7403_s17, %s6011_s23  ;;  %p6018_p0 = scmp.lt.u32.totalorder %s6011_s23, %s7403_s17 }
 0x16d   : > { %p6014_p3 = pnand %p6012_p1, %p6384_p8 }
 0x16f   : > { %p6015_p13 = pneg %p6014_p3 }
 0x171   : > { %p6020_p2 = pnand %p6018_p0, %p6015_p13 }
 0x173   : > { %6023 = shalt.err (!%p6020_p2)
}
 0x174   : > { %s6024_s30 = scalar_lea.vmem %s701_s0, 16  ;;  %s6031_s22 = scalar_lea.vmem %s701_s0, 32 }
 0x175   : > { %p6025_p5 = scmp.ne.s32.totalorder %s701_s0, %s6024_s30  ;;  %p6032_p4 = scmp.lt.s32.totalorder %s701_s0, %s701_s0 }
 0x176   : > { %p6033_p10 = scmp.lt.s32.totalorder %s6031_s22, %s6024_s30 }
 0x177   : > { %p6027_p7 = pnand %p6025_p5, %p6384_p8 }
 0x178   : > { %p6034_p11 = por %p6033_p10, %p6032_p4 }
 0x179   : > { %p6028_p9 = pneg %p6027_p7 }
 0x17b   : > { %p6035_p12 = pnand %p6034_p11, %p6028_p9 }
 0x17d   : > { %6038 = shalt.err (!%p6035_p12)
}
 0x17e   : > { %s7469_s4 = sld [smem:[#allocation42_spill]]  ;;  %s7470_s28 = sld [smem:[#allocation43_spill]] }
 0x17f   : > { %5424 = dma.hbm_to_vmem [thread:$0]  (!%p6368_p6), %s7403_s17, 16, %s701_s0, [#allocation28]  }
 0x180   : > { %s4397_s1 = sadd.s32 4294967294, %s6197_s27   ;;  %s6652_s5 = sadd.s32 1, %s6197_s27  }
 0x181   : > { %s54_s2 = sadd.s32 1, %s6193_s26  ;;  %s51_s23 = ssub.s32 %s6197_s27, %s6652_s5 }
 0x182   : > { %p61_p8 = scmp.ne.s32.totalorder %s6193_s26, %s6189_s25  ;;  %p52_p1 = scmp.eq.s32.totalorder %s51_s23, 0 }
 0x183   : > { %p62_p3 = scmp.eq.s32.totalorder %s6197_s27, 0  ;;  %p527_p9 = scmp.eq.s32.totalorder %s4397_s1, 1 }
 0x184   : > { %p67_p13 = scmp.ne.s32.totalorder %s6189_s25, %s7469_s4  ;;  %p495_p0 = scmp.eq.s32.totalorder %s7470_s28, 1 }
 0x185   : > { %s6664_s21 = scalar_select %p52_p1, %s6193_s26, %s54_s2  }
 0x186   : > { %p63_p2 = por %p62_p3, %p61_p8  ;;  %p7471_p5 = scmp.eq.s32.totalorder %s7470_s28, 0 }
 0x187   : > { %p6672_p7 = por %p495_p0, %p61_p8  ;;  %p5449_p4 = scmp.lt.s32.totalorder %s6197_s27, 2 }
 0x188   : > { %p6668_p6 = por %p7471_p5, %p67_p13  ;;  %s6678_s20 = sand.u32 1, %s6193_s26  }
 0x189   : > { %s7473_s3 = scalar_select %p6672_p7, 1, 0 }
 0x18a   : > { %s7472_s0 = scalar_select %p6668_p6, 1, 0 }
 0x18b   : > { %p6680_p10 = por %p527_p9, %p67_p13  ;;  %s4413_s30 = sshll.u32 %s6678_s20, 6 }
 0x18c   : > { %s7429_s22 = sshll.u32 %s6197_s27, 7  ;;  %s7475_s4 = sld [smem:[#allocation45_spill]] }
 0x18d   : > { %s7474_s19 = scalar_select %p6680_p10, 1, 0 }
 0x18e   : > { %s721_s1 = scalar_lea.vmem [#allocation6], %s4413_s30  ;;  %p6693_p11 = pnand %p5449_p4, %p63_p2 }
 0x18f   : > { %s727_s2 = sshll.u32 %s721_s1, 4  ;;  %s718_s7 = scalar_lea.sflag [#allocation7], %s6678_s20  ;;  %s6697_s2 = int_to_ptr.vmem [resolvable:$true] %s727_s2 }
 0x190   : > { %p6041_p8 = pneg %p6693_p11 }
 0x192   : > { %s6691_s28 = scalar_lea.hbm %s7475_s4, %s7429_s22  ;;  %s6044_s29 = scalar_lea.hbm %s7475_s4, 2048 }
 0x193   : > { %s6039_s8 = scalar_lea.hbm %s6691_s28, 1024  ;;  %p6045_p13 = scmp.lt.u32.totalorder %s6691_s28, %s7475_s4 }
 0x194   : > { %p6040_p12 = scmp.ne.s32.totalorder %s6691_s28, %s6039_s8  ;;  %p6046_p0 = scmp.lt.u32.totalorder %s6044_s29, %s6039_s8 }
 0x195   : > { %p6048_p5 = scmp.lt.u32.totalorder %s6039_s8, %s6691_s28 }
 0x196   : > { %p6042_p1 = pnand %p6041_p8, %p6040_p12  ;;  %p6047_p2 = por %p6046_p0, %p6045_p13 }
 0x198   : > { %p6043_p3 = pneg %p6042_p1  ;;  %p6049_p9 = por %p6048_p5, %p6047_p2 }
 0x19a   : > { %p6050_p4 = pnand %p6049_p9, %p6043_p3 }
 0x19c   : > { %6053 = shalt.err (!%p6050_p4)
}
 0x19d   : > { %s6054_s18 = scalar_lea.vmem %s6697_s2, 1024  ;;  %s6214_s30 = smov [#allocation6]  }
 0x19e   : > { %p6055_p12 = scmp.ne.s32.totalorder %s6697_s2, %s6054_s18  ;;  %s6059_s6 = sshll.u32 %s6214_s30, 4  ;;  %s6060_s6 = int_to_ptr.vmem [resolvable:$false] %s6059_s6 }
 0x19f   : > { %s6061_s22 = scalar_lea.vmem %s6060_s6, 2048  ;;  %p6062_p7 = scmp.lt.s32.totalorder %s6697_s2, %s6060_s6 }
 0x1a0   : > { %p6057_p1 = pnand %p6055_p12, %p6041_p8  ;;  %p6063_p13 = scmp.lt.s32.totalorder %s6061_s22, %s6054_s18 }
 0x1a2   : > { %p6058_p10 = pneg %p6057_p1  ;;  %p6064_p0 = por %p6063_p13, %p6062_p7 }
 0x1a4   : > { %p6065_p2 = pnand %p6064_p0, %p6058_p10 }
 0x1a6   : > { %6068 = shalt.err (!%p6065_p2)
}
 0x1a7   : > { %s6215_s8 = smov 256   ;;  %s7477_s29 = smov 8  }
 0x1a8   : > { %5428 = dma.hbm_to_vmem [thread:$0]  (!%p6693_p11), %s6691_s28, 1024, %s6697_s2, %s718_s7, %s6215_s8, %s7466_s24, %s7477_s29  }
 0x1a9   : > { %s4415_s1 = sshll.u32 %s6678_s20, 3  ;;  %s7478_s30 = sshll.u32 %s6197_s27, 7 }
 0x1aa   : > { %s7479_s22 = sld [smem:[#allocation46_spill]]  ;;  %s741_s9 = scalar_lea.vmem [#allocation9], %s4415_s1 }
 0x1ab   : > { %s748_s10 = sshll.u32 %s741_s9, 4  ;;  %s7480_s11 = sand.u32 1, %s6197_s27   ;;  %s749_s10 = int_to_ptr.vmem [resolvable:$true] %s748_s10 }
 0x1ac   : > { %s738_s12 = scalar_lea.sflag [#allocation10], %s7480_s11 }
 0x1b0   : > { %s6736_s4 = scalar_lea.hbm %s7479_s22, %s7478_s30  ;;  %s6074_s20 = scalar_lea.hbm %s7479_s22, 256 }
 0x1b1   : > { %s6069_s13 = scalar_lea.hbm %s6736_s4, 128  ;;  %p6075_p5 = scmp.lt.u32.totalorder %s6736_s4, %s7479_s22 }
 0x1b2   : > { %p6070_p7 = scmp.ne.s32.totalorder %s6736_s4, %s6069_s13  ;;  %p6076_p9 = scmp.lt.u32.totalorder %s6074_s20, %s6069_s13 }
 0x1b3   : > { %p6078_p12 = scmp.lt.u32.totalorder %s6069_s13, %s6736_s4 }
 0x1b4   : > { %p6072_p10 = pnand %p6070_p7, %p6041_p8  ;;  %p6077_p4 = por %p6076_p9, %p6075_p5 }
 0x1b6   : > { %p6073_p3 = pneg %p6072_p10  ;;  %p6079_p1 = por %p6078_p12, %p6077_p4 }
 0x1b8   : > { %p6080_p13 = pnand %p6079_p1, %p6073_p3 }
 0x1ba   : > { %6083 = shalt.err (!%p6080_p13)
}
 0x1bb   : > { %s6084_s9 = scalar_lea.vmem %s749_s10, 128  ;;  %s6216_s11 = smov [#allocation9]  }
 0x1bc   : > { %p6085_p0 = scmp.ne.s32.totalorder %s749_s10, %s6084_s9  ;;  %s6089_s8 = sshll.u32 %s6216_s11, 4  ;;  %s6090_s8 = int_to_ptr.vmem [resolvable:$false] %s6089_s8 }
 0x1bd   : > { %s6091_s29 = scalar_lea.vmem %s6090_s8, 256  ;;  %p6092_p10 = scmp.lt.s32.totalorder %s749_s10, %s6090_s8 }
 0x1be   : > { %p6087_p2 = pnand %p6085_p0, %p6041_p8  ;;  %p6093_p6 = scmp.lt.s32.totalorder %s6091_s29, %s6084_s9 }
 0x1c0   : > { %p6088_p7 = pneg %p6087_p2  ;;  %p6094_p5 = por %p6093_p6, %p6092_p10 }
 0x1c2   : > { %p6095_p9 = pnand %p6094_p5, %p6088_p7 }
 0x1c4   : > { %6098 = shalt.err (!%p6095_p9)
}
 0x1c5   : > { %5431 = dma.hbm_to_vmem [thread:$0]  (!%p6693_p11), %s6736_s4, 128, %s749_s10, %s738_s12  }
 0x1c6   : > { %s7481_s13 = sld [smem:[#allocation44_spill]] }
 0x1cc   : > { %p7482_p3 = scmp.ne.s32.totalorder %s7481_s13, 0 }
 0x1cd   : > { %s6762_s1 = sand.u32 (!%p7482_p3), 1, %s6189_s25   ;;  %p7483_p6 = scmp.ne.s32.totalorder (!%p7482_p3), %s7472_s0, 0 }
 0x1ce   : > { %757 = sbr.rel (%p7482_p3) target bundleno = 3883 (0xf2b), region = 100  ;;  %s4418_s30 = sshll.u32 (!%p7482_p3), %s6762_s1, 6 }
 0x1cf   : > { %s760_s18 = scalar_lea.sflag (!%p7482_p3), [#allocation7], %s6762_s1  ;;  %s6768_s6 = scalar_lea.vmem (!%p7482_p3), [#allocation6], %s4418_s30 }
 0x1d5   : > { %6144 = dma.done.wait (%p7483_p6), %s760_s18, 1024  }
 0x1d6   : > { %6146 = vsyncadd (%p7483_p6), %s760_s18, 4294966272  ;;  %s7484_s10 = sld [smem:[#allocation43_spill]]  ;;  %s4419_s4 = sshll.u32 %s6762_s1, 3 }
 0x1d7   : > { %s6778_s7 = scalar_lea.vmem [#allocation9], %s4419_s4 }
 0x1dc   : > { %s768_s12 = sand.u32 1, %s7484_s10  }
 0x1dd   : > { %s769_s23 = scalar_lea.sflag [#allocation10], %s768_s12 }
 0x1de   : > { %6148 = dma.done.wait (%p7483_p6), %s769_s23, 128  }
 0x1df   : > { %6150 = vsyncadd (%p7483_p6), %s769_s23, 4294967168  ;;  %p7485_p11 = scmp.eq.s32.totalorder %s7484_s10, 0 }
 0x1e1   : > { %6152 = dma.done.wait (%p7485_p11), [#allocation10], 256   ;;  %p7486_p8 = pmov %p7485_p11 }
 0x1e3   : > { %6154 = vsyncadd (%p7486_p8), [#allocation10], 4294967040  ;;  %p7487_p4 = pmov %p7486_p8 }
 0x1e5   : > { %6156 = dma.done.wait (%p7487_p4), [#allocation13], 32   ;;  %p7488_p12 = pmov %p7487_p4 }
 0x1e6   : > { %p7489_p1 = pmov %p7487_p4 }
 0x1e7   : > { %6158 = vsyncadd (%p7488_p12), [#allocation13], 4294967264 }
 0x1e8   : > { %6160 = dma.done.wait (%p7489_p1), [#allocation16], 1024   ;;  %p7490_p13 = pmov %p7489_p1 }
 0x1e9   : > { %p7491_p0 = pmov %p7489_p1 }
 0x1ea   : > { %6162 = vsyncadd (%p7490_p13), [#allocation16], 4294966272 }
 0x1eb   : > { %6164 = dma.done.wait (%p7491_p0), [#allocation19], 1024   ;;  %p7492_p2 = pmov %p7491_p0 }
 0x1ec   : > { %p7493_p7 = pmov %p7491_p0 }
 0x1ed   : > { %6166 = vsyncadd (%p7492_p2), [#allocation19], 4294966272 }
 0x1ee   : > { %6168 = dma.done.wait (%p7493_p7), [#allocation22], 528   ;;  %p7494_p10 = pmov %p7491_p0 }
 0x1ef   : > { %p7495_p5 = pmov %p7491_p0 }
 0x1f0   : > { %6170 = vsyncadd (%p7494_p10), [#allocation22], 4294966768 }
 0x1f1   : > { %6172 = dma.done.wait (%p7495_p5), [#allocation25], 32   ;;  %p7496_p9 = pmov %p7491_p0 }
 0x1f2   : > { %p7497_p3 = pmov %p7491_p0 }
 0x1f3   : > { %6174 = vsyncadd (%p7496_p9), [#allocation25], 4294967264 }
 0x1f4   : > { %6176 = dma.done.wait (%p7497_p3), [#allocation28], 32   ;;  %p7498_p6 = pmov %p7491_p0 }
 0x1f5   : > { %vm909_vm0 = vcmask 130048   ;;  %v900_v0 = vld [vmem:[#allocation11] sm:$0xff]  ;;  %v901_v1 = vld [vmem:[#allocation11 + $0x8] sm:$0xff]  ;;  %v892_v2 = vld [vmem:[%s6768_s6] sm:$0xff]  ;;  %s7499_s20 = sld [smem:[#allocation49_spill]]  ;;  %vm1074_vm3 = vcmask 261120  }
 0x1f6   : > { %6178 = vsyncadd (%p7498_p6), [#allocation28], 4294967264  ;;  %v5131_v3 = vpack.c.bf16 %v901_v1, %v900_v0  ;;  %4735 = vmatprep.mubr.msk.f32.mxu0 %vm909_vm0, %v892_v2  ;;  %v893_v4 = vld [vmem:[%s6768_s6 + $0x8] sm:$0xff]  ;;  %v894_v5 = vld [vmem:[%s6768_s6 + $0x10] sm:$0xff]  ;;  %v6217_v62 = vmov 0.0|0.0   ;;  %s7501_s9 = sld [smem:[#allocation59_spill]] }
 0x1f7   : > { %v895_v6 = vld [vmem:[%s6768_s6 + $0x18] sm:$0xff]  ;;  %v896_v7 = vld [vmem:[%s6768_s6 + $0x20] sm:$0xff]  ;;  %v897_v8 = vld [vmem:[%s6768_s6 + $0x28] sm:$0xff]  ;;  %s7502_s0 = sld [smem:[#allocation60_spill]]  ;;  %s7174_s29 = scalar_lea.vmem [#allocation31], %s4419_s4 }
 0x1f8   : > { %5132 = vmatprep.subr.bf16.mxu0 %v5131_v3  ;;  %v898_v9 = vld [vmem:[%s6768_s6 + $0x30] sm:$0xff]  ;;  %v899_v10 = vld [vmem:[%s6768_s6 + $0x38] sm:$0xff]  ;;  %s7500_s6 = sld [smem:[#allocation52_spill]]  ;;  %v1228_v19 = vld [vmem:[#allocation15] sm:$0xff]  ;;  %s7503_s10 = sld [smem:[#allocation61_spill]] }
 0x1f9   : > { %5134 = vmatpush3.bf16.msra.mxu0 %v5131_v3  ;;  %v1229_v21 = vld [vmem:[#allocation15 + $0x8] sm:$0xff]  ;;  %v4435_v23 = vld [vmem:[#allocation12] ss:$0 sm:$0xff]  ;;  %v1230_v59 = vld [vmem:[#allocation15 + $0x10] sm:$0xff]  ;;  %s7307_s4 = scalar_lea.vmem [#allocation30], %s4418_s30  ;;  %s4075_s30 = scalar_lea.sflag [#allocation8], %s6762_s1 }
 0x1fa   : > { %v5143_v22 = vpack.c.bf16 %v1229_v21, %v1228_v19  ;;  %v1231_v60 = vld [vmem:[#allocation15 + $0x18] sm:$0xff]  ;;  %v1500_v63 = vld [vmem:[#allocation17] sm:$0xff]  ;;  %v1501_v0 = vld [vmem:[#allocation17 + $0x8] sm:$0xff]  ;;  %p7504_p11 = scmp.ne.s32.totalorder %s7473_s3, 0 }
 0x1fb   : > { %v1063_v11 = vld [vmem:[%s7499_s20] sm:$0xff]  ;;  %v1064_v12 = vld [vmem:[%s7499_s20 + $0x8] sm:$0xff]  ;;  %v1065_v14 = vld [vmem:[%s7499_s20 + $0x10] sm:$0xff]  ;;  %v5147_v61 = vpack.c.bf16 %v1231_v60, %v1230_v59  ;;  %v5159_v1 = vpack.c.bf16 %v1501_v0, %v1500_v63  ;;  %s7505_s12 = sld [smem:[#allocation43_spill]] (%p7504_p11) }
 0x1fc   : > { %4736 = vmatmul.mubr.msk.f32.vlgmr.msra.gmra.mrb[0].mxu0 %vm909_vm0, %v893_v4  ;;  %v5135_v13 = vpack.c.bf16 %v1064_v12, %v1063_v11  ;;  %v1066_v15 = vld [vmem:[%s7499_s20 + $0x18] sm:$0xff]  ;;  %5144 = vmatprep.subr.bf16.mxu0 %v5143_v22  ;;  %v4444_v2 = vld [vmem:[#allocation14] ss:$0 sm:$0xff]  ;;  %v4462_v59 = vld [vmem:[#allocation24] ss:$0 sm:$0xff] }
 0x1fd   : > { %4738 = vmatprep.mubr.msk.f32.mxu0 %vm909_vm0, %v894_v5  ;;  %v5139_v16 = vpack.c.bf16 %v1066_v15, %v1065_v14  ;;  %5146 = vmatpush3.bf16.msra.mxu0 %v5143_v22  ;;  %v1503_v11 = vld [vmem:[#allocation17 + $0x18] sm:$0xff]  ;;  %v1626_v19 = vld [vmem:[#allocation18 + $0x10] sm:$0xff] }
 0x1fe   : > { %5136 = vmatprep.subr.bf16.mxu1 %v5135_v13  ;;  %v1376_v17 = vld [vmem:[%s7500_s6] sm:$0xff]  ;;  %v1377_v18 = vld [vmem:[%s7500_s6 + $0x8] sm:$0xff]  ;;  %v1378_v29 = vld [vmem:[%s7500_s6 + $0x10] sm:$0xff]  ;;  %5148 = vmatprep.subr.bf16.mxu0 %v5147_v61 }
 0x1ff   : > { %5138 = vmatpush3.bf16.msra.mxu1 %v5135_v13  ;;  %v5151_v20 = vpack.c.bf16 %v1377_v18, %v1376_v17  ;;  %v1379_v30 = vld [vmem:[%s7500_s6 + $0x18] sm:$0xff] }
 0x200   : > { %4739 = vmatmul.mubr.msk.f32.gmra.mrb[2].mxu0 %vm909_vm0, %v895_v6  ;;  %5140 = vmatprep.subr.bf16.mxu1 %v5139_v16  ;;  %v5155_v37 = vpack.c.bf16 %v1379_v30, %v1378_v29 }
 0x201   : > { %4741 = vmatprep.mubr.msk.f32.mxu0 %vm909_vm0, %v896_v7  ;;  %5150 = vmatpush3.bf16.msra.mxu0 %v5147_v61  ;;  %v1624_v7 = vld [vmem:[#allocation18] sm:$0xff]  ;;  %s4525_s23 = sshll.u32 (%p7504_p11), %s7505_s12, 3 }
 0x202   : > { %5160 = vmatprep.subr.bf16.mxu0 %v5159_v1 }
 0x203   : > { %5142 = vmatpush3.bf16.msra.mxu1 %v5139_v16 }
 0x204   : > { %4742 = vmatmul.mubr.msk.f32.gmra.mrb[4].mxu0 %vm909_vm0, %v897_v8  ;;  %5152 = vmatprep.subr.bf16.mxu1 %v5151_v20  ;;  %v1625_v8 = vld [vmem:[#allocation18 + $0x8] sm:$0xff] }
 0x205   : > { %4744 = vmatprep.mubr.msk.f32.mxu0 %vm909_vm0, %v898_v9  ;;  %v6861_v16 = vpack.c.bf16 %v1625_v8, %v1624_v7 }
 0x208   : > { %4745 = vmatmul.mubr.msk.f32.gmra.mrb[6].mxu0 %vm909_vm0, %v899_v10  ;;  %v1502_v10 = vld [vmem:[#allocation17 + $0x10] sm:$0xff] }
 0x209   : > { %v5163_v21 = vpack.c.bf16 %v1503_v11, %v1502_v10 }
 0x2cf   : > { %v4737_v24 = vpop.f32.mrb[0].mxu0 }
 0x2d0   : > { %v1006_v25 = vadd.f32 %v4737_v24, %v4435_v23  ;;  %v1000_v26 = vpop.f32.mrb[1].mxu0 }
 0x2d1   : > { %v1001_v27 = vadd.f32 %v4435_v23, %v1000_v26 }
 0x2d2   : > { %v1048_v28 = vmul.f32 0.01, %v1006_v25  ;;  %vm1040_vm1 = vcmp.gt.f32.partialorder %v1006_v25, 0.0 }
 0x2d3   : > { %v4740_v31 = vpop.f32.mrb[2].mxu0  ;;  %vm1039_vm2 = vcmp.gt.f32.partialorder %v1001_v27, 0.0  ;;  %v1047_v32 = vmul.f32 0.01, %v1001_v27 }
 0x2d4   : > { %v1016_v33 = vadd.f32 %v4740_v31, %v4435_v23  ;;  %v1010_v34 = vpop.f32.mrb[3].mxu0  ;;  %v1056_v39 = vsel %vm1040_vm1, %v1006_v25, %v1048_v28 }
 0x2d5   : > { %v1011_v35 = vadd.f32 %v4435_v23, %v1010_v34  ;;  %v1055_v36 = vsel %vm1039_vm2, %v1001_v27, %v1047_v32  ;;  %vm6218_vm2 = vmmov 0  }
 0x2d6   : > { %v1050_v38 = vmul.f32 0.01, %v1016_v33  ;;  %4755 = vmatprep.mubr.msk.f32.mxu1 %vm1074_vm3, %v1055_v36  ;;  %vm1042_vm4 = vcmp.gt.f32.partialorder %v1016_v33, 0.0 }
 0x2d7   : > { %vm1041_vm5 = vcmp.gt.f32.partialorder %v1011_v35, 0.0  ;;  %v1049_v40 = vmul.f32 0.01, %v1011_v35  ;;  %v4743_v41 = vpop.f32.mrb[4].mxu0  ;;  %4756 = vmatmul.mubr.msk.f32.vlgmr.msra.gmra.mrb[0].mxu1 %vm1074_vm3, %v1056_v39 }
 0x2d8   : > { %v1026_v42 = vadd.f32 %v4743_v41, %v4435_v23  ;;  %v1020_v43 = vpop.f32.mrb[5].mxu0  ;;  %5154 = vmatpush3.bf16.msra.mxu1 %v5151_v20  ;;  %v1058_v47 = vsel %vm1042_vm4, %v1016_v33, %v1050_v38  ;;  %v1627_v20 = vld [vmem:[#allocation18 + $0x18] sm:$0xff] }
 0x2d9   : > { %v1021_v44 = vadd.f32 %v4435_v23, %v1020_v43  ;;  %v1057_v45 = vsel %vm1041_vm5, %v1011_v35, %v1049_v40  ;;  %5156 = vmatprep.subr.bf16.mxu1 %v5155_v37  ;;  %v6872_v28 = vpack.c.bf16 %v1627_v20, %v1626_v19  ;;  %v1628_v43 = vld [vmem:[#allocation20] sm:$0xff] }
 0x2da   : > { %v1052_v46 = vmul.f32 0.01, %v1026_v42  ;;  %4758 = vmatprep.mubr.msk.f32.mxu1 %vm1074_vm3, %v1057_v45  ;;  %vm1044_vm6 = vcmp.gt.f32.partialorder %v1026_v42, 0.0 }
 0x2db   : > { %vm1043_vm7 = vcmp.gt.f32.partialorder %v1021_v44, 0.0  ;;  %v1051_v48 = vmul.f32 0.01, %v1021_v44  ;;  %v4746_v49 = vpop.f32.mrb[6].mxu0  ;;  %4759 = vmatmul.mubr.msk.f32.gmra.mrb[2].mxu1 %vm1074_vm3, %v1058_v47  ;;  %v1633_v47 = vld [vmem:[#allocation21 + $0x8] sm:$0xff] }
 0x2dc   : > { %v1036_v50 = vadd.f32 %v4746_v49, %v4435_v23  ;;  %v1030_v51 = vpop.f32.mrb[7].mxu0  ;;  %5158 = vmatpush3.bf16.msra.mxu1 %v5155_v37  ;;  %v1060_v55 = vsel %vm1044_vm6, %v1026_v42, %v1052_v46  ;;  %v1632_v46 = vld [vmem:[#allocation21] sm:$0xff] }
 0x2dd   : > { %v1031_v52 = vadd.f32 %v4435_v23, %v1030_v51  ;;  %v1059_v53 = vsel %vm1043_vm7, %v1021_v44, %v1051_v48  ;;  %5167 = vmatprep.subr.bf16.mxu1 %v6217_v62  ;;  %v1629_v44 = vld [vmem:[#allocation20 + $0x8] sm:$0xff]  ;;  %v6219_v48 = vmov 0.0   ;;  %v1630_v51 = vld [vmem:[#allocation20 + $0x10] sm:$0xff] }
 0x2de   : > { %v1054_v54 = vmul.f32 0.01, %v1036_v50  ;;  %4761 = vmatprep.mubr.msk.f32.mxu1 %vm1074_vm3, %v1059_v53  ;;  %vm1046_vm8 = vcmp.gt.f32.partialorder %v1036_v50, 0.0  ;;  %v6896_v49 = vld [vmem:[%s6778_s7] sm:$0xff]  ;;  %v6900_v53 = vpack.c.bf16 %v1633_v47, %v1632_v46  ;;  %s7506_s7 = sld [smem:[#allocation62_spill]] (%p7504_p11) }
 0x2df   : > { %vm1045_vm9 = vcmp.gt.f32.partialorder %v1031_v52, 0.0  ;;  %v1053_v56 = vmul.f32 0.01, %v1031_v52  ;;  %4762 = vmatmul.mubr.msk.f32.gmra.mrb[4].mxu1 %vm1074_vm3, %v1060_v55  ;;  %v1635_v55 = vld [vmem:[#allocation21 + $0x18] sm:$0xff] }
 0x2e0   : > { %v1062_v58 = vsel %vm1046_vm8, %v1036_v50, %v1054_v54  ;;  %v6898_v50 = vpack.c.bf16 %v1629_v44, %v1628_v43  ;;  %v1634_v54 = vld [vmem:[#allocation21 + $0x10] sm:$0xff] }
 0x2e1   : > { %v1061_v57 = vsel %vm1045_vm9, %v1031_v52, %v1053_v56  ;;  %v1631_v52 = vld [vmem:[#allocation20 + $0x18] sm:$0xff] }
 0x2e2   : > { %4764 = vmatprep.mubr.msk.f32.mxu1 %vm1074_vm3, %v1061_v57  ;;  %v6908_v56 = vpack.c.bf16 %v1631_v52, %v1630_v51  ;;  %v6914_v57 = vpack.c.bf16 %v1635_v55, %v1634_v54 }
 0x2e3   : > { %4765 = vmatmul.mubr.msk.f32.gmra.mrb[6].mxu1 %vm1074_vm3, %v1062_v58  ;;  %v4453_v58 = vld [vmem:[#allocation23] ss:$0 sm:$0xff] }
 0x2e4   : > { %s4083_s2 = scalar_lea.vmem (%p7504_p11), %s7506_s7, %s4525_s23 }
 0x3aa   : > { %v4757_v3 = vpop.f32.mrb[0].mxu1 }
 0x3ab   : > { %v1171_v4 = vadd.f32 %v4757_v3, %v4444_v2  ;;  %v1165_v5 = vpop.f32.mrb[1].mxu1 }
 0x3ac   : > { %v1166_v6 = vadd.f32 %v4444_v2, %v1165_v5 }
 0x3ad   : > { %v1213_v9 = vmul.f32 0.01, %v1171_v4  ;;  %vm1205_vm10 = vcmp.gt.f32.partialorder %v1171_v4, 0.0 }
 0x3ae   : > { %vm1204_vm11 = vcmp.gt.f32.partialorder %v1166_v6, 0.0  ;;  %v1212_v12 = vmul.f32 0.01, %v1166_v6  ;;  %v4760_v13 = vpop.f32.mrb[2].mxu1 }
 0x3af   : > { %v1181_v14 = vadd.f32 %v4760_v13, %v4444_v2  ;;  %v1175_v15 = vpop.f32.mrb[3].mxu1  ;;  %v6863_v22 = vsel %vm1205_vm10, %v1171_v4, %v1213_v9  ;;  %vm3861_vm10 = vcmask 48128  }
 0x3b0   : > { %v1176_v17 = vadd.f32 %v4444_v2, %v1175_v15  ;;  %v1220_v18 = vsel %vm1204_vm11, %v1166_v6, %v1212_v12 }
 0x3b1   : > { %v1215_v23 = vmul.f32 0.01, %v1181_v14  ;;  %4775 = vmatprep.mubr.msk.f32.mxu0 %vm1074_vm3, %v1220_v18  ;;  %4795 = vmatprep.mubr.msk.f32.mxu1 %vm1074_vm3, %v1220_v18  ;;  %vm1207_vm12 = vcmp.gt.f32.partialorder %v1181_v14, 0.0 }
 0x3b2   : > { %vm1206_vm13 = vcmp.gt.f32.partialorder %v1176_v17, 0.0  ;;  %v1214_v24 = vmul.f32 0.01, %v1176_v17  ;;  %v4763_v25 = vpop.f32.mrb[4].mxu1  ;;  %4776 = vmatmul.mubr.msk.f32.vlgmr.msra.gmra.mrb[8].mxu0 %vm1074_vm3, %v6863_v22  ;;  %4796 = vmatmul.mubr.msk.f32.vlgmr.msra.gmra.mrb[8].mxu1 %vm1074_vm3, %v6863_v22 }
 0x3b3   : > { %v1191_v26 = vadd.f32 %v4763_v25, %v4444_v2  ;;  %5169 = vmatpush3.bf16.msra.mxu1 %v6861_v16  ;;  %v1185_v27 = vpop.f32.mrb[5].mxu1  ;;  %5162 = vmatpush3.bf16.msra.mxu0 %v5159_v1  ;;  %v1223_v32 = vsel %vm1207_vm12, %v1181_v14, %v1215_v23 }
 0x3b4   : > { %v1186_v29 = vadd.f32 %v4444_v2, %v1185_v27  ;;  %v1222_v30 = vsel %vm1206_vm13, %v1176_v17, %v1214_v24  ;;  %5170 = vmatprep.subr.bf16.mxu1 %v6217_v62  ;;  %5164 = vmatprep.subr.bf16.mxu0 %v5163_v21 }
 0x3b5   : > { %v1217_v31 = vmul.f32 0.01, %v1191_v26  ;;  %4778 = vmatprep.mubr.msk.f32.mxu0 %vm1074_vm3, %v1222_v30  ;;  %4798 = vmatprep.mubr.msk.f32.mxu1 %vm1074_vm3, %v1222_v30  ;;  %vm1209_vm14 = vcmp.gt.f32.partialorder %v1191_v26, 0.0 }
 0x3b6   : > { %vm1208_vm15 = vcmp.gt.f32.partialorder %v1186_v29, 0.0  ;;  %v1216_v33 = vmul.f32 0.01, %v1186_v29  ;;  %v4766_v34 = vpop.f32.mrb[6].mxu1  ;;  %4779 = vmatmul.mubr.msk.f32.gmra.mrb[10].mxu0 %vm1074_vm3, %v1223_v32  ;;  %4799 = vmatmul.mubr.msk.f32.gmra.mrb[10].mxu1 %vm1074_vm3, %v1223_v32 }
 0x3b7   : > { %v1201_v35 = vadd.f32 %v4766_v34, %v4444_v2  ;;  %v1195_v36 = vpop.f32.mrb[7].mxu1  ;;  %5172 = vmatpush3.bf16.msra.mxu1 %v6872_v28  ;;  %5166 = vmatpush3.bf16.msra.mxu0 %v5163_v21  ;;  %v1225_v40 = vsel %vm1209_vm14, %v1191_v26, %v1217_v31  ;;  %v4471_v31 = vld [vmem:[#allocation26] ss:$0 sm:$0xff] }
 0x3b8   : > { %v1196_v37 = vadd.f32 %v4444_v2, %v1195_v36  ;;  %v1224_v38 = vsel %vm1208_vm15, %v1186_v29, %v1216_v33  ;;  %5173 = vmatprep.subr.bf16.mxu1 %v6217_v62  ;;  %5179 = vmatprep.subr.bf16.mxu0 %v6217_v62 }
 0x3b9   : > { %v1219_v39 = vmul.f32 0.01, %v1201_v35  ;;  %4781 = vmatprep.mubr.msk.f32.mxu0 %vm1074_vm3, %v1224_v38  ;;  %4801 = vmatprep.mubr.msk.f32.mxu1 %vm1074_vm3, %v1224_v38  ;;  %vm1211_vm0 = vcmp.gt.f32.partialorder %v1201_v35, 0.0 }
 0x3ba   : > { %vm1210_vm1 = vcmp.gt.f32.partialorder %v1196_v37, 0.0  ;;  %v1218_v41 = vmul.f32 0.01, %v1196_v37  ;;  %4782 = vmatmul.mubr.msk.f32.gmra.mrb[12].mxu0 %vm1074_vm3, %v1225_v40  ;;  %4802 = vmatmul.mubr.msk.f32.gmra.mrb[12].mxu1 %vm1074_vm3, %v1225_v40 }
 0x3bb   : > { %v1227_v45 = vsel %vm1211_vm0, %v1201_v35, %v1219_v39 }
 0x3bc   : > { %v1226_v42 = vsel %vm1210_vm1, %v1196_v37, %v1218_v41 }
 0x3bd   : > { %4784 = vmatprep.mubr.msk.f32.mxu0 %vm1074_vm3, %v1226_v42  ;;  %4804 = vmatprep.mubr.msk.f32.mxu1 %vm1074_vm3, %v1226_v42 }
 0x3be   : > { %4785 = vmatmul.mubr.msk.f32.gmra.mrb[14].mxu0 %vm1074_vm3, %v1227_v45  ;;  %4805 = vmatmul.mubr.msk.f32.gmra.mrb[14].mxu1 %vm1074_vm3, %v1227_v45 }
 0x3bf   : > { %4815 = vmatprep.mubr.msk.f32.mxu0 %vm1074_vm3, %v1220_v18  ;;  %4835 = vmatprep.mubr.msk.f32.mxu1 %vm6218_vm2, %v6219_v48 }
 0x3c2   : > { %4816 = vmatmul.mubr.msk.f32.vlgmr.msra.gmra.mrb[16].mxu0 %vm1074_vm3, %v6863_v22  ;;  %4836 = vmatmul.mubr.msk.f32.vlgmr.msra.gmra.mrb[16].mxu1 %vm1074_vm3, %v6896_v49 }
 0x3c3   : > { %5175 = vmatpush3.bf16.msra.mxu1 %v6898_v50  ;;  %4818 = vmatprep.mubr.msk.f32.mxu0 %vm1074_vm3, %v1222_v30 }
 0x3c4   : > { %5176 = vmatprep.subr.bf16.mxu1 %v6217_v62  ;;  %4846 = vmatprep.mubr.msk.f32.mxu1 %vm6218_vm2, %v6219_v48 }
 0x3c5   : > { %5181 = vmatpush3.bf16.msra.mxu0 %v6900_v53 }
 0x3c6   : > { %4819 = vmatmul.mubr.msk.f32.gmra.mrb[18].mxu0 %vm1074_vm3, %v1223_v32  ;;  %5182 = vmatprep.subr.bf16.mxu0 %v6217_v62 }
 0x3c7   : > { %5178 = vmatpush3.bf16.msra.mxu1 %v6908_v56  ;;  %4821 = vmatprep.mubr.msk.f32.mxu0 %vm1074_vm3, %v1224_v38 }
 0x3c8   : > { %5185 = vmatprep.subr.bf16.mxu1 %v6217_v62 }
 0x3c9   : > { %5184 = vmatpush3.bf16.msra.mxu0 %v6914_v57 }
 0x3ca   : > { %4847 = vmatmul.mubr.msk.f32.vlgmr.msra.gmra.mrb[18].mxu1 %vm1074_vm3, %v6896_v49  ;;  %4822 = vmatmul.mubr.msk.f32.gmra.mrb[20].mxu0 %vm1074_vm3, %v1225_v40 }
 0x3cb   : > { %4824 = vmatprep.mubr.msk.f32.mxu0 %vm1074_vm3, %v1226_v42  ;;  %5187 = vmatpush3.bf16.msra.mxu1 %v6861_v16 }
 0x3cc   : > { %5191 = vmatprep.subr.bf16.mxu0 %v6217_v62  ;;  %5188 = vmatprep.subr.bf16.mxu1 %v6217_v62 }
 0x3cd   : > { %4868 = vmatprep.mubr.msk.f32.mxu1 %vm6218_vm2, %v6219_v48 }
 0x3ce   : > { %4825 = vmatmul.mubr.msk.f32.gmra.mrb[22].mxu0 %vm1074_vm3, %v1227_v45 }
 0x3cf   : > { %4857 = vmatprep.mubr.msk.f32.mxu0 %vm6218_vm2, %v6219_v48  ;;  %5190 = vmatpush3.bf16.msra.mxu1 %v6872_v28 }
 0x3d0   : > { %5197 = vmatprep.subr.bf16.mxu1 %v6217_v62 }
 0x3d2   : > { %4858 = vmatmul.mubr.msk.f32.vlgmr.msra.gmra.mrb[24].mxu0 %vm1074_vm3, %v6896_v49 }
 0x3d3   : > { %5193 = vmatpush3.bf16.msra.mxu0 %v6898_v50  ;;  %4879 = vmatprep.mubr.msk.f32.mxu0 %vm6218_vm2, %v6219_v48 }
 0x3d4   : > { %5194 = vmatprep.subr.bf16.mxu0 %v6217_v62 }
 0x3d7   : > { %5196 = vmatpush3.bf16.msra.mxu0 %v6908_v56 }
 0x3d8   : > { %5203 = vmatprep.subr.bf16.mxu0 %v6217_v62 }
 0x485   : > { %v4777_v60 = vpop.f32.mrb[8].mxu0  ;;  %v4797_v61 = vpop.f32.mrb[8].mxu1 }
 0x486   : > { %v1335_v63 = vadd.f32 %v4777_v60, %v4453_v58  ;;  %v1459_v0 = vadd.f32 %v4797_v61, %v4462_v59  ;;  %v1329_v1 = vpop.f32.mrb[9].mxu0  ;;  %v1453_v2 = vpop.f32.mrb[9].mxu1 }
 0x487   : > { %v1330_v3 = vadd.f32 %v4453_v58, %v1329_v1  ;;  %v1454_v4 = vadd.f32 %v4462_v59, %v1453_v2 }
 0x488   : > { %1369 = vst.msk [vmem:[#allocation2 + $0x8] sm:$0xff] %vm1074_vm3, %v1335_v63  ;;  %1493 = vst.msk [vmem:[#allocation3 + $0x8] sm:$0xff] %vm1074_vm3, %v1459_v0 }
 0x489   : > { %1368 = vst.msk [vmem:[#allocation2] sm:$0xff] %vm1074_vm3, %v1330_v3  ;;  %1492 = vst.msk [vmem:[#allocation3] sm:$0xff] %vm1074_vm3, %v1454_v4  ;;  %v4780_v5 = vpop.f32.mrb[10].mxu0  ;;  %v4800_v6 = vpop.f32.mrb[10].mxu1 }
 0x48a   : > { %v1345_v7 = vadd.f32 %v4780_v5, %v4453_v58  ;;  %v1469_v8 = vadd.f32 %v4800_v6, %v4462_v59  ;;  %v1339_v9 = vpop.f32.mrb[11].mxu0  ;;  %v1463_v10 = vpop.f32.mrb[11].mxu1 }
 0x48b   : > { %v1340_v11 = vadd.f32 %v4453_v58, %v1339_v9  ;;  %v1464_v12 = vadd.f32 %v4462_v59, %v1463_v10 }
 0x48c   : > { %1371 = vst.msk [vmem:[#allocation2 + $0x18] sm:$0xff] %vm1074_vm3, %v1345_v7  ;;  %1495 = vst.msk [vmem:[#allocation3 + $0x18] sm:$0xff] %vm1074_vm3, %v1469_v8  ;;  %v6968_v7 = vld [vmem:[#allocation27] ss:$0 sm:$0xff] }
 0x48d   : > { %1370 = vst.msk [vmem:[#allocation2 + $0x10] sm:$0xff] %vm1074_vm3, %v1340_v11  ;;  %1494 = vst.msk [vmem:[#allocation3 + $0x10] sm:$0xff] %vm1074_vm3, %v1464_v12  ;;  %v4783_v13 = vpop.f32.mrb[12].mxu0  ;;  %v4803_v14 = vpop.f32.mrb[12].mxu1 }
 0x48e   : > { %v1355_v15 = vadd.f32 %v4783_v13, %v4453_v58  ;;  %v1479_v17 = vadd.f32 %v4803_v14, %v4462_v59  ;;  %v1349_v18 = vpop.f32.mrb[13].mxu0  ;;  %v1473_v19 = vpop.f32.mrb[13].mxu1 }
 0x48f   : > { %v1350_v20 = vadd.f32 %v4453_v58, %v1349_v18  ;;  %v1474_v21 = vadd.f32 %v4462_v59, %v1473_v19 }
 0x490   : > { %1373 = vst.msk [vmem:[#allocation2 + $0x28] sm:$0xff] %vm1074_vm3, %v1355_v15  ;;  %1497 = vst.msk [vmem:[#allocation3 + $0x28] sm:$0xff] %vm1074_vm3, %v1479_v17  ;;  %v1638_v33 = vld [vmem:[#allocation2] sm:$0xff] }
 0x491   : > { %1372 = vst.msk [vmem:[#allocation2 + $0x20] sm:$0xff] %vm1074_vm3, %v1350_v20  ;;  %1496 = vst.msk [vmem:[#allocation3 + $0x20] sm:$0xff] %vm1074_vm3, %v1474_v21  ;;  %v4786_v22 = vpop.f32.mrb[14].mxu0  ;;  %v4806_v23 = vpop.f32.mrb[14].mxu1  ;;  %v1719_v46 = vld [vmem:[#allocation3] sm:$0xff] }
 0x492   : > { %v1365_v24 = vadd.f32 %v4786_v22, %v4453_v58  ;;  %v1489_v25 = vadd.f32 %v4806_v23, %v4462_v59  ;;  %v1359_v26 = vpop.f32.mrb[15].mxu0  ;;  %v1483_v27 = vpop.f32.mrb[15].mxu1 }
 0x493   : > { %v1360_v29 = vadd.f32 %v4453_v58, %v1359_v26  ;;  %v1484_v30 = vadd.f32 %v4462_v59, %v1483_v27 }
 0x494   : > { %1375 = vst.msk [vmem:[#allocation2 + $0x38] sm:$0xff] %vm1074_vm3, %v1365_v24  ;;  %1499 = vst.msk [vmem:[#allocation3 + $0x38] sm:$0xff] %vm1074_vm3, %v1489_v25  ;;  %v1963_v25 = vld [vmem:[#allocation3 + $0x8] sm:$0xff] }
 0x495   : > { %1374 = vst.msk [vmem:[#allocation2 + $0x30] sm:$0xff] %vm1074_vm3, %v1360_v29  ;;  %1498 = vst.msk [vmem:[#allocation3 + $0x30] sm:$0xff] %vm1074_vm3, %v1484_v30  ;;  %v4817_v32 = vpop.f32.mrb[16].mxu0  ;;  %v1708_v34 = vpop.f32.mrb[16].mxu1 }
 0x496   : > { %v1583_v35 = vadd.f32 %v4817_v32, %v4471_v31  ;;  %v1712_v36 = vadd.f32 %v1708_v34, %v1638_v33  ;;  %v1577_v37 = vpop.f32.mrb[17].mxu0  ;;  %v4837_v38 = vpop.f32.mrb[17].mxu1 }
 0x497   : > { %v1578_v39 = vadd.f32 %v4471_v31, %v1577_v37 }
 0x498   : > { %1617 = vst.msk [vmem:[#allocation4 + $0x8] sm:$0xff] %vm1074_vm3, %v1583_v35  ;;  %v1713_v40 = vsub.f32 0.0, %v1712_v36 }
 0x499   : > { %1616 = vst.msk [vmem:[#allocation4] sm:$0xff] %vm1074_vm3, %v1578_v39  ;;  %v4820_v41 = vpop.f32.mrb[18].mxu0 }
 0x49a   : > { %v1714_v42 = vmul.f32 1.442695, %v1713_v40  ;;  %v1593_v43 = vadd.f32 %v4820_v41, %v4471_v31  ;;  %v1587_v44 = vpop.f32.mrb[19].mxu0 }
 0x49b   : > { %v1588_v45 = vadd.f32 %v4471_v31, %v1587_v44 }
 0x49c   : > { %5515 = vpow2.f32 %v1714_v42  ;;  %1619 = vst.msk [vmem:[#allocation4 + $0x18] sm:$0xff] %vm1074_vm3, %v1593_v43 }
 0x49d   : > { %1618 = vst.msk [vmem:[#allocation4 + $0x10] sm:$0xff] %vm1074_vm3, %v1588_v45  ;;  %v1786_v47 = vpop.f32.mrb[18].mxu1  ;;  %v4823_v51 = vpop.f32.mrb[20].mxu0 }
 0x49e   : > { %v1790_v52 = vadd.f32 %v1786_v47, %v1719_v46  ;;  %v1603_v54 = vadd.f32 %v4823_v51, %v4471_v31  ;;  %v1597_v55 = vpop.f32.mrb[21].mxu0  ;;  %v4848_v58 = vpop.f32.mrb[19].mxu1 }
 0x49f   : > { %v1598_v59 = vadd.f32 %v4471_v31, %v1597_v55  ;;  %v2041_v43 = vld [vmem:[#allocation4 + $0x8] sm:$0xff]  ;;  %v2120_v55 = vld [vmem:[#allocation2 + $0x10] sm:$0xff] }
 0x4a0   : > { %v1791_v60 = vsub.f32 0.0, %v1790_v52  ;;  %1621 = vst.msk [vmem:[#allocation4 + $0x28] sm:$0xff] %vm1074_vm3, %v1603_v54  ;;  %v1797_v13 = vld [vmem:[#allocation4] sm:$0xff] }
 0x4a1   : > { %1620 = vst.msk [vmem:[#allocation4 + $0x20] sm:$0xff] %vm1074_vm3, %v1598_v59  ;;  %v4826_v61 = vpop.f32.mrb[22].mxu0 }
 0x4a2   : > { %v1792_v63 = vmul.f32 1.442695, %v1791_v60  ;;  %v1613_v0 = vadd.f32 %v4826_v61, %v4471_v31  ;;  %v1607_v1 = vpop.f32.mrb[23].mxu0  ;;  %v2201_v61 = vld [vmem:[#allocation3 + $0x10] sm:$0xff] }
 0x4a3   : > { %v1608_v2 = vadd.f32 %v4471_v31, %v1607_v1 }
 0x4a4   : > { %5517 = vpow2.f32 %v1792_v63  ;;  %1623 = vst.msk [vmem:[#allocation4 + $0x38] sm:$0xff] %vm1074_vm3, %v1613_v0 }
 0x4a5   : > { %1622 = vst.msk [vmem:[#allocation4 + $0x30] sm:$0xff] %vm1074_vm3, %v1608_v2  ;;  %v1870_v3 = vpop.f32.mrb[24].mxu0 }
 0x4a6   : > { %v5516_v4 = vpop.eup %5515  ;;  %v4859_v5 = vpop.f32.mrb[25].mxu0  ;;  %v1871_v10 = vadd.f32 %v6968_v7, %v1870_v3 }
 0x4a7   : > { %v1716_v6 = vadd.f32 1.0, %v5516_v4 }
 0x4a9   : > { %5519 = vrcp.f32 %v1716_v6 }
 0x4ae   : > { %v5518_v8 = vpop.eup %5517 }
 0x4af   : > { %v1794_v9 = vadd.f32 1.0, %v5518_v8 }
 0x4b1   : > { %5521 = vrcp.f32 %v1794_v9 }
 0x4b3   : > { %v5520_v11 = vpop.eup %5519 }
 0x4b4   : > { %v1874_v12 = vmul.f32 %v5520_v11, %v1871_v10 }
 0x4b6   : > { %v1875_v14 = vadd.f32 %v1874_v12, %v1797_v13 }
 0x4b8   : > { %5523 = vtanh.f32 %v1875_v14 }
 0x4bb   : > { %v5522_v15 = vpop.eup %5521 }
 0x4bc   : > { %v1877_v17 = vsub.f32 1.0, %v5522_v15  ;;  %v1879_v20 = vmul.f32 %v5522_v15, %v6896_v49  ;;  %v1882_v49 = vld [vmem:[#allocation2 + $0x8] sm:$0xff] }
 0x4c2   : > { %v5524_v18 = vpop.eup %5523 }
 0x4c3   : > { %v1878_v19 = vmul.f32 %v5524_v18, %v1877_v17  ;;  %v2279_v17 = vld [vmem:[#allocation4 + $0x10] sm:$0xff] }
 0x4c5   : > { %v1880_v21 = vadd.f32 %v1879_v20, %v1878_v19 }
 0x4c7   : > { %1881 = vst.msk [vmem:[#allocation5] sm:$0xff] %vm1074_vm3, %v1880_v21  ;;  %4869 = vmatmul.mubr.msk.f32.vlgmr.msra.gmra.mrb[20].mxu1 %vm1074_vm3, %v1880_v21  ;;  %4880 = vmatmul.mubr.msk.f32.vlgmr.msra.gmra.mrb[26].mxu0 %vm1074_vm3, %v1880_v21 }
 0x4c8   : > { %5199 = vmatpush3.bf16.msra.mxu1 %v6900_v53  ;;  %4890 = vmatprep.mubr.msk.f32.mxu1 %vm6218_vm2, %v6219_v48 }
 0x4c9   : > { %5200 = vmatprep.subr.bf16.mxu1 %v6217_v62  ;;  %5205 = vmatpush3.bf16.msra.mxu0 %v6861_v16 }
 0x4ca   : > { %5206 = vmatprep.subr.bf16.mxu0 %v6217_v62  ;;  %4901 = vmatprep.mubr.msk.f32.mxu0 %vm6218_vm2, %v6219_v48 }
 0x4cc   : > { %5202 = vmatpush3.bf16.msra.mxu1 %v6914_v57 }
 0x4cd   : > { %5209 = vmatprep.subr.bf16.mxu1 %v6217_v62  ;;  %5208 = vmatpush3.bf16.msra.mxu0 %v6872_v28 }
 0x4ce   : > { %5215 = vmatprep.subr.bf16.mxu0 %v6217_v62 }
 0x4cf   : > { %4891 = vmatmul.mubr.msk.f32.vlgmr.msra.gmra.mrb[22].mxu1 %vm1074_vm3, %v1880_v21 }
 0x4d0   : > { %5211 = vmatpush3.bf16.msra.mxu1 %v6898_v50  ;;  %4912 = vmatprep.mubr.msk.f32.mxu1 %vm6218_vm2, %v6219_v48 }
 0x4d1   : > { %5212 = vmatprep.subr.bf16.mxu1 %v6217_v62 }
 0x4d4   : > { %5214 = vmatpush3.bf16.msra.mxu1 %v6908_v56 }
 0x4d5   : > { %5221 = vmatprep.subr.bf16.mxu1 %v6217_v62 }
 0x59a   : > { %v1952_v22 = vpop.f32.mrb[20].mxu1  ;;  %v2030_v23 = vpop.f32.mrb[26].mxu0 }
 0x59b   : > { %v1956_v24 = vadd.f32 %v1952_v22, %v1882_v49  ;;  %v4870_v26 = vpop.f32.mrb[21].mxu1  ;;  %v4881_v27 = vpop.f32.mrb[27].mxu0  ;;  %v2034_v29 = vadd.f32 %v2030_v23, %v1963_v25 }
 0x59d   : > { %v1957_v30 = vsub.f32 0.0, %v1956_v24  ;;  %v2035_v32 = vsub.f32 0.0, %v2034_v29  ;;  %v2358_v24 = vld [vmem:[#allocation2 + $0x18] sm:$0xff] }
 0x59e   : > { %v2439_v29 = vld [vmem:[#allocation3 + $0x18] sm:$0xff] }
 0x59f   : > { %v1958_v31 = vmul.f32 1.442695, %v1957_v30  ;;  %v2036_v35 = vmul.f32 1.442695, %v2035_v32 }
 0x5a1   : > { %5525 = vpow2.f32 %v1958_v31 }
 0x5a2   : > { %v2108_v33 = vpop.f32.mrb[22].mxu1  ;;  %5527 = vpow2.f32 %v2036_v35 }
 0x5a3   : > { %v4892_v34 = vpop.f32.mrb[23].mxu1  ;;  %v2109_v40 = vadd.f32 %v6968_v7, %v2108_v33 }
 0x5ab   : > { %v5526_v36 = vpop.eup %5525 }
 0x5ac   : > { %v1960_v37 = vadd.f32 1.0, %v5526_v36  ;;  %v5528_v38 = vpop.eup %5527 }
 0x5ad   : > { %v2038_v39 = vadd.f32 1.0, %v5528_v38 }
 0x5ae   : > { %5529 = vrcp.f32 %v1960_v37 }
 0x5af   : > { %5531 = vrcp.f32 %v2038_v39 }
 0x5b8   : > { %v5530_v41 = vpop.eup %5529 }
 0x5b9   : > { %v2112_v42 = vmul.f32 %v5530_v41, %v2109_v40  ;;  %v5532_v45 = vpop.eup %5531 }
 0x5ba   : > { %v2115_v46 = vsub.f32 1.0, %v5532_v45  ;;  %v2117_v52 = vmul.f32 %v5532_v45, %v1880_v21 }
 0x5bb   : > { %v2113_v44 = vadd.f32 %v2112_v42, %v2041_v43 }
 0x5bd   : > { %5533 = vtanh.f32 %v2113_v44 }
 0x5c7   : > { %v5534_v47 = vpop.eup %5533 }
 0x5c8   : > { %v2116_v51 = vmul.f32 %v5534_v47, %v2115_v46  ;;  %v2517_v46 = vld [vmem:[#allocation4 + $0x18] sm:$0xff] }
 0x5ca   : > { %v2118_v54 = vadd.f32 %v2117_v52, %v2116_v51 }
 0x5cc   : > { %2119 = vst.msk [vmem:[#allocation5 + $0x8] sm:$0xff] %vm1074_vm3, %v2118_v54  ;;  %4902 = vmatmul.mubr.msk.f32.vlgmr.msra.gmra.mrb[28].mxu0 %vm1074_vm3, %v2118_v54  ;;  %4913 = vmatmul.mubr.msk.f32.vlgmr.msra.gmra.mrb[24].mxu1 %vm1074_vm3, %v2118_v54 }
 0x5cd   : > { %5217 = vmatpush3.bf16.msra.mxu0 %v6900_v53  ;;  %4923 = vmatprep.mubr.msk.f32.mxu0 %vm6218_vm2, %v6219_v48 }
 0x5ce   : > { %5218 = vmatprep.subr.bf16.mxu0 %v6217_v62  ;;  %5223 = vmatpush3.bf16.msra.mxu1 %v6861_v16 }
 0x5cf   : > { %5224 = vmatprep.subr.bf16.mxu1 %v6217_v62  ;;  %4934 = vmatprep.mubr.msk.f32.mxu1 %vm6218_vm2, %v6219_v48 }
 0x5d1   : > { %5220 = vmatpush3.bf16.msra.mxu0 %v6914_v57 }
 0x5d2   : > { %5227 = vmatprep.subr.bf16.mxu0 %v6217_v62  ;;  %5226 = vmatpush3.bf16.msra.mxu1 %v6872_v28 }
 0x5d3   : > { %5233 = vmatprep.subr.bf16.mxu1 %v6217_v62 }
 0x5d4   : > { %4924 = vmatmul.mubr.msk.f32.vlgmr.msra.gmra.mrb[30].mxu0 %vm1074_vm3, %v2118_v54 }
 0x5d5   : > { %5229 = vmatpush3.bf16.msra.mxu0 %v6898_v50  ;;  %4945 = vmatprep.mubr.msk.f32.mxu0 %vm6218_vm2, %v6219_v48 }
 0x5d6   : > { %5230 = vmatprep.subr.bf16.mxu0 %v6217_v62 }
 0x5d9   : > { %5232 = vmatpush3.bf16.msra.mxu0 %v6908_v56 }
 0x5da   : > { %5239 = vmatprep.subr.bf16.mxu0 %v6217_v62 }
 0x69f   : > { %v2190_v58 = vpop.f32.mrb[28].mxu0  ;;  %v2268_v59 = vpop.f32.mrb[24].mxu1 }
 0x6a0   : > { %v2194_v60 = vadd.f32 %v2190_v58, %v2120_v55  ;;  %v4903_v63 = vpop.f32.mrb[29].mxu0  ;;  %v4914_v0 = vpop.f32.mrb[25].mxu1  ;;  %v2272_v1 = vadd.f32 %v2268_v59, %v2201_v61 }
 0x6a2   : > { %v2195_v2 = vsub.f32 0.0, %v2194_v60  ;;  %v2273_v4 = vsub.f32 0.0, %v2272_v1  ;;  %v2596_v60 = vld [vmem:[#allocation2 + $0x20] sm:$0xff] }
 0x6a3   : > { %v2677_v1 = vld [vmem:[#allocation3 + $0x20] sm:$0xff] }
 0x6a4   : > { %v2196_v3 = vmul.f32 1.442695, %v2195_v2  ;;  %v2274_v8 = vmul.f32 1.442695, %v2273_v4 }
 0x6a6   : > { %5535 = vpow2.f32 %v2196_v3 }
 0x6a7   : > { %v2346_v5 = vpop.f32.mrb[30].mxu0  ;;  %5537 = vpow2.f32 %v2274_v8 }
 0x6a8   : > { %v4925_v6 = vpop.f32.mrb[31].mxu0  ;;  %v2347_v13 = vadd.f32 %v6968_v7, %v2346_v5 }
 0x6b0   : > { %v5536_v9 = vpop.eup %5535 }
 0x6b1   : > { %v2198_v10 = vadd.f32 1.0, %v5536_v9  ;;  %v5538_v11 = vpop.eup %5537 }
 0x6b2   : > { %v2276_v12 = vadd.f32 1.0, %v5538_v11 }
 0x6b3   : > { %5539 = vrcp.f32 %v2198_v10 }
 0x6b4   : > { %5541 = vrcp.f32 %v2276_v12 }
 0x6bd   : > { %v5540_v14 = vpop.eup %5539 }
 0x6be   : > { %v2350_v15 = vmul.f32 %v5540_v14, %v2347_v13  ;;  %v5542_v19 = vpop.eup %5541 }
 0x6bf   : > { %v2353_v20 = vsub.f32 1.0, %v5542_v19  ;;  %v2355_v22 = vmul.f32 %v5542_v19, %v2118_v54 }
 0x6c0   : > { %v2351_v18 = vadd.f32 %v2350_v15, %v2279_v17 }
 0x6c2   : > { %5543 = vtanh.f32 %v2351_v18 }
 0x6cc   : > { %v5544_v21 = vpop.eup %5543 }
 0x6cd   : > { %v2354_v49 = vmul.f32 %v5544_v21, %v2353_v20  ;;  %v2755_v20 = vld [vmem:[#allocation4 + $0x20] sm:$0xff] }
 0x6cf   : > { %v2356_v23 = vadd.f32 %v2355_v22, %v2354_v49 }
 0x6d1   : > { %2357 = vst.msk [vmem:[#allocation5 + $0x10] sm:$0xff] %vm1074_vm3, %v2356_v23  ;;  %4935 = vmatmul.mubr.msk.f32.vlgmr.msra.gmra.mrb[26].mxu1 %vm1074_vm3, %v2356_v23  ;;  %4946 = vmatmul.mubr.msk.f32.vlgmr.msra.gmra.mrb[32].mxu0 %vm1074_vm3, %v2356_v23 }
 0x6d2   : > { %5235 = vmatpush3.bf16.msra.mxu1 %v6900_v53  ;;  %4956 = vmatprep.mubr.msk.f32.mxu1 %vm6218_vm2, %v6219_v48 }
 0x6d3   : > { %5236 = vmatprep.subr.bf16.mxu1 %v6217_v62  ;;  %5241 = vmatpush3.bf16.msra.mxu0 %v6861_v16 }
 0x6d4   : > { %5242 = vmatprep.subr.bf16.mxu0 %v6217_v62  ;;  %4967 = vmatprep.mubr.msk.f32.mxu0 %vm6218_vm2, %v6219_v48 }
 0x6d6   : > { %5238 = vmatpush3.bf16.msra.mxu1 %v6914_v57 }
 0x6d7   : > { %5245 = vmatprep.subr.bf16.mxu1 %v6217_v62  ;;  %5244 = vmatpush3.bf16.msra.mxu0 %v6872_v28 }
 0x6d8   : > { %5251 = vmatprep.subr.bf16.mxu0 %v6217_v62 }
 0x6d9   : > { %4957 = vmatmul.mubr.msk.f32.vlgmr.msra.gmra.mrb[28].mxu1 %vm1074_vm3, %v2356_v23 }
 0x6da   : > { %5247 = vmatpush3.bf16.msra.mxu1 %v6898_v50  ;;  %4978 = vmatprep.mubr.msk.f32.mxu1 %vm6218_vm2, %v6219_v48 }
 0x6db   : > { %5248 = vmatprep.subr.bf16.mxu1 %v6217_v62 }
 0x6de   : > { %5250 = vmatpush3.bf16.msra.mxu1 %v6908_v56 }
 0x6df   : > { %5257 = vmatprep.subr.bf16.mxu1 %v6217_v62 }
 0x7a4   : > { %v2428_v25 = vpop.f32.mrb[26].mxu1  ;;  %v2506_v26 = vpop.f32.mrb[32].mxu0 }
 0x7a5   : > { %v2432_v27 = vadd.f32 %v2428_v25, %v2358_v24  ;;  %v4936_v30 = vpop.f32.mrb[27].mxu1  ;;  %v4947_v31 = vpop.f32.mrb[33].mxu0  ;;  %v2510_v32 = vadd.f32 %v2506_v26, %v2439_v29 }
 0x7a7   : > { %v2433_v33 = vsub.f32 0.0, %v2432_v27  ;;  %v2511_v35 = vsub.f32 0.0, %v2510_v32  ;;  %v2834_v27 = vld [vmem:[#allocation2 + $0x28] sm:$0xff] }
 0x7a8   : > { %v2915_v32 = vld [vmem:[#allocation3 + $0x28] sm:$0xff] }
 0x7a9   : > { %v2434_v34 = vmul.f32 1.442695, %v2433_v33  ;;  %v2512_v38 = vmul.f32 1.442695, %v2511_v35 }
 0x7ab   : > { %5545 = vpow2.f32 %v2434_v34 }
 0x7ac   : > { %v2584_v36 = vpop.f32.mrb[28].mxu1  ;;  %5547 = vpow2.f32 %v2512_v38 }
 0x7ad   : > { %v4958_v37 = vpop.f32.mrb[29].mxu1  ;;  %v2585_v43 = vadd.f32 %v6968_v7, %v2584_v36 }
 0x7b5   : > { %v5546_v39 = vpop.eup %5545 }
 0x7b6   : > { %v2436_v40 = vadd.f32 1.0, %v5546_v39  ;;  %v5548_v41 = vpop.eup %5547 }
 0x7b7   : > { %v2514_v42 = vadd.f32 1.0, %v5548_v41 }
 0x7b8   : > { %5549 = vrcp.f32 %v2436_v40 }
 0x7b9   : > { %5551 = vrcp.f32 %v2514_v42 }
 0x7c2   : > { %v5550_v44 = vpop.eup %5549 }
 0x7c3   : > { %v2588_v45 = vmul.f32 %v5550_v44, %v2585_v43  ;;  %v5552_v51 = vpop.eup %5551 }
 0x7c4   : > { %v2591_v52 = vsub.f32 1.0, %v5552_v51  ;;  %v2593_v58 = vmul.f32 %v5552_v51, %v2356_v23 }
 0x7c5   : > { %v2589_v47 = vadd.f32 %v2588_v45, %v2517_v46 }
 0x7c7   : > { %5553 = vtanh.f32 %v2589_v47 }
 0x7d1   : > { %v5554_v54 = vpop.eup %5553 }
 0x7d2   : > { %v2592_v55 = vmul.f32 %v5554_v54, %v2591_v52  ;;  %v2993_v52 = vld [vmem:[#allocation4 + $0x28] sm:$0xff] }
 0x7d4   : > { %v2594_v59 = vadd.f32 %v2593_v58, %v2592_v55 }
 0x7d6   : > { %2595 = vst.msk [vmem:[#allocation5 + $0x18] sm:$0xff] %vm1074_vm3, %v2594_v59  ;;  %4968 = vmatmul.mubr.msk.f32.vlgmr.msra.gmra.mrb[34].mxu0 %vm1074_vm3, %v2594_v59  ;;  %4979 = vmatmul.mubr.msk.f32.vlgmr.msra.gmra.mrb[30].mxu1 %vm1074_vm3, %v2594_v59 }
 0x7d7   : > { %5253 = vmatpush3.bf16.msra.mxu0 %v6900_v53  ;;  %4989 = vmatprep.mubr.msk.f32.mxu0 %vm6218_vm2, %v6219_v48 }
 0x7d8   : > { %5254 = vmatprep.subr.bf16.mxu0 %v6217_v62  ;;  %5259 = vmatpush3.bf16.msra.mxu1 %v6861_v16 }
 0x7d9   : > { %5260 = vmatprep.subr.bf16.mxu1 %v6217_v62  ;;  %5000 = vmatprep.mubr.msk.f32.mxu1 %vm6218_vm2, %v6219_v48 }
 0x7db   : > { %5256 = vmatpush3.bf16.msra.mxu0 %v6914_v57 }
 0x7dc   : > { %5263 = vmatprep.subr.bf16.mxu0 %v6217_v62  ;;  %5262 = vmatpush3.bf16.msra.mxu1 %v6872_v28 }
 0x7dd   : > { %5269 = vmatprep.subr.bf16.mxu1 %v6217_v62 }
 0x7de   : > { %4990 = vmatmul.mubr.msk.f32.vlgmr.msra.gmra.mrb[36].mxu0 %vm1074_vm3, %v2594_v59 }
 0x7df   : > { %5265 = vmatpush3.bf16.msra.mxu0 %v6898_v50  ;;  %5011 = vmatprep.mubr.msk.f32.mxu0 %vm6218_vm2, %v6219_v48 }
 0x7e0   : > { %5266 = vmatprep.subr.bf16.mxu0 %v6217_v62 }
 0x7e3   : > { %5268 = vmatpush3.bf16.msra.mxu0 %v6908_v56 }
 0x7e4   : > { %5275 = vmatprep.subr.bf16.mxu0 %v6217_v62 }
 0x8a9   : > { %v2666_v61 = vpop.f32.mrb[34].mxu0  ;;  %v2744_v63 = vpop.f32.mrb[30].mxu1 }
 0x8aa   : > { %v2670_v0 = vadd.f32 %v2666_v61, %v2596_v60  ;;  %v4969_v2 = vpop.f32.mrb[35].mxu0  ;;  %v4980_v3 = vpop.f32.mrb[31].mxu1  ;;  %v2748_v4 = vadd.f32 %v2744_v63, %v2677_v1  ;;  %v3072_v1 = vld [vmem:[#allocation2 + $0x30] sm:$0xff] }
 0x8ac   : > { %v2671_v5 = vsub.f32 0.0, %v2670_v0  ;;  %v2749_v8 = vsub.f32 0.0, %v2748_v4  ;;  %v3153_v4 = vld [vmem:[#allocation3 + $0x30] sm:$0xff] }
 0x8ae   : > { %v2672_v6 = vmul.f32 1.442695, %v2671_v5  ;;  %v2750_v11 = vmul.f32 1.442695, %v2749_v8 }
 0x8b0   : > { %5555 = vpow2.f32 %v2672_v6 }
 0x8b1   : > { %v2822_v9 = vpop.f32.mrb[36].mxu0  ;;  %5557 = vpow2.f32 %v2750_v11 }
 0x8b2   : > { %v4991_v10 = vpop.f32.mrb[37].mxu0  ;;  %v2823_v17 = vadd.f32 %v6968_v7, %v2822_v9 }
 0x8ba   : > { %v5556_v12 = vpop.eup %5555 }
 0x8bb   : > { %v2674_v13 = vadd.f32 1.0, %v5556_v12  ;;  %v5558_v14 = vpop.eup %5557 }
 0x8bc   : > { %v2752_v15 = vadd.f32 1.0, %v5558_v14 }
 0x8bd   : > { %5559 = vrcp.f32 %v2674_v13 }
 0x8be   : > { %5561 = vrcp.f32 %v2752_v15 }
 0x8c7   : > { %v5560_v18 = vpop.eup %5559 }
 0x8c8   : > { %v2826_v19 = vmul.f32 %v5560_v18, %v2823_v17  ;;  %v5562_v49 = vpop.eup %5561 }
 0x8c9   : > { %v2829_v22 = vsub.f32 1.0, %v5562_v49  ;;  %v2831_v25 = vmul.f32 %v5562_v49, %v2594_v59  ;;  %v3231_v49 = vld [vmem:[#allocation4 + $0x30] sm:$0xff] }
 0x8ca   : > { %v2827_v21 = vadd.f32 %v2826_v19, %v2755_v20 }
 0x8cc   : > { %5563 = vtanh.f32 %v2827_v21 }
 0x8d6   : > { %v5564_v23 = vpop.eup %5563 }
 0x8d7   : > { %v2830_v24 = vmul.f32 %v5564_v23, %v2829_v22 }
 0x8d9   : > { %v2832_v26 = vadd.f32 %v2831_v25, %v2830_v24 }
 0x8db   : > { %2833 = vst.msk [vmem:[#allocation5 + $0x20] sm:$0xff] %vm1074_vm3, %v2832_v26  ;;  %5001 = vmatmul.mubr.msk.f32.vlgmr.msra.gmra.mrb[32].mxu1 %vm1074_vm3, %v2832_v26  ;;  %5012 = vmatmul.mubr.msk.f32.vlgmr.msra.gmra.mrb[38].mxu0 %vm1074_vm3, %v2832_v26 }
 0x8dc   : > { %5271 = vmatpush3.bf16.msra.mxu1 %v6900_v53  ;;  %5022 = vmatprep.mubr.msk.f32.mxu1 %vm6218_vm2, %v6219_v48 }
 0x8dd   : > { %5272 = vmatprep.subr.bf16.mxu1 %v6217_v62  ;;  %5277 = vmatpush3.bf16.msra.mxu0 %v6861_v16 }
 0x8de   : > { %5278 = vmatprep.subr.bf16.mxu0 %v6217_v62  ;;  %5033 = vmatprep.mubr.msk.f32.mxu0 %vm6218_vm2, %v6219_v48 }
 0x8e0   : > { %5274 = vmatpush3.bf16.msra.mxu1 %v6914_v57 }
 0x8e1   : > { %5281 = vmatprep.subr.bf16.mxu1 %v6217_v62  ;;  %5280 = vmatpush3.bf16.msra.mxu0 %v6872_v28 }
 0x8e2   : > { %5287 = vmatprep.subr.bf16.mxu0 %v6217_v62 }
 0x8e3   : > { %5023 = vmatmul.mubr.msk.f32.vlgmr.msra.gmra.mrb[34].mxu1 %vm1074_vm3, %v2832_v26 }
 0x8e4   : > { %5283 = vmatpush3.bf16.msra.mxu1 %v6898_v50  ;;  %5044 = vmatprep.mubr.msk.f32.mxu1 %vm6218_vm2, %v6219_v48 }
 0x8e5   : > { %5284 = vmatprep.subr.bf16.mxu1 %v6217_v62 }
 0x8e8   : > { %5286 = vmatpush3.bf16.msra.mxu1 %v6908_v56 }
 0x8e9   : > { %5293 = vmatprep.subr.bf16.mxu1 %v6217_v62 }
 0x9ae   : > { %v2904_v29 = vpop.f32.mrb[32].mxu1  ;;  %v2982_v30 = vpop.f32.mrb[38].mxu0 }
 0x9af   : > { %v2908_v31 = vadd.f32 %v2904_v29, %v2834_v27  ;;  %v5002_v33 = vpop.f32.mrb[33].mxu1  ;;  %v5013_v34 = vpop.f32.mrb[39].mxu0  ;;  %v2986_v35 = vadd.f32 %v2982_v30, %v2915_v32  ;;  %v3559_v29 = vld [vmem:[%s7501_s9 + $0x10] sm:$0xff]  ;;  %v3560_v30 = vld [vmem:[%s7501_s9 + $0x18] sm:$0xff] }
 0x9b0   : > { %v5315_v32 = vpack.c.bf16 %v3560_v30, %v3559_v29  ;;  %v3549_v33 = vld [vmem:[#allocation5] sm:$0xff]  ;;  %v3550_v34 = vld [vmem:[#allocation5 + $0x8] sm:$0xff]  ;;  %v3469_v29 = vld [vmem:[#allocation4 + $0x38] sm:$0xff] }
 0x9b1   : > { %v2909_v36 = vsub.f32 0.0, %v2908_v31  ;;  %v2987_v38 = vsub.f32 0.0, %v2986_v35  ;;  %v3552_v35 = vld [vmem:[#allocation5 + $0x18] sm:$0xff] }
 0x9b3   : > { %v2910_v37 = vmul.f32 1.442695, %v2909_v36  ;;  %v2988_v41 = vmul.f32 1.442695, %v2987_v38 }
 0x9b5   : > { %5565 = vpow2.f32 %v2910_v37  ;;  %v3722_v37 = vld [vmem:[%s7502_s0 + $0x8] sm:$0xff] }
 0x9b6   : > { %v3060_v39 = vpop.f32.mrb[34].mxu1  ;;  %5567 = vpow2.f32 %v2988_v41 }
 0x9b7   : > { %v5024_v40 = vpop.f32.mrb[35].mxu1  ;;  %v3061_v46 = vadd.f32 %v6968_v7, %v3060_v39  ;;  %v3723_v39 = vld [vmem:[%s7502_s0 + $0x10] sm:$0xff] }
 0x9b8   : > { %v3724_v40 = vld [vmem:[%s7502_s0 + $0x18] sm:$0xff] }
 0x9b9   : > { %v5323_v41 = vpack.c.bf16 %v3724_v40, %v3723_v39 }
 0x9bf   : > { %v5566_v42 = vpop.eup %5565 }
 0x9c0   : > { %v2912_v43 = vadd.f32 1.0, %v5566_v42  ;;  %v5568_v44 = vpop.eup %5567  ;;  %v3310_v42 = vld [vmem:[#allocation2 + $0x38] sm:$0xff] }
 0x9c1   : > { %v2990_v45 = vadd.f32 1.0, %v5568_v44 }
 0x9c2   : > { %5569 = vrcp.f32 %v2912_v43 }
 0x9c3   : > { %5571 = vrcp.f32 %v2990_v45 }
 0x9cc   : > { %v5570_v47 = vpop.eup %5569 }
 0x9cd   : > { %v3064_v51 = vmul.f32 %v5570_v47, %v3061_v46  ;;  %v5572_v55 = vpop.eup %5571  ;;  %v3391_v46 = vld [vmem:[#allocation3 + $0x38] sm:$0xff] }
 0x9ce   : > { %v3067_v58 = vsub.f32 1.0, %v5572_v55  ;;  %v3069_v61 = vmul.f32 %v5572_v55, %v2832_v26 }
 0x9cf   : > { %v3065_v54 = vadd.f32 %v3064_v51, %v2993_v52 }
 0x9d1   : > { %5573 = vtanh.f32 %v3065_v54 }
 0x9db   : > { %v5574_v59 = vpop.eup %5573 }
 0x9dc   : > { %v3068_v60 = vmul.f32 %v5574_v59, %v3067_v58  ;;  %v7155_v59 = vld [vmem:[#allocation29] ss:$0 sm:$0xff] }
 0x9de   : > { %v3070_v63 = vadd.f32 %v3069_v61, %v3068_v60 }
 0x9e0   : > { %3071 = vst.msk [vmem:[#allocation5 + $0x28] sm:$0xff] %vm1074_vm3, %v3070_v63  ;;  %5034 = vmatmul.mubr.msk.f32.vlgmr.msra.gmra.mrb[40].mxu0 %vm1074_vm3, %v3070_v63  ;;  %5045 = vmatmul.mubr.msk.f32.vlgmr.msra.gmra.mrb[36].mxu1 %vm1074_vm3, %v3070_v63 }
 0x9e1   : > { %5289 = vmatpush3.bf16.msra.mxu0 %v6900_v53  ;;  %5055 = vmatprep.mubr.msk.f32.mxu0 %vm6218_vm2, %v6219_v48 }
 0x9e2   : > { %5290 = vmatprep.subr.bf16.mxu0 %v6217_v62  ;;  %5295 = vmatpush3.bf16.msra.mxu1 %v6861_v16  ;;  %v3557_v16 = vld [vmem:[%s7501_s9] sm:$0xff] }
 0x9e3   : > { %5296 = vmatprep.subr.bf16.mxu1 %v6217_v62  ;;  %5066 = vmatprep.mubr.msk.f32.mxu1 %vm6218_vm2, %v6219_v48 }
 0x9e5   : > { %5292 = vmatpush3.bf16.msra.mxu0 %v6914_v57 }
 0x9e6   : > { %5299 = vmatprep.subr.bf16.mxu0 %v6217_v62  ;;  %5298 = vmatpush3.bf16.msra.mxu1 %v6872_v28  ;;  %v3558_v28 = vld [vmem:[%s7501_s9 + $0x8] sm:$0xff] }
 0x9e7   : > { %5305 = vmatprep.subr.bf16.mxu1 %v6217_v62  ;;  %v5311_v0 = vpack.c.bf16 %v3558_v28, %v3557_v16  ;;  %v3554_v36 = vld [vmem:[#allocation5 + $0x28] sm:$0xff] }
 0x9e8   : > { %5056 = vmatmul.mubr.msk.f32.vlgmr.msra.gmra.mrb[42].mxu0 %vm1074_vm3, %v3070_v63 }
 0x9e9   : > { %5301 = vmatpush3.bf16.msra.mxu0 %v6898_v50  ;;  %5077 = vmatprep.mubr.msk.f32.mxu0 %vm6218_vm2, %v6219_v48 }
 0x9ea   : > { %5302 = vmatprep.subr.bf16.mxu0 %v6217_v62 }
 0x9ed   : > { %5304 = vmatpush3.bf16.msra.mxu0 %v6908_v56 }
 0x9ee   : > { %5312 = vmatprep.subr.bf16.mxu0 %v5311_v0 }
 0xab3   : > { %v3142_v2 = vpop.f32.mrb[40].mxu0  ;;  %v3220_v50 = vpop.f32.mrb[36].mxu1 }
 0xab4   : > { %v3146_v3 = vadd.f32 %v3142_v2, %v3072_v1  ;;  %v5035_v5 = vpop.f32.mrb[41].mxu0  ;;  %v5046_v6 = vpop.f32.mrb[37].mxu1  ;;  %v3224_v8 = vadd.f32 %v3220_v50, %v3153_v4 }
 0xab6   : > { %v3147_v9 = vsub.f32 0.0, %v3146_v3  ;;  %v3225_v10 = vsub.f32 0.0, %v3224_v8 }
 0xab8   : > { %v3148_v56 = vmul.f32 1.442695, %v3147_v9  ;;  %v3226_v13 = vmul.f32 1.442695, %v3225_v10 }
 0xaba   : > { %5575 = vpow2.f32 %v3148_v56 }
 0xabb   : > { %v3298_v11 = vpop.f32.mrb[42].mxu0  ;;  %5577 = vpow2.f32 %v3226_v13 }
 0xabc   : > { %v5057_v12 = vpop.f32.mrb[43].mxu0  ;;  %v3299_v19 = vadd.f32 %v6968_v7, %v3298_v11 }
 0xac4   : > { %v5576_v14 = vpop.eup %5575 }
 0xac5   : > { %v3150_v15 = vadd.f32 1.0, %v5576_v14  ;;  %v5578_v17 = vpop.eup %5577 }
 0xac6   : > { %v3228_v18 = vadd.f32 1.0, %v5578_v17 }
 0xac7   : > { %5579 = vrcp.f32 %v3150_v15 }
 0xac8   : > { %5581 = vrcp.f32 %v3228_v18 }
 0xad1   : > { %v5580_v20 = vpop.eup %5579 }
 0xad2   : > { %v3302_v21 = vmul.f32 %v5580_v20, %v3299_v19  ;;  %v5582_v23 = vpop.eup %5581 }
 0xad3   : > { %v3305_v24 = vsub.f32 1.0, %v5582_v23  ;;  %v3307_v27 = vmul.f32 %v5582_v23, %v3070_v63 }
 0xad4   : > { %v3303_v22 = vadd.f32 %v3302_v21, %v3231_v49 }
 0xad6   : > { %5583 = vtanh.f32 %v3303_v22 }
 0xae0   : > { %v5584_v25 = vpop.eup %5583 }
 0xae1   : > { %v3306_v26 = vmul.f32 %v5584_v25, %v3305_v24 }
 0xae3   : > { %v7121_v31 = vadd.f32 %v3307_v27, %v3306_v26 }
 0xae5   : > { %3309 = vst.msk [vmem:[#allocation5 + $0x30] sm:$0xff] %vm1074_vm3, %v7121_v31  ;;  %5067 = vmatmul.mubr.msk.f32.vlgmr.msra.gmra.mrb[38].mxu1 %vm1074_vm3, %v7121_v31  ;;  %5078 = vmatmul.mubr.msk.f32.vlgmr.msra.gmra.mrb[44].mxu0 %vm1074_vm3, %v7121_v31 }
 0xae6   : > { %5307 = vmatpush3.bf16.msra.mxu1 %v6900_v53  ;;  %5314 = vmatpush3.bf16.msra.mxu0 %v5311_v0  ;;  %v3551_v53 = vld [vmem:[#allocation5 + $0x10] sm:$0xff] }
 0xae7   : > { %5099 = vmatprep.mubr.msk.f32.mxu0 %vm1074_vm3, %v3549_v33  ;;  %5308 = vmatprep.subr.bf16.mxu1 %v6217_v62  ;;  %v3553_v62 = vld [vmem:[#allocation5 + $0x20] sm:$0xff] }
 0xae8   : > { %5316 = vmatprep.subr.bf16.mxu0 %v5315_v32  ;;  %5088 = vmatprep.mubr.msk.f32.mxu1 %vm6218_vm2, %v6219_v48 }
 0xaea   : > { %5310 = vmatpush3.bf16.msra.mxu1 %v6914_v57  ;;  %5318 = vmatpush3.bf16.msra.mxu0 %v5315_v32  ;;  %v3721_v57 = vld [vmem:[%s7502_s0] sm:$0xff] }
 0xaeb   : > { %v5319_v38 = vpack.c.bf16 %v3722_v37, %v3721_v57 }
 0xaec   : > { %v3555_v48 = vld [vmem:[#allocation5 + $0x30] sm:$0xff] }
 0xaed   : > { %5089 = vmatmul.mubr.msk.f32.vlgmr.msra.gmra.mrb[40].mxu1 %vm1074_vm3, %v7121_v31  ;;  %5100 = vmatmul.mubr.msk.f32.vlgmr.msra.gmra.mrb[46].mxu0 %vm1074_vm3, %v3550_v34 }
 0xaee   : > { %5102 = vmatprep.mubr.msk.f32.mxu0 %vm1074_vm3, %v3551_v53  ;;  %5320 = vmatprep.subr.bf16.mxu1 %v5319_v38 }
 0xaef   : > { %5322 = vmatpush3.bf16.msra.mxu1 %v5319_v38 }
 0xaf0   : > { %5324 = vmatprep.subr.bf16.mxu1 %v5323_v41 }
 0xaf1   : > { %5103 = vmatmul.mubr.msk.f32.gmra.mrb[48].mxu0 %vm1074_vm3, %v3552_v35 }
 0xaf2   : > { %5105 = vmatprep.mubr.msk.f32.mxu0 %vm1074_vm3, %v3553_v62 }
 0xaf3   : > { %5326 = vmatpush3.bf16.msra.mxu1 %v5323_v41 }
 0xaf5   : > { %5106 = vmatmul.mubr.msk.f32.gmra.mrb[50].mxu0 %vm1074_vm3, %v3554_v36  ;;  %v7182_v36 = vld [vmem:[%s7503_s10] ss:$0 sm:$0xff] }
 0xaf6   : > { %5108 = vmatprep.mubr.msk.f32.mxu0 %vm1074_vm3, %v3555_v48 }
 0xbb8   : > { %v3380_v43 = vpop.f32.mrb[38].mxu1  ;;  %v3458_v44 = vpop.f32.mrb[44].mxu0 }
 0xbb9   : > { %v3384_v45 = vadd.f32 %v3380_v43, %v3310_v42  ;;  %v5068_v47 = vpop.f32.mrb[39].mxu1  ;;  %v5079_v51 = vpop.f32.mrb[45].mxu0  ;;  %v3462_v52 = vadd.f32 %v3458_v44, %v3391_v46 }
 0xbbb   : > { %v3385_v54 = vsub.f32 0.0, %v3384_v45  ;;  %v3463_v58 = vsub.f32 0.0, %v3462_v52 }
 0xbbd   : > { %v3386_v55 = vmul.f32 1.442695, %v3385_v54  ;;  %v3464_v0 = vmul.f32 1.442695, %v3463_v58 }
 0xbbf   : > { %5585 = vpow2.f32 %v3386_v55 }
 0xbc0   : > { %v3536_v60 = vpop.f32.mrb[40].mxu1  ;;  %v5101_v61 = vpop.f32.mrb[46].mxu0  ;;  %5587 = vpow2.f32 %v3464_v0 }
 0xbc1   : > { %v3664_v63 = vadd.f32 %v5101_v61, %v7155_v59  ;;  %v5090_v16 = vpop.f32.mrb[41].mxu1  ;;  %v3658_v28 = vpop.f32.mrb[47].mxu0  ;;  %v3537_v25 = vadd.f32 %v6968_v7, %v3536_v60 }
 0xbc2   : > { %v3659_v1 = vadd.f32 %v7155_v59, %v3658_v28 }
 0xbc3   : > { %v3706_v2 = vmul.f32 0.01, %v3664_v63  ;;  %vm3698_vm4 = vcmp.gt.f32.partialorder %v3664_v63, 0.0 }
 0xbc4   : > { %vm3697_vm5 = vcmp.gt.f32.partialorder %v3659_v1, 0.0  ;;  %v3705_v50 = vmul.f32 0.01, %v3659_v1  ;;  %v5104_v3 = vpop.f32.mrb[48].mxu0 }
 0xbc5   : > { %v3674_v4 = vadd.f32 %v5104_v3, %v7155_v59  ;;  %v3668_v5 = vpop.f32.mrb[49].mxu0  ;;  %v3714_v9 = vsel %vm3698_vm4, %v3664_v63, %v3706_v2 }
 0xbc6   : > { %v3669_v6 = vadd.f32 %v7155_v59, %v3668_v5  ;;  %v3713_v8 = vsel %vm3697_vm5, %v3659_v1, %v3705_v50 }
 0xbc7   : > { %v3708_v56 = vmul.f32 0.01, %v3674_v4  ;;  %5119 = vmatprep.mubr.msk.f32.mxu1 %vm1074_vm3, %v3713_v8  ;;  %vm3700_vm6 = vcmp.gt.f32.partialorder %v3674_v4, 0.0 }
 0xbc8   : > { %vm3699_vm7 = vcmp.gt.f32.partialorder %v3669_v6, 0.0  ;;  %v3707_v10 = vmul.f32 0.01, %v3669_v6  ;;  %v5107_v11 = vpop.f32.mrb[50].mxu0  ;;  %5120 = vmatmul.mubr.msk.f32.vlgmr.msra.gmra.mrb[42].mxu1 %vm1074_vm3, %v3714_v9 }
 0xbc9   : > { %v5586_v12 = vpop.eup %5585  ;;  %v3684_v13 = vadd.f32 %v5107_v11, %v7155_v59  ;;  %v3678_v14 = vpop.f32.mrb[51].mxu0  ;;  %v3716_v20 = vsel %vm3700_vm6, %v3674_v4, %v3708_v56 }
 0xbca   : > { %v3388_v15 = vadd.f32 1.0, %v5586_v12  ;;  %v3679_v17 = vadd.f32 %v7155_v59, %v3678_v14  ;;  %v3715_v18 = vsel %vm3699_vm7, %v3669_v6, %v3707_v10  ;;  %v5588_v23 = vpop.eup %5587 }
 0xbcb   : > { %v3710_v19 = vmul.f32 0.01, %v3684_v13  ;;  %5122 = vmatprep.mubr.msk.f32.mxu1 %vm1074_vm3, %v3715_v18  ;;  %vm3702_vm8 = vcmp.gt.f32.partialorder %v3684_v13, 0.0  ;;  %v3466_v24 = vadd.f32 1.0, %v5588_v23 }
 0xbcc   : > { %5589 = vrcp.f32 %v3388_v15  ;;  %vm3701_vm9 = vcmp.gt.f32.partialorder %v3679_v17, 0.0  ;;  %v3709_v21 = vmul.f32 0.01, %v3679_v17  ;;  %5123 = vmatmul.mubr.msk.f32.gmra.mrb[44].mxu1 %vm1074_vm3, %v3716_v20 }
 0xbcd   : > { %v3718_v22 = vsel %vm3702_vm8, %v3684_v13, %v3710_v19  ;;  %5591 = vrcp.f32 %v3466_v24 }
 0xbce   : > { %v3717_v49 = vsel %vm3701_vm9, %v3679_v17, %v3709_v21 }
 0xbcf   : > { %5125 = vmatprep.mubr.msk.f32.mxu1 %vm1074_vm3, %v3717_v49 }
 0xbd0   : > { %5126 = vmatmul.mubr.msk.f32.gmra.mrb[46].mxu1 %vm1074_vm3, %v3718_v22 }
 0xbd6   : > { %v5590_v26 = vpop.eup %5589 }
 0xbd7   : > { %v3540_v27 = vmul.f32 %v5590_v26, %v3537_v25  ;;  %v5592_v32 = vpop.eup %5591 }
 0xbd8   : > { %v3543_v33 = vsub.f32 1.0, %v5592_v32  ;;  %v3545_v53 = vmul.f32 %v5592_v32, %v7121_v31 }
 0xbd9   : > { %v3541_v30 = vadd.f32 %v3540_v27, %v3469_v29 }
 0xbdb   : > { %5593 = vtanh.f32 %v3541_v30 }
 0xbe5   : > { %v5594_v34 = vpop.eup %5593 }
 0xbe6   : > { %v3544_v35 = vmul.f32 %v5594_v34, %v3543_v33 }
 0xbe8   : > { %v3546_v62 = vadd.f32 %v3545_v53, %v3544_v35 }
 0xbea   : > { %3547 = vst.msk [vmem:[#allocation5 + $0x38] sm:$0xff] %vm1074_vm3, %v3546_v62  ;;  %3548 = vst.msk [vmem:[%s7174_s29] sm:$0xff] %vm1074_vm3, %v3546_v62 }
 0xbf1   : > { %v3556_v7 = vld [vmem:[#allocation5 + $0x38] sm:$0xff] }
 0xbf2   : > { %5109 = vmatmul.mubr.msk.f32.gmra.mrb[52].mxu0 %vm1074_vm3, %v3556_v7 }
 0xc9b   : > { %v5121_v48 = vpop.f32.mrb[42].mxu1 }
 0xc9c   : > { %v7185_v31 = vadd.f32 %v5121_v48, %v7182_v36  ;;  %v3822_v57 = vpop.f32.mrb[43].mxu1 }
 0xc9d   : > { %v7188_v37 = vadd.f32 %v7182_v36, %v3822_v57 }
 0xc9e   : > { %v3865_v38 = vsel %vm3861_vm10, %v7185_v31, -inf }
 0xc9f   : > { %3866 = vmax.xlane.f32.xlu0 %v3865_v38  ;;  %v5124_v39 = vpop.f32.mrb[44].mxu1  ;;  %v3862_v44 = vsel %vm3861_vm10, %v7188_v37, -inf }
 0xca0   : > { %v7193_v40 = vadd.f32 %v5124_v39, %v7182_v36  ;;  %v3832_v41 = vpop.f32.mrb[45].mxu1 }
 0xca1   : > { %v7196_v42 = vadd.f32 %v7182_v36, %v3832_v41 }
 0xca2   : > { %v3871_v43 = vsel %vm3861_vm10, %v7193_v40, -inf }
 0xca3   : > { %3872 = vmax.xlane.f32.xlu1 %v3871_v43  ;;  %v5127_v45 = vpop.f32.mrb[46].mxu1  ;;  %3863 = vmax.xlane.f32.xlu0 %v3862_v44  ;;  %v3868_v52 = vsel %vm3861_vm10, %v7196_v42, -inf }
 0xca4   : > { %v3842_v46 = vpop.f32.mrb[47].mxu1  ;;  %v7206_v51 = vadd.f32 %v5127_v45, %v7182_v36 }
 0xca5   : > { %v7203_v47 = vadd.f32 %v7182_v36, %v3842_v46 }
 0xca6   : > { %v3877_v55 = vsel %vm3861_vm10, %v7206_v51, -inf }
 0xca7   : > { %3869 = vmax.xlane.f32.xlu1 %v3868_v52  ;;  %v3874_v54 = vsel %vm3861_vm10, %v7203_v47, -inf }
 0xca8   : > { %3875 = vmax.xlane.f32.xlu0 %v3874_v54 }
 0xcab   : > { %3878 = vmax.xlane.f32.xlu1 %v3877_v55 }
 0xcc5   : > { %v5110_v58 = vpop.f32.mrb[52].mxu0 }
 0xcc6   : > { %v3694_v60 = vadd.f32 %v5110_v58, %v7155_v59  ;;  %v3688_v61 = vpop.f32.mrb[53].mxu0 }
 0xcc7   : > { %v3689_v63 = vadd.f32 %v7155_v59, %v3688_v61 }
 0xcc8   : > { %v3712_v16 = vmul.f32 0.01, %v3694_v60  ;;  %vm3704_vm11 = vcmp.gt.f32.partialorder %v3694_v60, 0.0 }
 0xcc9   : > { %vm3703_vm12 = vcmp.gt.f32.partialorder %v3689_v63, 0.0  ;;  %v3711_v28 = vmul.f32 0.01, %v3689_v63 }
 0xcca   : > { %v3720_v1 = vsel %vm3704_vm11, %v3694_v60, %v3712_v16 }
 0xccb   : > { %v3719_v0 = vsel %vm3703_vm12, %v3689_v63, %v3711_v28 }
 0xccc   : > { %5128 = vmatprep.mubr.msk.f32.mxu1 %vm1074_vm3, %v3719_v0 }
 0xccd   : > { %5129 = vmatmul.mubr.msk.f32.gmra.mrb[48].mxu1 %vm1074_vm3, %v3720_v1 }
 0xd2c   : > { %v7218_v2 = vpop.xlane.xlu0 %3866 }
 0xd2d   : > { %v3887_v59 = vsub.f32 %v7185_v31, %v7218_v2 }
 0xd2f   : > { %v3896_v6 = vmul.f32 1.442695, %v3887_v59 }
 0xd30   : > { %v7220_v50 = vpop.xlane.xlu1 %3872  ;;  %v7222_v3 = vpop.xlane.xlu0 %3863 }
 0xd31   : > { %v3886_v5 = vsub.f32 %v7188_v37, %v7222_v3  ;;  %v3889_v8 = vsub.f32 %v7193_v40, %v7220_v50  ;;  %5595 = vpow2.f32 %v3896_v6 }
 0xd33   : > { %v3894_v9 = vmul.f32 1.442695, %v3886_v5  ;;  %v3900_v12 = vmul.f32 1.442695, %v3889_v8 }
 0xd34   : > { %v7224_v4 = vpop.xlane.xlu1 %3869 }
 0xd35   : > { %v3888_v56 = vsub.f32 %v7196_v42, %v7224_v4  ;;  %v7236_v11 = vpop.xlane.xlu0 %3875  ;;  %5597 = vpow2.f32 %v3894_v9 }
 0xd36   : > { %v3890_v15 = vsub.f32 %v7203_v47, %v7236_v11  ;;  %5599 = vpow2.f32 %v3900_v12 }
 0xd37   : > { %v3898_v14 = vmul.f32 1.442695, %v3888_v56 }
 0xd38   : > { %v7234_v10 = vpop.xlane.xlu1 %3878  ;;  %v3902_v18 = vmul.f32 1.442695, %v3890_v15 }
 0xd39   : > { %v3891_v13 = vsub.f32 %v7206_v51, %v7234_v10  ;;  %5601 = vpow2.f32 %v3898_v14 }
 0xd3b   : > { %v3904_v17 = vmul.f32 1.442695, %v3891_v13  ;;  %v5596_v23 = vpop.eup %5595 }
 0xd3c   : > { %v3913_v26 = vsel %vm3861_vm10, %v5596_v23, 0.0 }
 0xd3d   : > { %5603 = vpow2.f32 %v3904_v17 }
 0xd3e   : > { %5605 = vpow2.f32 %v3902_v18 }
 0xd3f   : > { %v5598_v25 = vpop.eup %5597 }
 0xd40   : > { %v5600_v27 = vpop.eup %5599  ;;  %v3910_v29 = vsel %vm3861_vm10, %v5598_v25, 0.0 }
 0xd41   : > { %v3919_v32 = vsel %vm3861_vm10, %v5600_v27, 0.0 }
 0xd43   : > { %v5602_v30 = vpop.eup %5601 }
 0xd44   : > { %v3916_v34 = vsel %vm3861_vm10, %v5602_v30, 0.0 }
 0xd47   : > { %v5604_v33 = vpop.eup %5603 }
 0xd48   : > { %v5606_v53 = vpop.eup %5605  ;;  %v3925_v35 = vsel %vm3861_vm10, %v5604_v33, 0.0 }
 0xd49   : > { %v3922_v62 = vsel %vm3861_vm10, %v5606_v53, 0.0 }
 0xda0   : > { %v5130_v19 = vpop.f32.mrb[48].mxu1 }
 0xda1   : > { %v7243_v20 = vadd.f32 %v5130_v19, %v7182_v36  ;;  %v3852_v21 = vpop.f32.mrb[49].mxu1 }
 0xda2   : > { %v7246_v49 = vadd.f32 %v7182_v36, %v3852_v21 }
 0xda3   : > { %v3883_v22 = vsel %vm3861_vm10, %v7243_v20, -inf }
 0xda4   : > { %3884 = vmax.xlane.f32.xlu1 %v3883_v22  ;;  %v3880_v24 = vsel %vm3861_vm10, %v7246_v49, -inf }
 0xda5   : > { %3881 = vmax.xlane.f32.xlu0 %v3880_v24 }
 0xda8   : > { %3914 = vadd.xlane.f32.xlu1 %v3913_v26 }
 0xda9   : > { %3911 = vadd.xlane.f32.xlu0 %v3910_v29 }
 0xdac   : > { %3920 = vadd.xlane.f32.xlu1 %v3919_v32 }
 0xdad   : > { %3917 = vadd.xlane.f32.xlu0 %v3916_v34 }
 0xdb0   : > { %3926 = vadd.xlane.f32.xlu1 %v3925_v35 }
 0xdb1   : > { %3923 = vadd.xlane.f32.xlu0 %v3922_v62 }
 0xe31   : > { %v7258_v7 = vpop.xlane.xlu1 %3884 }
 0xe32   : > { %v3893_v36 = vsub.f32 %v7243_v20, %v7258_v7  ;;  %v7262_v48 = vpop.xlane.xlu0 %3881 }
 0xe33   : > { %v3892_v57 = vsub.f32 %v7246_v49, %v7262_v48 }
 0xe34   : > { %v3908_v38 = vmul.f32 1.442695, %v3893_v36 }
 0xe35   : > { %v3906_v39 = vmul.f32 1.442695, %v3892_v57  ;;  %v3915_v41 = vpop.xlane.xlu1 %3914 }
 0xe36   : > { %5607 = vpow2.f32 %v3908_v38  ;;  %v3912_v43 = vpop.xlane.xlu0 %3911 }
 0xe37   : > { %5609 = vpow2.f32 %v3906_v39 }
 0xe38   : > { %5611 = vlog2.f32 %v3915_v41 }
 0xe39   : > { %5613 = vlog2.f32 %v3912_v43  ;;  %v3921_v44 = vpop.xlane.xlu1 %3920 }
 0xe3a   : > { %5615 = vlog2.f32 %v3921_v44  ;;  %v3918_v45 = vpop.xlane.xlu0 %3917 }
 0xe3b   : > { %5617 = vlog2.f32 %v3918_v45 }
 0xe3d   : > { %v3927_v46 = vpop.xlane.xlu1 %3926 }
 0xe3e   : > { %5619 = vlog2.f32 %v3927_v46  ;;  %v3924_v52 = vpop.xlane.xlu0 %3923 }
 0xe3f   : > { %5621 = vlog2.f32 %v3924_v52 }
 0xe40   : > { %v5608_v54 = vpop.eup %5607 }
 0xe41   : > { %v5610_v55 = vpop.eup %5609  ;;  %v3931_v58 = vsel %vm3861_vm10, %v5608_v54, 0.0 }
 0xe42   : > { %v5612_v60 = vpop.eup %5611  ;;  %3932 = vadd.xlane.f32.xlu1 %v3931_v58  ;;  %v3928_v61 = vsel %vm3861_vm10, %v5610_v55, 0.0 }
 0xe43   : > { %v5614_v63 = vpop.eup %5613  ;;  %v3937_v16 = vmul.f32 0.6931472, %v5612_v60  ;;  %3929 = vadd.xlane.f32.xlu0 %v3928_v61 }
 0xe44   : > { %v5616_v28 = vpop.eup %5615  ;;  %v3935_v0 = vmul.f32 0.6931472, %v5614_v63 }
 0xe45   : > { %v5618_v1 = vpop.eup %5617  ;;  %v3951_v59 = vadd.f32 %v3937_v16, %v7218_v2  ;;  %v3941_v5 = vmul.f32 0.6931472, %v5616_v28 }
 0xe46   : > { %v3950_v6 = vadd.f32 %v3935_v0, %v7222_v3  ;;  %v3939_v8 = vmul.f32 0.6931472, %v5618_v1 }
 0xe47   : > { %v3959_v9 = vsub.f32 %v7185_v31, %v3951_v59  ;;  %v3953_v56 = vadd.f32 %v3941_v5, %v7220_v50 }
 0xe48   : > { %v5620_v12 = vpop.eup %5619  ;;  %v3958_v13 = vsub.f32 %v7188_v37, %v3950_v6  ;;  %v3952_v14 = vadd.f32 %v3939_v8, %v7224_v4 }
 0xe49   : > { %v5622_v15 = vpop.eup %5621  ;;  %v3967_v17 = vadd.f32 -0.105360515, %v3959_v9  ;;  %v3961_v18 = vsub.f32 %v7193_v40, %v3953_v56  ;;  %v3945_v19 = vmul.f32 0.6931472, %v5620_v12 }
 0xe4a   : > { %v3966_v21 = vadd.f32 -0.105360515, %v3958_v13  ;;  %v3960_v2 = vsub.f32 %v7196_v42, %v3952_v14  ;;  %v3943_v22 = vmul.f32 0.6931472, %v5622_v15 }
 0xe4b   : > { %v7276_v3 = vmax.f32 %v3967_v17, -4.0943446  ;;  %v3969_v23 = vadd.f32 -0.105360515, %v3961_v18  ;;  %v3955_v31 = vadd.f32 %v3945_v19, %v7234_v10 }
 0xe4c   : > { %v7279_v50 = vmax.f32 %v3966_v21, -4.0943446  ;;  %v3968_v24 = vadd.f32 -0.105360515, %v3960_v2  ;;  %v3954_v37 = vadd.f32 %v3943_v22, %v7236_v11 }
 0xe4d   : > { %v3983_v4 = vsub.f32 %v3967_v17, %v7276_v3  ;;  %v4007_v25 = vsub.f32 -4.0943446, %v7276_v3  ;;  %v7284_v40 = vmax.f32 %v3969_v23, -4.0943446  ;;  %v3963_v26 = vsub.f32 %v7206_v51, %v3955_v31 }
 0xe4e   : > { %v3982_v42 = vsub.f32 %v3966_v21, %v7279_v50  ;;  %v4006_v27 = vsub.f32 -4.0943446, %v7279_v50  ;;  %v7289_v29 = vmax.f32 %v3968_v24, -4.0943446  ;;  %v3962_v10 = vsub.f32 %v7203_v47, %v3954_v37 }
 0xe4f   : > { %v3992_v30 = vmul.f32 1.442695, %v3983_v4  ;;  %v4016_v32 = vmul.f32 1.442695, %v4007_v25  ;;  %v3985_v11 = vsub.f32 %v3969_v23, %v7284_v40  ;;  %v4009_v33 = vsub.f32 -4.0943446, %v7284_v40 }
 0xe50   : > { %v3990_v34 = vmul.f32 1.442695, %v3982_v42  ;;  %v4014_v53 = vmul.f32 1.442695, %v4006_v27  ;;  %v3984_v35 = vsub.f32 %v3968_v24, %v7289_v29  ;;  %v4008_v51 = vsub.f32 -4.0943446, %v7289_v29 }
 0xe51   : > { %5623 = vpow2.f32 %v3992_v30  ;;  %v3996_v62 = vmul.f32 1.442695, %v3985_v11  ;;  %v3971_v36 = vadd.f32 -0.105360515, %v3963_v26  ;;  %v4020_v57 = vmul.f32 1.442695, %v4009_v33 }
 0xe52   : > { %5625 = vpow2.f32 %v4016_v32  ;;  %v3970_v38 = vadd.f32 -0.105360515, %v3962_v10  ;;  %v3994_v47 = vmul.f32 1.442695, %v3984_v35  ;;  %v4018_v41 = vmul.f32 1.442695, %v4008_v51 }
 0xe53   : > { %5627 = vpow2.f32 %v3990_v34  ;;  %v7296_v39 = vmax.f32 %v3971_v36, -4.0943446 }
 0xe54   : > { %5629 = vpow2.f32 %v4014_v53  ;;  %v7298_v43 = vmax.f32 %v3970_v38, -4.0943446 }
 0xe55   : > { %5631 = vpow2.f32 %v3996_v62  ;;  %v3987_v44 = vsub.f32 %v3971_v36, %v7296_v39  ;;  %v4011_v45 = vsub.f32 -4.0943446, %v7296_v39 }
 0xe56   : > { %5633 = vpow2.f32 %v4020_v57  ;;  %v3986_v46 = vsub.f32 %v3970_v38, %v7298_v43  ;;  %v4010_v52 = vsub.f32 -4.0943446, %v7298_v43 }
 0xe57   : > { %5635 = vpow2.f32 %v3994_v47  ;;  %v4000_v54 = vmul.f32 1.442695, %v3987_v44  ;;  %v4024_v55 = vmul.f32 1.442695, %v4011_v45 }
 0xe58   : > { %5637 = vpow2.f32 %v4018_v41  ;;  %v3998_v58 = vmul.f32 1.442695, %v3986_v46  ;;  %v4022_v60 = vmul.f32 1.442695, %v4010_v52 }
 0xe59   : > { %5639 = vpow2.f32 %v4000_v54 }
 0xe5a   : > { %5641 = vpow2.f32 %v4024_v55 }
 0xe5b   : > { %v5624_v61 = vpop.eup %5623  ;;  %5643 = vpow2.f32 %v3998_v58 }
 0xe5c   : > { %v5626_v63 = vpop.eup %5625  ;;  %5645 = vpow2.f32 %v4022_v60 }
 0xe5d   : > { %v5628_v16 = vpop.eup %5627  ;;  %v4031_v28 = vadd.f32 %v5626_v63, %v5624_v61 }
 0xe5e   : > { %v5630_v0 = vpop.eup %5629 }
 0xe5f   : > { %v5632_v1 = vpop.eup %5631  ;;  %5647 = vlog2.f32 %v4031_v28  ;;  %v4030_v59 = vadd.f32 %v5630_v0, %v5628_v16 }
 0xe60   : > { %v5634_v5 = vpop.eup %5633 }
 0xe61   : > { %v5636_v6 = vpop.eup %5635  ;;  %5649 = vlog2.f32 %v4030_v59  ;;  %v4033_v8 = vadd.f32 %v5634_v5, %v5632_v1 }
 0xe62   : > { %v5638_v9 = vpop.eup %5637 }
 0xe63   : > { %v5640_v56 = vpop.eup %5639  ;;  %5651 = vlog2.f32 %v4033_v8  ;;  %v4032_v12 = vadd.f32 %v5638_v9, %v5636_v6 }
 0xe64   : > { %v5642_v13 = vpop.eup %5641 }
 0xe65   : > { %v5644_v14 = vpop.eup %5643  ;;  %5653 = vlog2.f32 %v4032_v12  ;;  %v4035_v15 = vadd.f32 %v5642_v13, %v5640_v56 }
 0xe66   : > { %v5646_v17 = vpop.eup %5645 }
 0xe67   : > { %5655 = vlog2.f32 %v4035_v15  ;;  %v4034_v18 = vadd.f32 %v5646_v17, %v5644_v14 }
 0xe69   : > { %v5648_v19 = vpop.eup %5647  ;;  %5657 = vlog2.f32 %v4034_v18 }
 0xe6a   : > { %v4041_v21 = vmul.f32 0.6931472, %v5648_v19 }
 0xe6b   : > { %v5650_v2 = vpop.eup %5649 }
 0xe6c   : > { %v4055_v22 = vadd.f32 %v4041_v21, %v7276_v3  ;;  %v4039_v23 = vmul.f32 0.6931472, %v5650_v2 }
 0xe6d   : > { %v5652_v31 = vpop.eup %5651 }
 0xe6e   : > { %4063 = vst.msk [vmem:[%s7307_s4 + $0x8] sm:$0xff] %vm3861_vm10, %v4055_v22  ;;  %v4054_v24 = vadd.f32 %v4039_v23, %v7279_v50  ;;  %v4045_v37 = vmul.f32 0.6931472, %v5652_v31 }
 0xe6f   : > { %v5654_v4 = vpop.eup %5653 }
 0xe70   : > { %4062 = vst.msk [vmem:[%s7307_s4] sm:$0xff] %vm3861_vm10, %v4054_v24  ;;  %v4057_v3 = vadd.f32 %v4045_v37, %v7284_v40  ;;  %v4043_v25 = vmul.f32 0.6931472, %v5654_v4 }
 0xe71   : > { %v5656_v26 = vpop.eup %5655 }
 0xe72   : > { %4065 = vst.msk [vmem:[%s7307_s4 + $0x18] sm:$0xff] %vm3861_vm10, %v4057_v3  ;;  %v4056_v42 = vadd.f32 %v4043_v25, %v7289_v29  ;;  %v4049_v27 = vmul.f32 0.6931472, %v5656_v26 }
 0xe73   : > { %v5658_v10 = vpop.eup %5657 }
 0xe74   : > { %4064 = vst.msk [vmem:[%s7307_s4 + $0x10] sm:$0xff] %vm3861_vm10, %v4056_v42  ;;  %v4059_v30 = vadd.f32 %v4049_v27, %v7296_v39  ;;  %v4047_v50 = vmul.f32 0.6931472, %v5658_v10 }
 0xe75   : > { %v4127_v5 = vld [vmem:[%s7307_s4 + $0x8] sm:$0xff] (%p7504_p11) }
 0xe76   : > { %4067 = vst.msk [vmem:[%s7307_s4 + $0x28] sm:$0xff] %vm3861_vm10, %v4059_v30  ;;  %v4058_v32 = vadd.f32 %v4047_v50, %v7298_v43  ;;  %4128 = vst [vmem:[%s4083_s2 + $0x10] sm:$0xff] (%p7504_p11), %v4127_v5 }
 0xe77   : > { %v4125_v59 = vld [vmem:[%s7307_s4] sm:$0xff] (%p7504_p11) }
 0xe78   : > { %4066 = vst.msk [vmem:[%s7307_s4 + $0x20] sm:$0xff] %vm3861_vm10, %v4058_v32  ;;  %4126 = vst [vmem:[%s4083_s2] sm:$0xff] (%p7504_p11), %v4125_v59 }
 0xe79   : > { %v4131_v8 = vld [vmem:[%s7307_s4 + $0x18] sm:$0xff] (%p7504_p11) }
 0xe7a   : > { %4132 = vst [vmem:[%s4083_s2 + $0x30] sm:$0xff] (%p7504_p11), %v4131_v8 }
 0xe7b   : > { %v4129_v6 = vld [vmem:[%s7307_s4 + $0x10] sm:$0xff] (%p7504_p11) }
 0xe7c   : > { %4130 = vst [vmem:[%s4083_s2 + $0x20] sm:$0xff] (%p7504_p11), %v4129_v6 }
 0xe7d   : > { %v4135_v56 = vld [vmem:[%s7307_s4 + $0x28] sm:$0xff] (%p7504_p11) }
 0xe7e   : > { %4136 = vst [vmem:[%s4083_s2 + $0x50] sm:$0xff] (%p7504_p11), %v4135_v56 }
 0xe7f   : > { %v4133_v9 = vld [vmem:[%s7307_s4 + $0x20] sm:$0xff] (%p7504_p11) }
 0xe80   : > { %4134 = vst [vmem:[%s4083_s2 + $0x40] sm:$0xff] (%p7504_p11), %v4133_v9 }
 0xecf   : > { %v3933_v40 = vpop.xlane.xlu1 %3932 }
 0xed0   : > { %5659 = vlog2.f32 %v3933_v40  ;;  %v3930_v11 = vpop.xlane.xlu0 %3929 }
 0xed1   : > { %5661 = vlog2.f32 %v3930_v11 }
 0xeda   : > { %v5660_v33 = vpop.eup %5659 }
 0xedb   : > { %v5662_v34 = vpop.eup %5661  ;;  %v3949_v29 = vmul.f32 0.6931472, %v5660_v33 }
 0xedc   : > { %v3947_v53 = vmul.f32 0.6931472, %v5662_v34 }
 0xedd   : > { %v3957_v35 = vadd.f32 %v3949_v29, %v7258_v7 }
 0xede   : > { %v3956_v51 = vadd.f32 %v3947_v53, %v7262_v48 }
 0xedf   : > { %v3965_v62 = vsub.f32 %v7243_v20, %v3957_v35 }
 0xee0   : > { %v3964_v36 = vsub.f32 %v7246_v49, %v3956_v51 }
 0xee1   : > { %v3973_v57 = vadd.f32 -0.105360515, %v3965_v62 }
 0xee2   : > { %v3972_v38 = vadd.f32 -0.105360515, %v3964_v36 }
 0xee3   : > { %v3981_v47 = vmax.f32 %v3973_v57, -4.0943446 }
 0xee4   : > { %v3980_v39 = vmax.f32 %v3972_v38, -4.0943446 }
 0xee5   : > { %v3989_v41 = vsub.f32 %v3973_v57, %v3981_v47  ;;  %v4013_v43 = vsub.f32 -4.0943446, %v3981_v47 }
 0xee6   : > { %v3988_v44 = vsub.f32 %v3972_v38, %v3980_v39  ;;  %v4012_v45 = vsub.f32 -4.0943446, %v3980_v39 }
 0xee7   : > { %v4004_v46 = vmul.f32 1.442695, %v3989_v41  ;;  %v4028_v52 = vmul.f32 1.442695, %v4013_v43 }
 0xee8   : > { %v4002_v54 = vmul.f32 1.442695, %v3988_v44  ;;  %v4026_v55 = vmul.f32 1.442695, %v4012_v45 }
 0xee9   : > { %5663 = vpow2.f32 %v4004_v46 }
 0xeea   : > { %5665 = vpow2.f32 %v4028_v52 }
 0xeeb   : > { %5667 = vpow2.f32 %v4002_v54 }
 0xeec   : > { %5669 = vpow2.f32 %v4026_v55 }
 0xef3   : > { %v5664_v20 = vpop.eup %5663 }
 0xef4   : > { %v5666_v49 = vpop.eup %5665 }
 0xef5   : > { %v5668_v7 = vpop.eup %5667  ;;  %v4037_v48 = vadd.f32 %v5666_v49, %v5664_v20 }
 0xef6   : > { %v5670_v58 = vpop.eup %5669 }
 0xef7   : > { %5671 = vlog2.f32 %v4037_v48  ;;  %v4036_v60 = vadd.f32 %v5670_v58, %v5668_v7 }
 0xef9   : > { %5673 = vlog2.f32 %v4036_v60 }
 0xf01   : > { %v5672_v61 = vpop.eup %5671 }
 0xf02   : > { %v4053_v63 = vmul.f32 0.6931472, %v5672_v61  ;;  %4081 = sbr.rel (!%p7504_p11) target bundleno = 3857 (0xf11), region = 164 }
 0xf03   : > { %v5674_v16 = vpop.eup %5673 }
 0xf04   : > { %v4061_v28 = vadd.f32 %v4053_v63, %v3981_v47  ;;  %v4051_v0 = vmul.f32 0.6931472, %v5674_v16 }
 0xf06   : > { %4069 = vst.msk [vmem:[%s7307_s4 + $0x38] sm:$0xff] %vm3861_vm10, %v4061_v28  ;;  %v4060_v1 = vadd.f32 %v4051_v0, %v3980_v39 }
 0xf08   : > { %4068 = vst.msk [vmem:[%s7307_s4 + $0x30] sm:$0xff] %vm3861_vm10, %v4060_v1 }
 0xf0d   : > { %v4139_v13 = vld [vmem:[%s7307_s4 + $0x38] sm:$0xff] }
 0xf0e   : > { %4140 = vst [vmem:[%s4083_s2 + $0x70] sm:$0xff] %v4139_v13 }
 0xf0f   : > { %v4137_v12 = vld [vmem:[%s7307_s4 + $0x30] sm:$0xff] }
 0xf10   : > { %4138 = vst [vmem:[%s4083_s2 + $0x60] sm:$0xff] %v4137_v12 }
 0xf11 PF: > { %s7507_s11 = sld [smem:[#allocation43_spill]]  ;;  %s4153_s13 = sshll.u32 %s7174_s29, 4  ;;  %s4154_s13 = int_to_ptr.vmem [resolvable:$true] %s4153_s13 }
 0xf12   : > { %s7508_s12 = sld [smem:[#allocation63_spill]]  ;;  %s6099_s24 = scalar_lea.vmem %s4154_s13, 128 }
 0xf13   : > { %p6100_p8 = scmp.ne.s32.totalorder %s4154_s13, %s6099_s24  ;;  %p7509_p4 = scmp.ne.s32.totalorder %s7473_s3, 0 }
 0xf14   : > { %s6220_s28 = smov [#allocation31]  }
 0xf15   : > { %p6101_p12 = pnand %p6100_p8, %p7509_p4  ;;  %s6103_s4 = sshll.u32 %s6220_s28, 4  ;;  %s6104_s4 = int_to_ptr.vmem [resolvable:$false] %s6103_s4 }
 0xf16   : > { %s6105_s7 = scalar_lea.vmem %s6104_s4, 256  ;;  %p6106_p13 = scmp.lt.s32.totalorder %s4154_s13, %s6104_s4 }
 0xf17   : > { %s4526_s8 = sshll.u32 %s7507_s11, 7  ;;  %p6102_p1 = pneg %p6101_p12 }
 0xf18   : > { %s4151_s23 = scalar_lea.hbm %s7508_s12, %s4526_s8  ;;  %p6107_p0 = scmp.lt.s32.totalorder %s6105_s7, %s6099_s24 }
 0xf1a   : > { %p6108_p2 = por %p6107_p0, %p6106_p13 }
 0xf1c   : > { %p6109_p7 = pnand %p6108_p2, %p6102_p1 }
 0xf1e   : > { %6112 = shalt.err (!%p6109_p7)
}
 0xf1f   : > { %s6113_s29 = scalar_lea.hbm %s4151_s23, 128  ;;  %s6117_s8 = scalar_lea.hbm %s7508_s12, 256 }
 0xf20   : > { %p6114_p10 = scmp.ne.s32.totalorder %s4151_s23, %s6113_s29  ;;  %p6118_p3 = scmp.lt.u32.totalorder %s4151_s23, %s7508_s12 }
 0xf21   : > { %p6119_p6 = scmp.lt.u32.totalorder %s6117_s8, %s6113_s29  ;;  %p6121_p8 = scmp.lt.u32.totalorder %s6113_s29, %s4151_s23 }
 0xf22   : > { %p6115_p5 = pnand %p6114_p10, %p7509_p4 }
 0xf23   : > { %p6120_p11 = por %p6119_p6, %p6118_p3 }
 0xf24   : > { %p6116_p9 = pneg %p6115_p5 }
 0xf25   : > { %p6122_p12 = por %p6121_p8, %p6120_p11 }
 0xf27   : > { %p6123_p1 = pnand %p6122_p12, %p6116_p9 }
 0xf29   : > { %6126 = shalt.err (!%p6123_p1)
}
 0xf2a   : > { %5383 = dma.vmem_to_hbm [thread:$0]  (%p7509_p4), %s4154_s13, 128, %s4151_s23, %s4075_s30  }
 0xf2b PF: > { %s7510_s24 = sld [smem:[#allocation42_spill]]  ;;  %p7511_p13 = scmp.ne.s32.totalorder %s7474_s19, 0 }
 0xf2c   : > { %p7512_p0 = scmp.ge.s32.totalorder %s6197_s27, 2 }
 0xf2e   : > { %p5433_p2 = pnand %p7512_p0, %p7511_p13 }
 0xf31   : > { %s4172_s28 = sand.u32 1, %s7510_s24  }
 0xf32   : > { %s4173_s4 = scalar_lea.sflag [#allocation8], %s4172_s28 }
 0xf33   : > { %6180 = dma.done.wait (!%p5433_p2), %s4173_s4, 128  }
 0xf34   : > { %6182 = vsyncadd (!%p5433_p2), %s4173_s4, 4294967168  ;;  %p44_p7 = scmp.ge.s32.totalorder %s6652_s5, 4   ;;  %s7513_s2 = smov %s6189_s25 }
 0xf35   : > { %s7514_s25 = smov %s6193_s26  ;;  %s7515_s26 = smov %s6664_s21 }
 0xf36   : > { %s7516_s27 = smov %s6652_s5  ;;  %46 = sbr.rel (!%p44_p7) target bundleno = 33 (0x21), region = 260 }
 0xf3d   :  { %4178 = vsyncpa [#allocation7], 1 }
 0xf3e   :  { %4180 = vsyncpa [#allocation7 + $0x1], 1 }
 0xf3f   :  { %4181 = vsyncpa [#allocation10], 1 }
 0xf40   :  { %4183 = vsyncpa [#allocation10 + $0x1], 1 }
 0xf41   :  { %4184 = vsyncpa [#allocation13], 1 }
 0xf42   :  { %4185 = vsyncpa [#allocation16], 1 }
 0xf43   :  { %4186 = vsyncpa [#allocation19], 1 }
 0xf44   :  { %4187 = vsyncpa [#allocation22], 1 }
 0xf45   :  { %4188 = vsyncpa [#allocation25], 1 }
 0xf46   :  { %4189 = vsyncpa [#allocation28], 1 }
 0xf47   :  { %4190 = vsyncpa [#allocation8], 1 }
 0xf48   :  { %4192 = vsyncpa [#allocation8 + $0x1], 1 }

</bundles_post_ra>
